<compile_context>
chip_gen: v7x
topology: tpu7x:2x2x1
jax: 0.10.0
libtpu: 0.0.40
codegen_flags: <defaults>
</compile_context>

<pallas_src>
import functools
import math

import jax
import jax.numpy as jnp
from jax import lax
from jax.experimental import pallas as pl
from jax.experimental.pallas import tpu as pltpu


def _layer_norm(x, gamma, beta, eps):
    mu = jnp.mean(x, axis=-1, keepdims=True)
    var = jnp.mean(jnp.square(x - mu), axis=-1, keepdims=True)
    return (x - mu) * lax.rsqrt(var + eps) * gamma + beta


def _gelu_exact(x):
    # PyTorch F.gelu default = exact erf formulation.
    return 0.5 * x * (1.0 + lax.erf(x * jnp.float32(1.0 / math.sqrt(2.0))))


def encoder_layer_kernel(n_head, d_k, d_v, eps, write_attn,
                         x_ref, npm_ref, mask_ref,
                         wq_ref, wk_ref, wv_ref, wo_ref, bo_ref,
                         g1_ref, be1_ref,
                         w1_ref, b1_ref, w2_ref, b2_ref,
                         g2_ref, be2_ref,
                         *rest):
    if write_attn:
        out_ref, attn_ref, k_scratch, v_scratch = rest
    else:
        out_ref, k_scratch, v_scratch = rest
        attn_ref = None

    H = n_head
    L = x_ref.shape[1]          # full (padded) sequence length (keys)
    TQ = out_ref.shape[1]       # query-tile rows handled this grid step
    qi = pl.program_id(1)

    # ---- K / V for the whole sequence: computed once per batch element and
    #      kept resident (head-major) in VMEM scratch across all query tiles.
    # NOTE: this carry is only correct because the qi axis is "arbitrary"
    # (sequential per core) with B as the outer grid dim.
    @pl.when(qi == 0)
    def _():
        xn_full = _layer_norm(x_ref[0], g1_ref[...], be1_ref[...], eps)     # (L, D)
        k_full = jnp.dot(xn_full, wk_ref[...],
                         preferred_element_type=jnp.float32)                # (L, H*dk)
        v_full = jnp.dot(xn_full, wv_ref[...],
                         preferred_element_type=jnp.float32)                # (L, H*dv)
        k_scratch[...] = (k_full.reshape(L, H, d_k)
                          .transpose(1, 0, 2).astype(k_scratch.dtype))      # (H, L, dk)
        v_scratch[...] = (v_full.reshape(L, H, d_v)
                          .transpose(1, 0, 2).astype(v_scratch.dtype))      # (H, L, dv)

    row0 = pl.multiple_of(qi * TQ, TQ)
    xq = x_ref[0, pl.ds(row0, TQ), :]          # (TQ, D) residual rows of this tile
    npm = npm_ref[0]                           # (TQ, 1)

    # Additive mask: one compare/select for the whole tile instead of per head.
    # (A fully-masked row yields softmax(raw scores) rather than PyTorch's
    #  uniform row; THP's subsequent+key-pad mask never fully masks a real row,
    #  and padded query rows are discarded / zeroed by non_pad_mask.)
    neg = jnp.where(mask_ref[0] > 0.5, jnp.float32(-1e9), jnp.float32(0.0))  # (TQ, L)

    # ---- Multi-head self-attention (pre-norm); all heads in batched einsums.
    xn_q = _layer_norm(xq, g1_ref[...], be1_ref[...], eps)
    inv_temp = jnp.float32(1.0 / math.sqrt(d_k))
    q = jnp.dot(xn_q, wq_ref[...],
                preferred_element_type=jnp.float32) * inv_temp              # scale hoisted
    qh = q.reshape(TQ, H, d_k).transpose(1, 0, 2).astype(k_scratch.dtype)   # (H, TQ, dk)

    scores = jnp.einsum('hqd,hkd->hqk', qh, k_scratch[...],
                        preferred_element_type=jnp.float32)                 # (H, TQ, L)
    scores = scores + neg[None, :, :]
    scores = scores - jnp.max(scores, axis=-1, keepdims=True)
    e = jnp.exp(scores)
    attn = e * pl.reciprocal(jnp.sum(e, axis=-1, keepdims=True), approx=True)
    if attn_ref is not None:
        attn_ref[0] = attn.astype(attn_ref.dtype)                           # one lane-dense store

    ctx = jnp.einsum('hqk,hkd->hqd', attn.astype(v_scratch.dtype), v_scratch[...],
                     preferred_element_type=jnp.float32)                    # (H, TQ, dv)
    concat = ctx.transpose(1, 0, 2).reshape(TQ, H * d_v)                    # (TQ, H*dv)
    attn_out = jnp.dot(concat, wo_ref[...],
                       preferred_element_type=jnp.float32) + bo_ref[...]
    attn_out = (attn_out + xq) * npm          # residual, then *= non_pad_mask

    # ---- Position-wise feed-forward (pre-norm) ----
    yn = _layer_norm(attn_out, g2_ref[...], be2_ref[...], eps)
    h1 = _gelu_exact(jnp.dot(yn, w1_ref[...],
                             preferred_element_type=jnp.float32) + b1_ref[...])
    y = jnp.dot(h1, w2_ref[...],
                preferred_element_type=jnp.float32) + b2_ref[...]
    out_ref[0] = (y + attn_out) * npm         # residual, then *= non_pad_mask


def encoder_layer_softmax(enc_input, non_pad_mask, slf_attn_mask, params, *,
                          n_head, d_k, d_v, eps=1e-6,
                          attn_dtype=jnp.float32, kv_dtype=jnp.float32,
                          return_attn=True):
    B, L, D = enc_input.shape
    H = n_head
    d_inner = params["w1"].shape[1]

    weight_order = ("wq", "wk", "wv", "wo", "bo",
                    "g1", "be1", "w1", "b1", "w2", "b2", "g2", "be2")
    weights = [params[name] for name in weight_order]
    weight_elems = sum(int(w.size) for w in weights)

    attn_isz = jnp.dtype(attn_dtype).itemsize if return_attn else 0
    kv_isz = jnp.dtype(kv_dtype).itemsize

    # ---- VMEM budget (explicit limit; TQ sized from a working-set estimate) --
    try:
        phys_vmem = int(pltpu.get_tpu_info().vmem_capacity_bytes)
    except Exception:
        phys_vmem = 64 << 20                       # conservative (v7x per-core)
    vmem_cap = max(min(phys_vmem - (8 << 20), 112 << 20), 24 << 20)

    def est_vmem(tq, lp):
        f32 = 4
        return int(
            f32 * weight_elems                     # weights, single-buffered
            + 2 * lp * D * f32                     # x block (double-buffered)
            + 2 * tq * lp * f32                    # slf_attn_mask block
            + 2 * tq * D * f32                     # enc_output block
            + 2 * H * tq * lp * attn_isz           # attn output block
            + H * lp * (d_k + d_v) * kv_isz        # K / V scratch
            + f32 * (3 * H * tq * lp               # scores / exp / attn temporaries
                     + 3 * lp * D                  # qi==0 LN + K/V projections
                     + 2 * tq * d_inner            # FFN intermediate
                     + 6 * tq * D))                # q / ctx / residual temporaries

    # ---- sequence padding + query-tile selection ----------------------------
    if L <= 128:
        Lp, TQ = L, L
    else:
        Lp = ((L + 127) // 128) * 128              # pad; never fall back to TQ = L
        TQ = 32
        for cand in (256, 128, 64, 32):
            if Lp % cand == 0 and est_vmem(cand, Lp) <= vmem_cap:
                TQ = cand
                break
    n_qt = Lp // TQ

    if Lp != L:
        pad = Lp - L
        enc_input = jnp.pad(enc_input, ((0, 0), (0, pad), (0, 0)))
        non_pad_mask = jnp.pad(non_pad_mask, ((0, 0), (0, pad), (0, 0)))
        slf_attn_mask = jnp.pad(slf_attn_mask, ((0, 0), (0, pad), (0, pad)),
                                constant_values=1.0)   # padded keys/queries masked

    kern = functools.partial(encoder_layer_kernel, n_head, d_k, d_v, eps, return_attn)

    # ---- advisory cost estimate so XLA schedules around the call sensibly ---
    flops_per_b = (
        2 * Lp * D * (H * d_k) * 2      # q, k projections
        + 2 * Lp * D * (H * d_v)        # v projection
        + 2 * H * Lp * Lp * d_k         # scores
        + 2 * H * Lp * Lp * d_v         # context
        + 2 * Lp * (H * d_v) * D        # output projection
        + 2 * Lp * D * d_inner          # FFN layer 1
        + 2 * Lp * d_inner * D          # FFN layer 2
    )
    transc_per_b = H * Lp * Lp + Lp * d_inner
    bytes_accessed = (4 * (B * Lp * D * 2 + B * Lp + B * Lp * Lp + weight_elems)
                      + attn_isz * B * H * Lp * Lp)
    cost = pl.CostEstimate(flops=int(B * flops_per_b),
                           transcendentals=int(B * transc_per_b),
                           bytes_accessed=int(bytes_accessed))

    def build(single_buffer_weights):
        wmode = pl.Buffered(1) if single_buffer_weights else None

        def w_spec(arr):
            zeros = (0,) * arr.ndim
            # Grid-invariant weight/bias: constant index_map -> fetched once;
            # Buffered(1) single-buffers it (no wasted second VMEM copy).
            return pl.BlockSpec(arr.shape, lambda b, qi: zeros,
                                pipeline_mode=wmode)

        in_specs = [
            # Full sequence of x stays resident across all query tiles of a batch.
            pl.BlockSpec((1, Lp, D), lambda b, qi: (b, 0, 0)),     # enc_input
            pl.BlockSpec((1, TQ, 1), lambda b, qi: (b, qi, 0)),    # non_pad_mask tile
            pl.BlockSpec((1, TQ, Lp), lambda b, qi: (b, qi, 0)),   # slf_attn_mask tile
        ] + [w_spec(w) for w in weights]

        out_shape = [jax.ShapeDtypeStruct((B, Lp, D), jnp.float32)]
        out_specs = [pl.BlockSpec((1, TQ, D), lambda b, qi: (b, qi, 0))]
        if return_attn:
            out_shape.append(jax.ShapeDtypeStruct((B, H, Lp, Lp), attn_dtype))
            out_specs.append(pl.BlockSpec((1, H, TQ, Lp), lambda b, qi: (b, 0, qi, 0)))

        return pl.pallas_call(
            kern,
            grid=(B, n_qt),
            in_specs=in_specs,
            out_specs=tuple(out_specs),
            out_shape=tuple(out_shape),
            scratch_shapes=[
                pltpu.VMEM((H, Lp, d_k), kv_dtype),   # K, head-major, per batch
                pltpu.VMEM((H, Lp, d_v), kv_dtype),   # V, head-major, per batch
            ],
            compiler_params=pltpu.CompilerParams(
                dimension_semantics=("parallel", "arbitrary"),
                vmem_limit_bytes=vmem_cap),
            cost_estimate=cost,
        )

    args = (enc_input, non_pad_mask, slf_attn_mask, *weights)
    try:
        results = build(True)(*args)
    except Exception:
        # Fallback for jax builds without BlockSpec pipeline_mode support
        # (weights double-buffered; everything else identical).
        results = build(False)(*args)

    out = results[0][:, :L, :]
    if not return_attn:
        return out
    attn = results[1][:, :, :L, :L]
    return out, attn


# ---------------- pure-JAX reference (mirrors the PyTorch forward) ----------
def reference(enc_input, non_pad_mask, slf_attn_mask, p, *, n_head, d_k, d_v,
              eps=1e-6):
    B, L, D = enc_input.shape
    x = enc_input
    residual = x
    xn = _layer_norm(x, p["g1"], p["be1"], eps)
    q = (xn @ p["wq"]).reshape(B, L, n_head, d_k).transpose(0, 2, 1, 3)
    k = (xn @ p["wk"]).reshape(B, L, n_head, d_k).transpose(0, 2, 1, 3)
    v = (xn @ p["wv"]).reshape(B, L, n_head, d_v).transpose(0, 2, 1, 3)
    scores = jnp.einsum("bhqd,bhkd->bhqk", q / (d_k ** 0.5), k)
    scores = jnp.where(slf_attn_mask[:, None] > 0.5, -1e9, scores)
    attn = jax.nn.softmax(scores, axis=-1)
    out = jnp.einsum("bhqk,bhkd->bhqd", attn, v)
    out = out.transpose(0, 2, 1, 3).reshape(B, L, n_head * d_v)
    out = out @ p["wo"] + p["bo"]
    out = out + residual
    out = out * non_pad_mask
    resid2 = out
    yn = _layer_norm(out, p["g2"], p["be2"], eps)
    y = _gelu_exact(yn @ p["w1"] + p["b1"]) @ p["w2"] + p["b2"]
    y = y + resid2
    y = y * non_pad_mask
    return y, attn


def _xavier(key, shape):
    fan_in, fan_out = shape
    bound = math.sqrt(6.0 / (fan_in + fan_out))
    return jax.random.uniform(key, shape, jnp.float32, -bound, bound)


def _make_params(key, d_model, d_inner, n_head, d_k, d_v):
    keys = jax.random.split(key, 9)
    return {
        "wq": _xavier(keys[0], (d_model, n_head * d_k)),
        "wk": _xavier(keys[1], (d_model, n_head * d_k)),
        "wv": _xavier(keys[2], (d_model, n_head * d_v)),
        "wo": _xavier(keys[3], (n_head * d_v, d_model)),
        "bo": (0.01 * jax.random.normal(keys[4], (1, d_model))).astype(jnp.float32),
        "g1": jnp.ones((1, d_model), jnp.float32),
        "be1": jnp.zeros((1, d_model), jnp.float32),
        "w1": _xavier(keys[5], (d_model, d_inner)),
        "b1": (0.01 * jax.random.normal(keys[6], (1, d_inner))).astype(jnp.float32),
        "w2": _xavier(keys[7], (d_inner, d_model)),
        "b2": (0.01 * jax.random.normal(keys[8], (1, d_model))).astype(jnp.float32),
        "g2": jnp.ones((1, d_model), jnp.float32),
        "be2": jnp.zeros((1, d_model), jnp.float32),
    }


def _make_masks(lengths, L):
    pos = jnp.arange(L)
    non_pad = (pos[None, :] < lengths[:, None]).astype(jnp.float32)[..., None]   # (B,L,1)
    key_pad = pos[None, None, :] >= lengths[:, None, None]                        # (B,1,L)
    causal = pos[None, :, None] < pos[None, None, :]                              # (1,L,L)
    slf = jnp.logical_or(key_pad, causal).astype(jnp.float32)                     # (B,L,L)
    return non_pad, slf


if __name__ == "__main__":
    root = jax.random.PRNGKey(0)
    k_param, k_x1, k_x2 = jax.random.split(root, 3)

    d_model, d_inner, n_head, d_k, d_v = 32, 64, 4, 8, 8
    params = _make_params(k_param, d_model, d_inner, n_head, d_k, d_v)

    # approx softmax reciprocal (EUP) + rsqrt LayerNorm => slightly looser tol.
    tol = dict(rtol=5e-3, atol=5e-3)

    # ---- case 1: short sequence, single query tile, no padding -------------
    B, L = 2, 8
    x = jax.random.normal(k_x1, (B, L, d_model), jnp.float32)
    non_pad, slf = _make_masks(jnp.array([8, 6], jnp.int32), L)
    out, attn = encoder_layer_softmax(x, non_pad, slf, params,
                                      n_head=n_head, d_k=d_k, d_v=d_v)
    jax.block_until_ready((out, attn))
    ref_out, ref_attn = reference(x, non_pad, slf, params,
                                  n_head=n_head, d_k=d_k, d_v=d_v)
    assert jnp.allclose(out, ref_out, **tol), "case1 enc_output mismatch"
    assert jnp.allclose(attn, ref_attn, **tol), "case1 attn mismatch"

    # ---- case 2: longer sequence -> padded to 384, three 128-row tiles -----
    B, L = 2, 300
    x = jax.random.normal(k_x2, (B, L, d_model), jnp.float32)
    non_pad, slf = _make_masks(jnp.array([300, 250], jnp.int32), L)
    out, attn = encoder_layer_softmax(x, non_pad, slf, params,
                                      n_head=n_head, d_k=d_k, d_v=d_v)
    jax.block_until_ready((out, attn))
    ref_out, ref_attn = reference(x, non_pad, slf, params,
                                  n_head=n_head, d_k=d_k, d_v=d_v)
    assert jnp.allclose(out, ref_out, **tol), "case2 enc_output mismatch"
    assert jnp.allclose(attn, ref_attn, **tol), "case2 attn mismatch"

    print("KERNEL_OK")
</pallas_src>

<mosaic_0001>
module attributes {stable_mosaic.version = 11 : i64} {
  func.func @encoder_layer_kernel(%arg0: i32, %arg1: i32, %arg2: memref<1x8x32xf32, #tpu.memory_space<vmem>>, %arg3: memref<1x8x1xf32, #tpu.memory_space<vmem>>, %arg4: memref<1x8x8xf32, #tpu.memory_space<vmem>>, %arg5: memref<32x32xf32, #tpu.memory_space<vmem>>, %arg6: memref<32x32xf32, #tpu.memory_space<vmem>>, %arg7: memref<32x32xf32, #tpu.memory_space<vmem>>, %arg8: memref<32x32xf32, #tpu.memory_space<vmem>>, %arg9: memref<1x32xf32, #tpu.memory_space<vmem>>, %arg10: memref<1x32xf32, #tpu.memory_space<vmem>>, %arg11: memref<1x32xf32, #tpu.memory_space<vmem>>, %arg12: memref<32x64xf32, #tpu.memory_space<vmem>>, %arg13: memref<1x64xf32, #tpu.memory_space<vmem>>, %arg14: memref<64x32xf32, #tpu.memory_space<vmem>>, %arg15: memref<1x32xf32, #tpu.memory_space<vmem>>, %arg16: memref<1x32xf32, #tpu.memory_space<vmem>>, %arg17: memref<1x32xf32, #tpu.memory_space<vmem>>, %arg18: memref<1x8x32xf32, #tpu.memory_space<vmem>>, %arg19: memref<1x4x8x8xf32, #tpu.memory_space<vmem>>, %arg20: memref<4x8x8xf32, #tpu.memory_space<vmem>>, %arg21: memref<4x8x8xf32, #tpu.memory_space<vmem>>) attributes {dimension_semantics = [#tpu.dimension_semantics<parallel>, #tpu.dimension_semantics<arbitrary>], iteration_bounds = array<i64: 2, 1>, scalar_prefetch = 0 : i64, scratch_operands = 2 : i64, tpu.core_type = #tpu.core_type<tc>, window_params = [{transform_indices = @transform_0, window_bounds = array<i64: 1, 8, 32>}, {transform_indices = @transform_1, window_bounds = array<i64: 1, 8, 1>}, {transform_indices = @transform_2, window_bounds = array<i64: 1, 8, 8>}, {pipeline_mode = #tpu.pipeline_mode<synchronous>, transform_indices = @transform_3, window_bounds = array<i64: 32, 32>}, {pipeline_mode = #tpu.pipeline_mode<synchronous>, transform_indices = @transform_4, window_bounds = array<i64: 32, 32>}, {pipeline_mode = #tpu.pipeline_mode<synchronous>, transform_indices = @transform_5, window_bounds = array<i64: 32, 32>}, {pipeline_mode = #tpu.pipeline_mode<synchronous>, transform_indices = @transform_6, window_bounds = array<i64: 32, 32>}, {pipeline_mode = #tpu.pipeline_mode<synchronous>, transform_indices = @transform_7, window_bounds = array<i64: 1, 32>}, {pipeline_mode = #tpu.pipeline_mode<synchronous>, transform_indices = @transform_8, window_bounds = array<i64: 1, 32>}, {pipeline_mode = #tpu.pipeline_mode<synchronous>, transform_indices = @transform_9, window_bounds = array<i64: 1, 32>}, {pipeline_mode = #tpu.pipeline_mode<synchronous>, transform_indices = @transform_10, window_bounds = array<i64: 32, 64>}, {pipeline_mode = #tpu.pipeline_mode<synchronous>, transform_indices = @transform_11, window_bounds = array<i64: 1, 64>}, {pipeline_mode = #tpu.pipeline_mode<synchronous>, transform_indices = @transform_12, window_bounds = array<i64: 64, 32>}, {pipeline_mode = #tpu.pipeline_mode<synchronous>, transform_indices = @transform_13, window_bounds = array<i64: 1, 32>}, {pipeline_mode = #tpu.pipeline_mode<synchronous>, transform_indices = @transform_14, window_bounds = array<i64: 1, 32>}, {pipeline_mode = #tpu.pipeline_mode<synchronous>, transform_indices = @transform_15, window_bounds = array<i64: 1, 32>}, {transform_indices = @transform_16, window_bounds = array<i64: 1, 8, 32>}, {transform_indices = @transform_17, window_bounds = array<i64: 1, 4, 8, 8>}]} {
    %c0_i32 = arith.constant 0 : i32
    %0 = arith.cmpi eq, %arg1, %c0_i32 : i32
    %1 = arith.extui %0 : i1 to i32
    %c0_i32_0 = arith.constant 0 : i32
    %2 = arith.cmpi ne, %1, %c0_i32_0 : i32
    scf.if %2 {
      %c0_67 = arith.constant 0 : index
      %c0_68 = arith.constant 0 : index
      %c0_69 = arith.constant 0 : index
      %125 = vector.load %arg2[%c0_67, %c0_68, %c0_69] : memref<1x8x32xf32, #tpu.memory_space<vmem>>, vector<1x8x32xf32>
      %126 = vector.shape_cast %125 : vector<1x8x32xf32> to vector<8x32xf32>
      %c0_70 = arith.constant 0 : index
      %c0_71 = arith.constant 0 : index
      %127 = vector.load %arg10[%c0_70, %c0_71] : memref<1x32xf32, #tpu.memory_space<vmem>>, vector<1x32xf32>
      %c0_72 = arith.constant 0 : index
      %c0_73 = arith.constant 0 : index
      %128 = vector.load %arg11[%c0_72, %c0_73] : memref<1x32xf32, #tpu.memory_space<vmem>>, vector<1x32xf32>
      %cst_74 = arith.constant dense<0.000000e+00> : vector<8xf32>
      %129 = vector.multi_reduction <add>, %126, %cst_74 [1] : vector<8x32xf32> to vector<8xf32>
      %130 = vector.shape_cast %129 : vector<8xf32> to vector<8x1xf32>
      %cst_75 = arith.constant 3.200000e+01 : f32
      %131 = vector.broadcast %cst_75 : f32 to vector<8x1xf32>
      %132 = arith.divf %130, %131 : vector<8x1xf32>
      %133 = vector.broadcast %132 : vector<8x1xf32> to vector<8x32xf32>
      %134 = arith.subf %126, %133 : vector<8x32xf32>
      %135 = arith.mulf %134, %134 : vector<8x32xf32>
      %cst_76 = arith.constant dense<0.000000e+00> : vector<8xf32>
      %136 = vector.multi_reduction <add>, %135, %cst_76 [1] : vector<8x32xf32> to vector<8xf32>
      %137 = vector.shape_cast %136 : vector<8xf32> to vector<8x1xf32>
      %cst_77 = arith.constant 3.200000e+01 : f32
      %138 = vector.broadcast %cst_77 : f32 to vector<8x1xf32>
      %139 = arith.divf %137, %138 : vector<8x1xf32>
      %140 = vector.broadcast %132 : vector<8x1xf32> to vector<8x32xf32>
      %141 = arith.subf %126, %140 : vector<8x32xf32>
      %cst_78 = arith.constant 9.99999997E-7 : f32
      %142 = vector.broadcast %cst_78 : f32 to vector<8x1xf32>
      %143 = arith.addf %139, %142 : vector<8x1xf32>
      %144 = math.rsqrt %143 : vector<8x1xf32>
      %145 = vector.broadcast %144 : vector<8x1xf32> to vector<8x32xf32>
      %146 = arith.mulf %141, %145 : vector<8x32xf32>
      %147 = vector.broadcast %127 : vector<1x32xf32> to vector<8x32xf32>
      %148 = arith.mulf %146, %147 : vector<8x32xf32>
      %149 = vector.broadcast %128 : vector<1x32xf32> to vector<8x32xf32>
      %150 = arith.addf %148, %149 : vector<8x32xf32>
      %c0_79 = arith.constant 0 : index
      %c0_80 = arith.constant 0 : index
      %151 = vector.load %arg6[%c0_79, %c0_80] : memref<32x32xf32, #tpu.memory_space<vmem>>, vector<32x32xf32>
      %cst_81 = arith.constant dense<0.000000e+00> : vector<8x32xf32>
      %152 = tpu.matmul %150, %151, %cst_81 {dimension_numbers = #tpu.dot_dimension_numbers<[1], [0], [0], [1], [0, 0, 1, 1], [], []>} : vector<8x32xf32>, vector<32x32xf32>, vector<8x32xf32> -> vector<8x32xf32>
      %c0_82 = arith.constant 0 : index
      %c0_83 = arith.constant 0 : index
      %153 = vector.load %arg7[%c0_82, %c0_83] : memref<32x32xf32, #tpu.memory_space<vmem>>, vector<32x32xf32>
      %cst_84 = arith.constant dense<0.000000e+00> : vector<8x32xf32>
      %154 = tpu.matmul %150, %153, %cst_84 {dimension_numbers = #tpu.dot_dimension_numbers<[1], [0], [0], [1], [0, 0, 1, 1], [], []>} : vector<8x32xf32>, vector<32x32xf32>, vector<8x32xf32> -> vector<8x32xf32>
      %155 = vector.shape_cast %152 : vector<8x32xf32> to vector<8x4x8xf32>
      %156 = tpu.transpose %155, [1, 0, 2] : vector<8x4x8xf32> -> vector<4x8x8xf32>
      %c0_85 = arith.constant 0 : index
      %c0_86 = arith.constant 0 : index
      %c0_87 = arith.constant 0 : index
      %157 = vector.load %arg20[%c0_85, %c0_86, %c0_87] : memref<4x8x8xf32, #tpu.memory_space<vmem>>, vector<4x8x8xf32>
      tpu.vector_store %arg20[%c0_85, %c0_86, %c0_87], %156 {strides = array<i32>} : memref<4x8x8xf32, #tpu.memory_space<vmem>>, vector<4x8x8xf32>,
      %158 = vector.shape_cast %154 : vector<8x32xf32> to vector<8x4x8xf32>
      %159 = tpu.transpose %158, [1, 0, 2] : vector<8x4x8xf32> -> vector<4x8x8xf32>
      %c0_88 = arith.constant 0 : index
      %c0_89 = arith.constant 0 : index
      %c0_90 = arith.constant 0 : index
      %160 = vector.load %arg21[%c0_88, %c0_89, %c0_90] : memref<4x8x8xf32, #tpu.memory_space<vmem>>, vector<4x8x8xf32>
      tpu.vector_store %arg21[%c0_88, %c0_89, %c0_90], %159 {strides = array<i32>} : memref<4x8x8xf32, #tpu.memory_space<vmem>>, vector<4x8x8xf32>,
    } else {
    }
    %c8_i32 = arith.constant 8 : i32
    %3 = arith.muli %arg1, %c8_i32 : i32
    %4 = tpu.assume_multiple %3, 8 : i32
    %c0 = arith.constant 0 : index
    %5 = arith.index_cast %4 : i32 to index
    %c0_1 = arith.constant 0 : index
    %6 = vector.load %arg2[%c0, %5, %c0_1] : memref<1x8x32xf32, #tpu.memory_space<vmem>>, vector<1x8x32xf32>
    %7 = vector.shape_cast %6 : vector<1x8x32xf32> to vector<8x32xf32>
    %c0_2 = arith.constant 0 : index
    %c0_3 = arith.constant 0 : index
    %c0_4 = arith.constant 0 : index
    %8 = vector.load %arg3[%c0_2, %c0_3, %c0_4] : memref<1x8x1xf32, #tpu.memory_space<vmem>>, vector<1x8x1xf32>
    %9 = vector.shape_cast %8 : vector<1x8x1xf32> to vector<8x1xf32>
    %c0_5 = arith.constant 0 : index
    %c0_6 = arith.constant 0 : index
    %c0_7 = arith.constant 0 : index
    %10 = vector.load %arg4[%c0_5, %c0_6, %c0_7] : memref<1x8x8xf32, #tpu.memory_space<vmem>>, vector<1x8x8xf32>
    %11 = vector.shape_cast %10 : vector<1x8x8xf32> to vector<8x8xf32>
    %cst = arith.constant 5.000000e-01 : f32
    %12 = vector.broadcast %cst : f32 to vector<8x8xf32>
    %13 = arith.cmpf ogt, %11, %12 : vector<8x8xf32>
    %cst_8 = arith.constant -1.000000e+09 : f32
    %cst_9 = arith.constant 0.000000e+00 : f32
    %14 = vector.broadcast %cst_8 : f32 to vector<8x8xf32>
    %15 = vector.broadcast %cst_9 : f32 to vector<8x8xf32>
    %16 = arith.select %13, %14, %15 : vector<8x8xi1>, vector<8x8xf32>
    %c0_10 = arith.constant 0 : index
    %c0_11 = arith.constant 0 : index
    %17 = vector.load %arg10[%c0_10, %c0_11] : memref<1x32xf32, #tpu.memory_space<vmem>>, vector<1x32xf32>
    %c0_12 = arith.constant 0 : index
    %c0_13 = arith.constant 0 : index
    %18 = vector.load %arg11[%c0_12, %c0_13] : memref<1x32xf32, #tpu.memory_space<vmem>>, vector<1x32xf32>
    %cst_14 = arith.constant dense<0.000000e+00> : vector<8xf32>
    %19 = vector.multi_reduction <add>, %7, %cst_14 [1] : vector<8x32xf32> to vector<8xf32>
    %20 = vector.shape_cast %19 : vector<8xf32> to vector<8x1xf32>
    %cst_15 = arith.constant 3.200000e+01 : f32
    %21 = vector.broadcast %cst_15 : f32 to vector<8x1xf32>
    %22 = arith.divf %20, %21 : vector<8x1xf32>
    %23 = vector.broadcast %22 : vector<8x1xf32> to vector<8x32xf32>
    %24 = arith.subf %7, %23 : vector<8x32xf32>
    %25 = arith.mulf %24, %24 : vector<8x32xf32>
    %cst_16 = arith.constant dense<0.000000e+00> : vector<8xf32>
    %26 = vector.multi_reduction <add>, %25, %cst_16 [1] : vector<8x32xf32> to vector<8xf32>
    %27 = vector.shape_cast %26 : vector<8xf32> to vector<8x1xf32>
    %cst_17 = arith.constant 3.200000e+01 : f32
    %28 = vector.broadcast %cst_17 : f32 to vector<8x1xf32>
    %29 = arith.divf %27, %28 : vector<8x1xf32>
    %30 = vector.broadcast %22 : vector<8x1xf32> to vector<8x32xf32>
    %31 = arith.subf %7, %30 : vector<8x32xf32>
    %cst_18 = arith.constant 9.99999997E-7 : f32
    %32 = vector.broadcast %cst_18 : f32 to vector<8x1xf32>
    %33 = arith.addf %29, %32 : vector<8x1xf32>
    %34 = math.rsqrt %33 : vector<8x1xf32>
    %35 = vector.broadcast %34 : vector<8x1xf32> to vector<8x32xf32>
    %36 = arith.mulf %31, %35 : vector<8x32xf32>
    %37 = vector.broadcast %17 : vector<1x32xf32> to vector<8x32xf32>
    %38 = arith.mulf %36, %37 : vector<8x32xf32>
    %39 = vector.broadcast %18 : vector<1x32xf32> to vector<8x32xf32>
    %40 = arith.addf %38, %39 : vector<8x32xf32>
    %c0_19 = arith.constant 0 : index
    %c0_20 = arith.constant 0 : index
    %41 = vector.load %arg5[%c0_19, %c0_20] : memref<32x32xf32, #tpu.memory_space<vmem>>, vector<32x32xf32>
    %cst_21 = arith.constant dense<0.000000e+00> : vector<8x32xf32>
    %42 = tpu.matmul %40, %41, %cst_21 {dimension_numbers = #tpu.dot_dimension_numbers<[1], [0], [0], [1], [0, 0, 1, 1], [], []>} : vector<8x32xf32>, vector<32x32xf32>, vector<8x32xf32> -> vector<8x32xf32>
    %cst_22 = arith.constant 0.353553385 : f32
    %43 = vector.broadcast %cst_22 : f32 to vector<8x32xf32>
    %44 = arith.mulf %42, %43 : vector<8x32xf32>
    %45 = vector.shape_cast %44 : vector<8x32xf32> to vector<8x4x8xf32>
    %46 = tpu.transpose %45, [1, 0, 2] : vector<8x4x8xf32> -> vector<4x8x8xf32>
    %c0_23 = arith.constant 0 : index
    %c0_24 = arith.constant 0 : index
    %c0_25 = arith.constant 0 : index
    %47 = vector.load %arg20[%c0_23, %c0_24, %c0_25] : memref<4x8x8xf32, #tpu.memory_space<vmem>>, vector<4x8x8xf32>
    "tpu.trace_start"() <{level = 10 : i32, message = "hqd,hkd->hqk"}> : () -> ()
    %cst_26 = arith.constant dense<0.000000e+00> : vector<4x8x8xf32>
    %48 = tpu.matmul %46, %47, %cst_26 {dimension_numbers = #tpu.dot_dimension_numbers<[2], [2], [1], [1], [0, 0, 0, 1, 1, 1], [0], [0]>} : vector<4x8x8xf32>, vector<4x8x8xf32>, vector<4x8x8xf32> -> vector<4x8x8xf32>
    "tpu.trace_stop"() : () -> ()
    %49 = vector.shape_cast %16 : vector<8x8xf32> to vector<1x8x8xf32>
    %50 = vector.broadcast %49 : vector<1x8x8xf32> to vector<4x8x8xf32>
    %51 = arith.addf %48, %50 : vector<4x8x8xf32>
    %cst_27 = arith.constant dense<0xFF800000> : vector<4x8xf32>
    %52 = vector.multi_reduction <maximumf>, %51, %cst_27 [2] : vector<4x8x8xf32> to vector<4x8xf32>
    %53 = vector.shape_cast %52 : vector<4x8xf32> to vector<4x8x1xf32>
    %54 = vector.broadcast %53 : vector<4x8x1xf32> to vector<4x8x8xf32>
    %55 = arith.subf %51, %54 : vector<4x8x8xf32>
    %56 = math.exp %55 : vector<4x8x8xf32>
    %cst_28 = arith.constant dense<0.000000e+00> : vector<4x8xf32>
    %57 = vector.multi_reduction <add>, %56, %cst_28 [2] : vector<4x8x8xf32> to vector<4x8xf32>
    %58 = vector.shape_cast %57 : vector<4x8xf32> to vector<4x8x1xf32>
    %59 = tpu.reciprocal %58 {approx = true} : vector<4x8x1xf32> -> vector<4x8x1xf32>
    %60 = vector.broadcast %59 : vector<4x8x1xf32> to vector<4x8x8xf32>
    %61 = arith.mulf %56, %60 : vector<4x8x8xf32>
    %c0_29 = arith.constant 0 : index
    %c0_30 = arith.constant 0 : index
    %c0_31 = arith.constant 0 : index
    %c0_32 = arith.constant 0 : index
    %62 = vector.load %arg19[%c0_29, %c0_30, %c0_31, %c0_32] : memref<1x4x8x8xf32, #tpu.memory_space<vmem>>, vector<1x4x8x8xf32>
    %63 = vector.shape_cast %62 : vector<1x4x8x8xf32> to vector<4x8x8xf32>
    %64 = vector.shape_cast %61 : vector<4x8x8xf32> to vector<1x4x8x8xf32>
    tpu.vector_store %arg19[%c0_29, %c0_30, %c0_31, %c0_32], %64 {strides = array<i32>} : memref<1x4x8x8xf32, #tpu.memory_space<vmem>>, vector<1x4x8x8xf32>,
    %c0_33 = arith.constant 0 : index
    %c0_34 = arith.constant 0 : index
    %c0_35 = arith.constant 0 : index
    %65 = vector.load %arg21[%c0_33, %c0_34, %c0_35] : memref<4x8x8xf32, #tpu.memory_space<vmem>>, vector<4x8x8xf32>
    "tpu.trace_start"() <{level = 10 : i32, message = "hqk,hkd->hqd"}> : () -> ()
    %cst_36 = arith.constant dense<0.000000e+00> : vector<4x8x8xf32>
    %66 = tpu.matmul %61, %65, %cst_36 {dimension_numbers = #tpu.dot_dimension_numbers<[2], [1], [1], [2], [0, 0, 0, 1, 1, 2], [0], [0]>} : vector<4x8x8xf32>, vector<4x8x8xf32>, vector<4x8x8xf32> -> vector<4x8x8xf32>
    "tpu.trace_stop"() : () -> ()
    %67 = tpu.transpose %66, [1, 0, 2] : vector<4x8x8xf32> -> vector<8x4x8xf32>
    %68 = vector.shape_cast %67 : vector<8x4x8xf32> to vector<8x32xf32>
    %c0_37 = arith.constant 0 : index
    %c0_38 = arith.constant 0 : index
    %69 = vector.load %arg8[%c0_37, %c0_38] : memref<32x32xf32, #tpu.memory_space<vmem>>, vector<32x32xf32>
    %cst_39 = arith.constant dense<0.000000e+00> : vector<8x32xf32>
    %70 = tpu.matmul %68, %69, %cst_39 {dimension_numbers = #tpu.dot_dimension_numbers<[1], [0], [0], [1], [0, 0, 1, 1], [], []>} : vector<8x32xf32>, vector<32x32xf32>, vector<8x32xf32> -> vector<8x32xf32>
    %c0_40 = arith.constant 0 : index
    %c0_41 = arith.constant 0 : index
    %71 = vector.load %arg9[%c0_40, %c0_41] : memref<1x32xf32, #tpu.memory_space<vmem>>, vector<1x32xf32>
    %72 = vector.broadcast %71 : vector<1x32xf32> to vector<8x32xf32>
    %73 = arith.addf %70, %72 : vector<8x32xf32>
    %74 = arith.addf %73, %7 : vector<8x32xf32>
    %75 = vector.broadcast %9 : vector<8x1xf32> to vector<8x32xf32>
    %76 = arith.mulf %74, %75 : vector<8x32xf32>
    %c0_42 = arith.constant 0 : index
    %c0_43 = arith.constant 0 : index
    %77 = vector.load %arg16[%c0_42, %c0_43] : memref<1x32xf32, #tpu.memory_space<vmem>>, vector<1x32xf32>
    %c0_44 = arith.constant 0 : index
    %c0_45 = arith.constant 0 : index
    %78 = vector.load %arg17[%c0_44, %c0_45] : memref<1x32xf32, #tpu.memory_space<vmem>>, vector<1x32xf32>
    %cst_46 = arith.constant dense<0.000000e+00> : vector<8xf32>
    %79 = vector.multi_reduction <add>, %76, %cst_46 [1] : vector<8x32xf32> to vector<8xf32>
    %80 = vector.shape_cast %79 : vector<8xf32> to vector<8x1xf32>
    %cst_47 = arith.constant 3.200000e+01 : f32
    %81 = vector.broadcast %cst_47 : f32 to vector<8x1xf32>
    %82 = arith.divf %80, %81 : vector<8x1xf32>
    %83 = vector.broadcast %82 : vector<8x1xf32> to vector<8x32xf32>
    %84 = arith.subf %76, %83 : vector<8x32xf32>
    %85 = arith.mulf %84, %84 : vector<8x32xf32>
    %cst_48 = arith.constant dense<0.000000e+00> : vector<8xf32>
    %86 = vector.multi_reduction <add>, %85, %cst_48 [1] : vector<8x32xf32> to vector<8xf32>
    %87 = vector.shape_cast %86 : vector<8xf32> to vector<8x1xf32>
    %cst_49 = arith.constant 3.200000e+01 : f32
    %88 = vector.broadcast %cst_49 : f32 to vector<8x1xf32>
    %89 = arith.divf %87, %88 : vector<8x1xf32>
    %90 = vector.broadcast %82 : vector<8x1xf32> to vector<8x32xf32>
    %91 = arith.subf %76, %90 : vector<8x32xf32>
    %cst_50 = arith.constant 9.99999997E-7 : f32
    %92 = vector.broadcast %cst_50 : f32 to vector<8x1xf32>
    %93 = arith.addf %89, %92 : vector<8x1xf32>
    %94 = math.rsqrt %93 : vector<8x1xf32>
    %95 = vector.broadcast %94 : vector<8x1xf32> to vector<8x32xf32>
    %96 = arith.mulf %91, %95 : vector<8x32xf32>
    %97 = vector.broadcast %77 : vector<1x32xf32> to vector<8x32xf32>
    %98 = arith.mulf %96, %97 : vector<8x32xf32>
    %99 = vector.broadcast %78 : vector<1x32xf32> to vector<8x32xf32>
    %100 = arith.addf %98, %99 : vector<8x32xf32>
    %c0_51 = arith.constant 0 : index
    %c0_52 = arith.constant 0 : index
    %101 = vector.load %arg12[%c0_51, %c0_52] : memref<32x64xf32, #tpu.memory_space<vmem>>, vector<32x64xf32>
    %cst_53 = arith.constant dense<0.000000e+00> : vector<8x64xf32>
    %102 = tpu.matmul %100, %101, %cst_53 {dimension_numbers = #tpu.dot_dimension_numbers<[1], [0], [0], [1], [0, 0, 1, 1], [], []>} : vector<8x32xf32>, vector<32x64xf32>, vector<8x64xf32> -> vector<8x64xf32>
    %c0_54 = arith.constant 0 : index
    %c0_55 = arith.constant 0 : index
    %103 = vector.load %arg13[%c0_54, %c0_55] : memref<1x64xf32, #tpu.memory_space<vmem>>, vector<1x64xf32>
    %104 = vector.broadcast %103 : vector<1x64xf32> to vector<8x64xf32>
    %105 = arith.addf %102, %104 : vector<8x64xf32>
    %cst_56 = arith.constant 5.000000e-01 : f32
    %106 = vector.broadcast %cst_56 : f32 to vector<8x64xf32>
    %107 = arith.mulf %106, %105 : vector<8x64xf32>
    %cst_57 = arith.constant 0.707106769 : f32
    %108 = vector.broadcast %cst_57 : f32 to vector<8x64xf32>
    %109 = arith.mulf %105, %108 : vector<8x64xf32>
    %110 = math.erf %109 : vector<8x64xf32>
    %cst_58 = arith.constant 1.000000e+00 : f32
    %111 = vector.broadcast %cst_58 : f32 to vector<8x64xf32>
    %112 = arith.addf %111, %110 : vector<8x64xf32>
    %113 = arith.mulf %107, %112 : vector<8x64xf32>
    %c0_59 = arith.constant 0 : index
    %c0_60 = arith.constant 0 : index
    %114 = vector.load %arg14[%c0_59, %c0_60] : memref<64x32xf32, #tpu.memory_space<vmem>>, vector<64x32xf32>
    %cst_61 = arith.constant dense<0.000000e+00> : vector<8x32xf32>
    %115 = tpu.matmul %113, %114, %cst_61 {dimension_numbers = #tpu.dot_dimension_numbers<[1], [0], [0], [1], [0, 0, 1, 1], [], []>} : vector<8x64xf32>, vector<64x32xf32>, vector<8x32xf32> -> vector<8x32xf32>
    %c0_62 = arith.constant 0 : index
    %c0_63 = arith.constant 0 : index
    %116 = vector.load %arg15[%c0_62, %c0_63] : memref<1x32xf32, #tpu.memory_space<vmem>>, vector<1x32xf32>
    %117 = vector.broadcast %116 : vector<1x32xf32> to vector<8x32xf32>
    %118 = arith.addf %115, %117 : vector<8x32xf32>
    %119 = arith.addf %118, %76 : vector<8x32xf32>
    %120 = vector.broadcast %9 : vector<8x1xf32> to vector<8x32xf32>
    %121 = arith.mulf %119, %120 : vector<8x32xf32>
    %c0_64 = arith.constant 0 : index
    %c0_65 = arith.constant 0 : index
    %c0_66 = arith.constant 0 : index
    %122 = vector.load %arg18[%c0_64, %c0_65, %c0_66] : memref<1x8x32xf32, #tpu.memory_space<vmem>>, vector<1x8x32xf32>
    %123 = vector.shape_cast %122 : vector<1x8x32xf32> to vector<8x32xf32>
    %124 = vector.shape_cast %121 : vector<8x32xf32> to vector<1x8x32xf32>
    tpu.vector_store %arg18[%c0_64, %c0_65, %c0_66], %124 {strides = array<i32>} : memref<1x8x32xf32, #tpu.memory_space<vmem>>, vector<1x8x32xf32>,
    return
  }
  func.func @transform_0(%arg0: i32, %arg1: i32) -> (i32, i32, i32) {
    %c0_i32 = arith.constant 0 : i32
    %c0_i32_0 = arith.constant 0 : i32
    %c0_i32_1 = arith.constant 0 : i32
    return %arg0, %c0_i32, %c0_i32_0 : i32, i32, i32
  }
  func.func @transform_1(%arg0: i32, %arg1: i32) -> (i32, i32, i32) {
    %c0_i32 = arith.constant 0 : i32
    %c0_i32_0 = arith.constant 0 : i32
    return %arg0, %arg1, %c0_i32 : i32, i32, i32
  }
  func.func @transform_2(%arg0: i32, %arg1: i32) -> (i32, i32, i32) {
    %c0_i32 = arith.constant 0 : i32
    %c0_i32_0 = arith.constant 0 : i32
    return %arg0, %arg1, %c0_i32 : i32, i32, i32
  }
  func.func @transform_3(%arg0: i32, %arg1: i32) -> (i32, i32) {
    %c0_i32 = arith.constant 0 : i32
    %c0_i32_0 = arith.constant 0 : i32
    %c0_i32_1 = arith.constant 0 : i32
    return %c0_i32, %c0_i32_0 : i32, i32
  }
  func.func @transform_4(%arg0: i32, %arg1: i32) -> (i32, i32) {
    %c0_i32 = arith.constant 0 : i32
    %c0_i32_0 = arith.constant 0 : i32
    %c0_i32_1 = arith.constant 0 : i32
    return %c0_i32, %c0_i32_0 : i32, i32
  }
  func.func @transform_5(%arg0: i32, %arg1: i32) -> (i32, i32) {
    %c0_i32 = arith.constant 0 : i32
    %c0_i32_0 = arith.constant 0 : i32
    %c0_i32_1 = arith.constant 0 : i32
    return %c0_i32, %c0_i32_0 : i32, i32
  }
  func.func @transform_6(%arg0: i32, %arg1: i32) -> (i32, i32) {
    %c0_i32 = arith.constant 0 : i32
    %c0_i32_0 = arith.constant 0 : i32
    %c0_i32_1 = arith.constant 0 : i32
    return %c0_i32, %c0_i32_0 : i32, i32
  }
  func.func @transform_7(%arg0: i32, %arg1: i32) -> (i32, i32) {
    %c0_i32 = arith.constant 0 : i32
    %c0_i32_0 = arith.constant 0 : i32
    %c0_i32_1 = arith.constant 0 : i32
    return %c0_i32, %c0_i32_0 : i32, i32
  }
  func.func @transform_8(%arg0: i32, %arg1: i32) -> (i32, i32) {
    %c0_i32 = arith.constant 0 : i32
    %c0_i32_0 = arith.constant 0 : i32
    %c0_i32_1 = arith.constant 0 : i32
    return %c0_i32, %c0_i32_0 : i32, i32
  }
  func.func @transform_9(%arg0: i32, %arg1: i32) -> (i32, i32) {
    %c0_i32 = arith.constant 0 : i32
    %c0_i32_0 = arith.constant 0 : i32
    %c0_i32_1 = arith.constant 0 : i32
    return %c0_i32, %c0_i32_0 : i32, i32
  }
  func.func @transform_10(%arg0: i32, %arg1: i32) -> (i32, i32) {
    %c0_i32 = arith.constant 0 : i32
    %c0_i32_0 = arith.constant 0 : i32
    %c0_i32_1 = arith.constant 0 : i32
    return %c0_i32, %c0_i32_0 : i32, i32
  }
  func.func @transform_11(%arg0: i32, %arg1: i32) -> (i32, i32) {
    %c0_i32 = arith.constant 0 : i32
    %c0_i32_0 = arith.constant 0 : i32
    %c0_i32_1 = arith.constant 0 : i32
    return %c0_i32, %c0_i32_0 : i32, i32
  }
  func.func @transform_12(%arg0: i32, %arg1: i32) -> (i32, i32) {
    %c0_i32 = arith.constant 0 : i32
    %c0_i32_0 = arith.constant 0 : i32
    %c0_i32_1 = arith.constant 0 : i32
    return %c0_i32, %c0_i32_0 : i32, i32
  }
  func.func @transform_13(%arg0: i32, %arg1: i32) -> (i32, i32) {
    %c0_i32 = arith.constant 0 : i32
    %c0_i32_0 = arith.constant 0 : i32
    %c0_i32_1 = arith.constant 0 : i32
    return %c0_i32, %c0_i32_0 : i32, i32
  }
  func.func @transform_14(%arg0: i32, %arg1: i32) -> (i32, i32) {
    %c0_i32 = arith.constant 0 : i32
    %c0_i32_0 = arith.constant 0 : i32
    %c0_i32_1 = arith.constant 0 : i32
    return %c0_i32, %c0_i32_0 : i32, i32
  }
  func.func @transform_15(%arg0: i32, %arg1: i32) -> (i32, i32) {
    %c0_i32 = arith.constant 0 : i32
    %c0_i32_0 = arith.constant 0 : i32
    %c0_i32_1 = arith.constant 0 : i32
    return %c0_i32, %c0_i32_0 : i32, i32
  }
  func.func @transform_16(%arg0: i32, %arg1: i32) -> (i32, i32, i32) {
    %c0_i32 = arith.constant 0 : i32
    %c0_i32_0 = arith.constant 0 : i32
    return %arg0, %arg1, %c0_i32 : i32, i32, i32
  }
  func.func @transform_17(%arg0: i32, %arg1: i32) -> (i32, i32, i32, i32) {
    %c0_i32 = arith.constant 0 : i32
    %c0_i32_0 = arith.constant 0 : i32
    %c0_i32_1 = arith.constant 0 : i32
    return %arg0, %c0_i32, %arg1, %c0_i32_0 : i32, i32, i32, i32
  }
}

module attributes {stable_mosaic.version = 11 : i64} {
  func.func @encoder_layer_kernel(%arg0: i32, %arg1: i32, %arg2: memref<1x8x32xf32, #tpu.memory_space<vmem>>, %arg3: memref<1x8x1xf32, #tpu.memory_space<vmem>>, %arg4: memref<1x8x8xf32, #tpu.memory_space<vmem>>, %arg5: memref<32x32xf32, #tpu.memory_space<vmem>>, %arg6: memref<32x32xf32, #tpu.memory_space<vmem>>, %arg7: memref<32x32xf32, #tpu.memory_space<vmem>>, %arg8: memref<32x32xf32, #tpu.memory_space<vmem>>, %arg9: memref<1x32xf32, #tpu.memory_space<vmem>>, %arg10: memref<1x32xf32, #tpu.memory_space<vmem>>, %arg11: memref<1x32xf32, #tpu.memory_space<vmem>>, %arg12: memref<32x64xf32, #tpu.memory_space<vmem>>, %arg13: memref<1x64xf32, #tpu.memory_space<vmem>>, %arg14: memref<64x32xf32, #tpu.memory_space<vmem>>, %arg15: memref<1x32xf32, #tpu.memory_space<vmem>>, %arg16: memref<1x32xf32, #tpu.memory_space<vmem>>, %arg17: memref<1x32xf32, #tpu.memory_space<vmem>>, %arg18: memref<1x8x32xf32, #tpu.memory_space<vmem>>, %arg19: memref<1x4x8x8xf32, #tpu.memory_space<vmem>>, %arg20: memref<4x8x8xf32, #tpu.memory_space<vmem>>, %arg21: memref<4x8x8xf32, #tpu.memory_space<vmem>>) attributes {dimension_semantics = [#tpu.dimension_semantics<parallel>, #tpu.dimension_semantics<arbitrary>], iteration_bounds = array<i64: 2, 1>, scalar_prefetch = 0 : i64, scratch_operands = 2 : i64, tpu.core_type = #tpu.core_type<tc>, window_params = [{transform_indices = @transform_0, window_bounds = array<i64: 1, 8, 32>}, {transform_indices = @transform_1, window_bounds = array<i64: 1, 8, 1>}, {transform_indices = @transform_2, window_bounds = array<i64: 1, 8, 8>}, {pipeline_mode = #tpu.pipeline_mode<synchronous>, transform_indices = @transform_3, window_bounds = array<i64: 32, 32>}, {pipeline_mode = #tpu.pipeline_mode<synchronous>, transform_indices = @transform_4, window_bounds = array<i64: 32, 32>}, {pipeline_mode = #tpu.pipeline_mode<synchronous>, transform_indices = @transform_5, window_bounds = array<i64: 32, 32>}, {pipeline_mode = #tpu.pipeline_mode<synchronous>, transform_indices = @transform_6, window_bounds = array<i64: 32, 32>}, {pipeline_mode = #tpu.pipeline_mode<synchronous>, transform_indices = @transform_7, window_bounds = array<i64: 1, 32>}, {pipeline_mode = #tpu.pipeline_mode<synchronous>, transform_indices = @transform_8, window_bounds = array<i64: 1, 32>}, {pipeline_mode = #tpu.pipeline_mode<synchronous>, transform_indices = @transform_9, window_bounds = array<i64: 1, 32>}, {pipeline_mode = #tpu.pipeline_mode<synchronous>, transform_indices = @transform_10, window_bounds = array<i64: 32, 64>}, {pipeline_mode = #tpu.pipeline_mode<synchronous>, transform_indices = @transform_11, window_bounds = array<i64: 1, 64>}, {pipeline_mode = #tpu.pipeline_mode<synchronous>, transform_indices = @transform_12, window_bounds = array<i64: 64, 32>}, {pipeline_mode = #tpu.pipeline_mode<synchronous>, transform_indices = @transform_13, window_bounds = array<i64: 1, 32>}, {pipeline_mode = #tpu.pipeline_mode<synchronous>, transform_indices = @transform_14, window_bounds = array<i64: 1, 32>}, {pipeline_mode = #tpu.pipeline_mode<synchronous>, transform_indices = @transform_15, window_bounds = array<i64: 1, 32>}, {transform_indices = @transform_16, window_bounds = array<i64: 1, 8, 32>}, {transform_indices = @transform_17, window_bounds = array<i64: 1, 4, 8, 8>}]} {
    %c0_i32 = arith.constant 0 : i32
    %0 = arith.cmpi eq, %arg1, %c0_i32 : i32
    %1 = arith.extui %0 : i1 to i32
    %c0_i32_0 = arith.constant 0 : i32
    %2 = arith.cmpi ne, %1, %c0_i32_0 : i32
    scf.if %2 {
      %c0_67 = arith.constant 0 : index
      %c0_68 = arith.constant 0 : index
      %c0_69 = arith.constant 0 : index
      %125 = vector.load %arg2[%c0_67, %c0_68, %c0_69] : memref<1x8x32xf32, #tpu.memory_space<vmem>>, vector<1x8x32xf32>
      %126 = vector.shape_cast %125 : vector<1x8x32xf32> to vector<8x32xf32>
      %c0_70 = arith.constant 0 : index
      %c0_71 = arith.constant 0 : index
      %127 = vector.load %arg10[%c0_70, %c0_71] : memref<1x32xf32, #tpu.memory_space<vmem>>, vector<1x32xf32>
      %c0_72 = arith.constant 0 : index
      %c0_73 = arith.constant 0 : index
      %128 = vector.load %arg11[%c0_72, %c0_73] : memref<1x32xf32, #tpu.memory_space<vmem>>, vector<1x32xf32>
      %cst_74 = arith.constant dense<0.000000e+00> : vector<8xf32>
      %129 = vector.multi_reduction <add>, %126, %cst_74 [1] : vector<8x32xf32> to vector<8xf32>
      %130 = vector.shape_cast %129 : vector<8xf32> to vector<8x1xf32>
      %cst_75 = arith.constant 3.200000e+01 : f32
      %131 = vector.broadcast %cst_75 : f32 to vector<8x1xf32>
      %132 = arith.divf %130, %131 : vector<8x1xf32>
      %133 = vector.broadcast %132 : vector<8x1xf32> to vector<8x32xf32>
      %134 = arith.subf %126, %133 : vector<8x32xf32>
      %135 = arith.mulf %134, %134 : vector<8x32xf32>
      %cst_76 = arith.constant dense<0.000000e+00> : vector<8xf32>
      %136 = vector.multi_reduction <add>, %135, %cst_76 [1] : vector<8x32xf32> to vector<8xf32>
      %137 = vector.shape_cast %136 : vector<8xf32> to vector<8x1xf32>
      %cst_77 = arith.constant 3.200000e+01 : f32
      %138 = vector.broadcast %cst_77 : f32 to vector<8x1xf32>
      %139 = arith.divf %137, %138 : vector<8x1xf32>
      %140 = vector.broadcast %132 : vector<8x1xf32> to vector<8x32xf32>
      %141 = arith.subf %126, %140 : vector<8x32xf32>
      %cst_78 = arith.constant 9.99999997E-7 : f32
      %142 = vector.broadcast %cst_78 : f32 to vector<8x1xf32>
      %143 = arith.addf %139, %142 : vector<8x1xf32>
      %144 = math.rsqrt %143 : vector<8x1xf32>
      %145 = vector.broadcast %144 : vector<8x1xf32> to vector<8x32xf32>
      %146 = arith.mulf %141, %145 : vector<8x32xf32>
      %147 = vector.broadcast %127 : vector<1x32xf32> to vector<8x32xf32>
      %148 = arith.mulf %146, %147 : vector<8x32xf32>
      %149 = vector.broadcast %128 : vector<1x32xf32> to vector<8x32xf32>
      %150 = arith.addf %148, %149 : vector<8x32xf32>
      %c0_79 = arith.constant 0 : index
      %c0_80 = arith.constant 0 : index
      %151 = vector.load %arg6[%c0_79, %c0_80] : memref<32x32xf32, #tpu.memory_space<vmem>>, vector<32x32xf32>
      %cst_81 = arith.constant dense<0.000000e+00> : vector<8x32xf32>
      %152 = tpu.matmul %150, %151, %cst_81 {dimension_numbers = #tpu.dot_dimension_numbers<[1], [0], [0], [1], [0, 0, 1, 1], [], []>} : vector<8x32xf32>, vector<32x32xf32>, vector<8x32xf32> -> vector<8x32xf32>
      %c0_82 = arith.constant 0 : index
      %c0_83 = arith.constant 0 : index
      %153 = vector.load %arg7[%c0_82, %c0_83] : memref<32x32xf32, #tpu.memory_space<vmem>>, vector<32x32xf32>
      %cst_84 = arith.constant dense<0.000000e+00> : vector<8x32xf32>
      %154 = tpu.matmul %150, %153, %cst_84 {dimension_numbers = #tpu.dot_dimension_numbers<[1], [0], [0], [1], [0, 0, 1, 1], [], []>} : vector<8x32xf32>, vector<32x32xf32>, vector<8x32xf32> -> vector<8x32xf32>
      %155 = vector.shape_cast %152 : vector<8x32xf32> to vector<8x4x8xf32>
      %156 = tpu.transpose %155, [1, 0, 2] : vector<8x4x8xf32> -> vector<4x8x8xf32>
      %c0_85 = arith.constant 0 : index
      %c0_86 = arith.constant 0 : index
      %c0_87 = arith.constant 0 : index
      %157 = vector.load %arg20[%c0_85, %c0_86, %c0_87] : memref<4x8x8xf32, #tpu.memory_space<vmem>>, vector<4x8x8xf32>
      tpu.vector_store %arg20[%c0_85, %c0_86, %c0_87], %156 {strides = array<i32>} : memref<4x8x8xf32, #tpu.memory_space<vmem>>, vector<4x8x8xf32>,
      %158 = vector.shape_cast %154 : vector<8x32xf32> to vector<8x4x8xf32>
      %159 = tpu.transpose %158, [1, 0, 2] : vector<8x4x8xf32> -> vector<4x8x8xf32>
      %c0_88 = arith.constant 0 : index
      %c0_89 = arith.constant 0 : index
      %c0_90 = arith.constant 0 : index
      %160 = vector.load %arg21[%c0_88, %c0_89, %c0_90] : memref<4x8x8xf32, #tpu.memory_space<vmem>>, vector<4x8x8xf32>
      tpu.vector_store %arg21[%c0_88, %c0_89, %c0_90], %159 {strides = array<i32>} : memref<4x8x8xf32, #tpu.memory_space<vmem>>, vector<4x8x8xf32>,
    } else {
    }
    %c8_i32 = arith.constant 8 : i32
    %3 = arith.muli %arg1, %c8_i32 : i32
    %4 = tpu.assume_multiple %3, 8 : i32
    %c0 = arith.constant 0 : index
    %5 = arith.index_cast %4 : i32 to index
    %c0_1 = arith.constant 0 : index
    %6 = vector.load %arg2[%c0, %5, %c0_1] : memref<1x8x32xf32, #tpu.memory_space<vmem>>, vector<1x8x32xf32>
    %7 = vector.shape_cast %6 : vector<1x8x32xf32> to vector<8x32xf32>
    %c0_2 = arith.constant 0 : index
    %c0_3 = arith.constant 0 : index
    %c0_4 = arith.constant 0 : index
    %8 = vector.load %arg3[%c0_2, %c0_3, %c0_4] : memref<1x8x1xf32, #tpu.memory_space<vmem>>, vector<1x8x1xf32>
    %9 = vector.shape_cast %8 : vector<1x8x1xf32> to vector<8x1xf32>
    %c0_5 = arith.constant 0 : index
    %c0_6 = arith.constant 0 : index
    %c0_7 = arith.constant 0 : index
    %10 = vector.load %arg4[%c0_5, %c0_6, %c0_7] : memref<1x8x8xf32, #tpu.memory_space<vmem>>, vector<1x8x8xf32>
    %11 = vector.shape_cast %10 : vector<1x8x8xf32> to vector<8x8xf32>
    %cst = arith.constant 5.000000e-01 : f32
    %12 = vector.broadcast %cst : f32 to vector<8x8xf32>
    %13 = arith.cmpf ogt, %11, %12 : vector<8x8xf32>
    %cst_8 = arith.constant -1.000000e+09 : f32
    %cst_9 = arith.constant 0.000000e+00 : f32
    %14 = vector.broadcast %cst_8 : f32 to vector<8x8xf32>
    %15 = vector.broadcast %cst_9 : f32 to vector<8x8xf32>
    %16 = arith.select %13, %14, %15 : vector<8x8xi1>, vector<8x8xf32>
    %c0_10 = arith.constant 0 : index
    %c0_11 = arith.constant 0 : index
    %17 = vector.load %arg10[%c0_10, %c0_11] : memref<1x32xf32, #tpu.memory_space<vmem>>, vector<1x32xf32>
    %c0_12 = arith.constant 0 : index
    %c0_13 = arith.constant 0 : index
    %18 = vector.load %arg11[%c0_12, %c0_13] : memref<1x32xf32, #tpu.memory_space<vmem>>, vector<1x32xf32>
    %cst_14 = arith.constant dense<0.000000e+00> : vector<8xf32>
    %19 = vector.multi_reduction <add>, %7, %cst_14 [1] : vector<8x32xf32> to vector<8xf32>
    %20 = vector.shape_cast %19 : vector<8xf32> to vector<8x1xf32>
    %cst_15 = arith.constant 3.200000e+01 : f32
    %21 = vector.broadcast %cst_15 : f32 to vector<8x1xf32>
    %22 = arith.divf %20, %21 : vector<8x1xf32>
    %23 = vector.broadcast %22 : vector<8x1xf32> to vector<8x32xf32>
    %24 = arith.subf %7, %23 : vector<8x32xf32>
    %25 = arith.mulf %24, %24 : vector<8x32xf32>
    %cst_16 = arith.constant dense<0.000000e+00> : vector<8xf32>
    %26 = vector.multi_reduction <add>, %25, %cst_16 [1] : vector<8x32xf32> to vector<8xf32>
    %27 = vector.shape_cast %26 : vector<8xf32> to vector<8x1xf32>
    %cst_17 = arith.constant 3.200000e+01 : f32
    %28 = vector.broadcast %cst_17 : f32 to vector<8x1xf32>
    %29 = arith.divf %27, %28 : vector<8x1xf32>
    %30 = vector.broadcast %22 : vector<8x1xf32> to vector<8x32xf32>
    %31 = arith.subf %7, %30 : vector<8x32xf32>
    %cst_18 = arith.constant 9.99999997E-7 : f32
    %32 = vector.broadcast %cst_18 : f32 to vector<8x1xf32>
    %33 = arith.addf %29, %32 : vector<8x1xf32>
    %34 = math.rsqrt %33 : vector<8x1xf32>
    %35 = vector.broadcast %34 : vector<8x1xf32> to vector<8x32xf32>
    %36 = arith.mulf %31, %35 : vector<8x32xf32>
    %37 = vector.broadcast %17 : vector<1x32xf32> to vector<8x32xf32>
    %38 = arith.mulf %36, %37 : vector<8x32xf32>
    %39 = vector.broadcast %18 : vector<1x32xf32> to vector<8x32xf32>
    %40 = arith.addf %38, %39 : vector<8x32xf32>
    %c0_19 = arith.constant 0 : index
    %c0_20 = arith.constant 0 : index
    %41 = vector.load %arg5[%c0_19, %c0_20] : memref<32x32xf32, #tpu.memory_space<vmem>>, vector<32x32xf32>
    %cst_21 = arith.constant dense<0.000000e+00> : vector<8x32xf32>
    %42 = tpu.matmul %40, %41, %cst_21 {dimension_numbers = #tpu.dot_dimension_numbers<[1], [0], [0], [1], [0, 0, 1, 1], [], []>} : vector<8x32xf32>, vector<32x32xf32>, vector<8x32xf32> -> vector<8x32xf32>
    %cst_22 = arith.constant 0.353553385 : f32
    %43 = vector.broadcast %cst_22 : f32 to vector<8x32xf32>
    %44 = arith.mulf %42, %43 : vector<8x32xf32>
    %45 = vector.shape_cast %44 : vector<8x32xf32> to vector<8x4x8xf32>
    %46 = tpu.transpose %45, [1, 0, 2] : vector<8x4x8xf32> -> vector<4x8x8xf32>
    %c0_23 = arith.constant 0 : index
    %c0_24 = arith.constant 0 : index
    %c0_25 = arith.constant 0 : index
    %47 = vector.load %arg20[%c0_23, %c0_24, %c0_25] : memref<4x8x8xf32, #tpu.memory_space<vmem>>, vector<4x8x8xf32>
    "tpu.trace_start"() <{level = 10 : i32, message = "hqd,hkd->hqk"}> : () -> ()
    %cst_26 = arith.constant dense<0.000000e+00> : vector<4x8x8xf32>
    %48 = tpu.matmul %46, %47, %cst_26 {dimension_numbers = #tpu.dot_dimension_numbers<[2], [2], [1], [1], [0, 0, 0, 1, 1, 1], [0], [0]>} : vector<4x8x8xf32>, vector<4x8x8xf32>, vector<4x8x8xf32> -> vector<4x8x8xf32>
    "tpu.trace_stop"() : () -> ()
    %49 = vector.shape_cast %16 : vector<8x8xf32> to vector<1x8x8xf32>
    %50 = vector.broadcast %49 : vector<1x8x8xf32> to vector<4x8x8xf32>
    %51 = arith.addf %48, %50 : vector<4x8x8xf32>
    %cst_27 = arith.constant dense<0xFF800000> : vector<4x8xf32>
    %52 = vector.multi_reduction <maximumf>, %51, %cst_27 [2] : vector<4x8x8xf32> to vector<4x8xf32>
    %53 = vector.shape_cast %52 : vector<4x8xf32> to vector<4x8x1xf32>
    %54 = vector.broadcast %53 : vector<4x8x1xf32> to vector<4x8x8xf32>
    %55 = arith.subf %51, %54 : vector<4x8x8xf32>
    %56 = math.exp %55 : vector<4x8x8xf32>
    %cst_28 = arith.constant dense<0.000000e+00> : vector<4x8xf32>
    %57 = vector.multi_reduction <add>, %56, %cst_28 [2] : vector<4x8x8xf32> to vector<4x8xf32>
    %58 = vector.shape_cast %57 : vector<4x8xf32> to vector<4x8x1xf32>
    %59 = tpu.reciprocal %58 {approx = true} : vector<4x8x1xf32> -> vector<4x8x1xf32>
    %60 = vector.broadcast %59 : vector<4x8x1xf32> to vector<4x8x8xf32>
    %61 = arith.mulf %56, %60 : vector<4x8x8xf32>
    %c0_29 = arith.constant 0 : index
    %c0_30 = arith.constant 0 : index
    %c0_31 = arith.constant 0 : index
    %c0_32 = arith.constant 0 : index
    %62 = vector.load %arg19[%c0_29, %c0_30, %c0_31, %c0_32] : memref<1x4x8x8xf32, #tpu.memory_space<vmem>>, vector<1x4x8x8xf32>
    %63 = vector.shape_cast %62 : vector<1x4x8x8xf32> to vector<4x8x8xf32>
    %64 = vector.shape_cast %61 : vector<4x8x8xf32> to vector<1x4x8x8xf32>
    tpu.vector_store %arg19[%c0_29, %c0_30, %c0_31, %c0_32], %64 {strides = array<i32>} : memref<1x4x8x8xf32, #tpu.memory_space<vmem>>, vector<1x4x8x8xf32>,
    %c0_33 = arith.constant 0 : index
    %c0_34 = arith.constant 0 : index
    %c0_35 = arith.constant 0 : index
    %65 = vector.load %arg21[%c0_33, %c0_34, %c0_35] : memref<4x8x8xf32, #tpu.memory_space<vmem>>, vector<4x8x8xf32>
    "tpu.trace_start"() <{level = 10 : i32, message = "hqk,hkd->hqd"}> : () -> ()
    %cst_36 = arith.constant dense<0.000000e+00> : vector<4x8x8xf32>
    %66 = tpu.matmul %61, %65, %cst_36 {dimension_numbers = #tpu.dot_dimension_numbers<[2], [1], [1], [2], [0, 0, 0, 1, 1, 2], [0], [0]>} : vector<4x8x8xf32>, vector<4x8x8xf32>, vector<4x8x8xf32> -> vector<4x8x8xf32>
    "tpu.trace_stop"() : () -> ()
    %67 = tpu.transpose %66, [1, 0, 2] : vector<4x8x8xf32> -> vector<8x4x8xf32>
    %68 = vector.shape_cast %67 : vector<8x4x8xf32> to vector<8x32xf32>
    %c0_37 = arith.constant 0 : index
    %c0_38 = arith.constant 0 : index
    %69 = vector.load %arg8[%c0_37, %c0_38] : memref<32x32xf32, #tpu.memory_space<vmem>>, vector<32x32xf32>
    %cst_39 = arith.constant dense<0.000000e+00> : vector<8x32xf32>
    %70 = tpu.matmul %68, %69, %cst_39 {dimension_numbers = #tpu.dot_dimension_numbers<[1], [0], [0], [1], [0, 0, 1, 1], [], []>} : vector<8x32xf32>, vector<32x32xf32>, vector<8x32xf32> -> vector<8x32xf32>
    %c0_40 = arith.constant 0 : index
    %c0_41 = arith.constant 0 : index
    %71 = vector.load %arg9[%c0_40, %c0_41] : memref<1x32xf32, #tpu.memory_space<vmem>>, vector<1x32xf32>
    %72 = vector.broadcast %71 : vector<1x32xf32> to vector<8x32xf32>
    %73 = arith.addf %70, %72 : vector<8x32xf32>
    %74 = arith.addf %73, %7 : vector<8x32xf32>
    %75 = vector.broadcast %9 : vector<8x1xf32> to vector<8x32xf32>
    %76 = arith.mulf %74, %75 : vector<8x32xf32>
    %c0_42 = arith.constant 0 : index
    %c0_43 = arith.constant 0 : index
    %77 = vector.load %arg16[%c0_42, %c0_43] : memref<1x32xf32, #tpu.memory_space<vmem>>, vector<1x32xf32>
    %c0_44 = arith.constant 0 : index
    %c0_45 = arith.constant 0 : index
    %78 = vector.load %arg17[%c0_44, %c0_45] : memref<1x32xf32, #tpu.memory_space<vmem>>, vector<1x32xf32>
    %cst_46 = arith.constant dense<0.000000e+00> : vector<8xf32>
    %79 = vector.multi_reduction <add>, %76, %cst_46 [1] : vector<8x32xf32> to vector<8xf32>
    %80 = vector.shape_cast %79 : vector<8xf32> to vector<8x1xf32>
    %cst_47 = arith.constant 3.200000e+01 : f32
    %81 = vector.broadcast %cst_47 : f32 to vector<8x1xf32>
    %82 = arith.divf %80, %81 : vector<8x1xf32>
    %83 = vector.broadcast %82 : vector<8x1xf32> to vector<8x32xf32>
    %84 = arith.subf %76, %83 : vector<8x32xf32>
    %85 = arith.mulf %84, %84 : vector<8x32xf32>
    %cst_48 = arith.constant dense<0.000000e+00> : vector<8xf32>
    %86 = vector.multi_reduction <add>, %85, %cst_48 [1] : vector<8x32xf32> to vector<8xf32>
    %87 = vector.shape_cast %86 : vector<8xf32> to vector<8x1xf32>
    %cst_49 = arith.constant 3.200000e+01 : f32
    %88 = vector.broadcast %cst_49 : f32 to vector<8x1xf32>
    %89 = arith.divf %87, %88 : vector<8x1xf32>
    %90 = vector.broadcast %82 : vector<8x1xf32> to vector<8x32xf32>
    %91 = arith.subf %76, %90 : vector<8x32xf32>
    %cst_50 = arith.constant 9.99999997E-7 : f32
    %92 = vector.broadcast %cst_50 : f32 to vector<8x1xf32>
    %93 = arith.addf %89, %92 : vector<8x1xf32>
    %94 = math.rsqrt %93 : vector<8x1xf32>
    %95 = vector.broadcast %94 : vector<8x1xf32> to vector<8x32xf32>
    %96 = arith.mulf %91, %95 : vector<8x32xf32>
    %97 = vector.broadcast %77 : vector<1x32xf32> to vector<8x32xf32>
    %98 = arith.mulf %96, %97 : vector<8x32xf32>
    %99 = vector.broadcast %78 : vector<1x32xf32> to vector<8x32xf32>
    %100 = arith.addf %98, %99 : vector<8x32xf32>
    %c0_51 = arith.constant 0 : index
    %c0_52 = arith.constant 0 : index
    %101 = vector.load %arg12[%c0_51, %c0_52] : memref<32x64xf32, #tpu.memory_space<vmem>>, vector<32x64xf32>
    %cst_53 = arith.constant dense<0.000000e+00> : vector<8x64xf32>
    %102 = tpu.matmul %100, %101, %cst_53 {dimension_numbers = #tpu.dot_dimension_numbers<[1], [0], [0], [1], [0, 0, 1, 1], [], []>} : vector<8x32xf32>, vector<32x64xf32>, vector<8x64xf32> -> vector<8x64xf32>
    %c0_54 = arith.constant 0 : index
    %c0_55 = arith.constant 0 : index
    %103 = vector.load %arg13[%c0_54, %c0_55] : memref<1x64xf32, #tpu.memory_space<vmem>>, vector<1x64xf32>
    %104 = vector.broadcast %103 : vector<1x64xf32> to vector<8x64xf32>
    %105 = arith.addf %102, %104 : vector<8x64xf32>
    %cst_56 = arith.constant 5.000000e-01 : f32
    %106 = vector.broadcast %cst_56 : f32 to vector<8x64xf32>
    %107 = arith.mulf %106, %105 : vector<8x64xf32>
    %cst_57 = arith.constant 0.707106769 : f32
    %108 = vector.broadcast %cst_57 : f32 to vector<8x64xf32>
    %109 = arith.mulf %105, %108 : vector<8x64xf32>
    %110 = math.erf %109 : vector<8x64xf32>
    %cst_58 = arith.constant 1.000000e+00 : f32
    %111 = vector.broadcast %cst_58 : f32 to vector<8x64xf32>
    %112 = arith.addf %111, %110 : vector<8x64xf32>
    %113 = arith.mulf %107, %112 : vector<8x64xf32>
    %c0_59 = arith.constant 0 : index
    %c0_60 = arith.constant 0 : index
    %114 = vector.load %arg14[%c0_59, %c0_60] : memref<64x32xf32, #tpu.memory_space<vmem>>, vector<64x32xf32>
    %cst_61 = arith.constant dense<0.000000e+00> : vector<8x32xf32>
    %115 = tpu.matmul %113, %114, %cst_61 {dimension_numbers = #tpu.dot_dimension_numbers<[1], [0], [0], [1], [0, 0, 1, 1], [], []>} : vector<8x64xf32>, vector<64x32xf32>, vector<8x32xf32> -> vector<8x32xf32>
    %c0_62 = arith.constant 0 : index
    %c0_63 = arith.constant 0 : index
    %116 = vector.load %arg15[%c0_62, %c0_63] : memref<1x32xf32, #tpu.memory_space<vmem>>, vector<1x32xf32>
    %117 = vector.broadcast %116 : vector<1x32xf32> to vector<8x32xf32>
    %118 = arith.addf %115, %117 : vector<8x32xf32>
    %119 = arith.addf %118, %76 : vector<8x32xf32>
    %120 = vector.broadcast %9 : vector<8x1xf32> to vector<8x32xf32>
    %121 = arith.mulf %119, %120 : vector<8x32xf32>
    %c0_64 = arith.constant 0 : index
    %c0_65 = arith.constant 0 : index
    %c0_66 = arith.constant 0 : index
    %122 = vector.load %arg18[%c0_64, %c0_65, %c0_66] : memref<1x8x32xf32, #tpu.memory_space<vmem>>, vector<1x8x32xf32>
    %123 = vector.shape_cast %122 : vector<1x8x32xf32> to vector<8x32xf32>
    %124 = vector.shape_cast %121 : vector<8x32xf32> to vector<1x8x32xf32>
    tpu.vector_store %arg18[%c0_64, %c0_65, %c0_66], %124 {strides = array<i32>} : memref<1x8x32xf32, #tpu.memory_space<vmem>>, vector<1x8x32xf32>,
    return
  }
  func.func @transform_0(%arg0: i32, %arg1: i32) -> (i32, i32, i32) {
    %c0_i32 = arith.constant 0 : i32
    %c0_i32_0 = arith.constant 0 : i32
    %c0_i32_1 = arith.constant 0 : i32
    return %arg0, %c0_i32, %c0_i32_0 : i32, i32, i32
  }
  func.func @transform_1(%arg0: i32, %arg1: i32) -> (i32, i32, i32) {
    %c0_i32 = arith.constant 0 : i32
    %c0_i32_0 = arith.constant 0 : i32
    return %arg0, %arg1, %c0_i32 : i32, i32, i32
  }
  func.func @transform_2(%arg0: i32, %arg1: i32) -> (i32, i32, i32) {
    %c0_i32 = arith.constant 0 : i32
    %c0_i32_0 = arith.constant 0 : i32
    return %arg0, %arg1, %c0_i32 : i32, i32, i32
  }
  func.func @transform_3(%arg0: i32, %arg1: i32) -> (i32, i32) {
    %c0_i32 = arith.constant 0 : i32
    %c0_i32_0 = arith.constant 0 : i32
    %c0_i32_1 = arith.constant 0 : i32
    return %c0_i32, %c0_i32_0 : i32, i32
  }
  func.func @transform_4(%arg0: i32, %arg1: i32) -> (i32, i32) {
    %c0_i32 = arith.constant 0 : i32
    %c0_i32_0 = arith.constant 0 : i32
    %c0_i32_1 = arith.constant 0 : i32
    return %c0_i32, %c0_i32_0 : i32, i32
  }
  func.func @transform_5(%arg0: i32, %arg1: i32) -> (i32, i32) {
    %c0_i32 = arith.constant 0 : i32
    %c0_i32_0 = arith.constant 0 : i32
    %c0_i32_1 = arith.constant 0 : i32
    return %c0_i32, %c0_i32_0 : i32, i32
  }
  func.func @transform_6(%arg0: i32, %arg1: i32) -> (i32, i32) {
    %c0_i32 = arith.constant 0 : i32
    %c0_i32_0 = arith.constant 0 : i32
    %c0_i32_1 = arith.constant 0 : i32
    return %c0_i32, %c0_i32_0 : i32, i32
  }
  func.func @transform_7(%arg0: i32, %arg1: i32) -> (i32, i32) {
    %c0_i32 = arith.constant 0 : i32
    %c0_i32_0 = arith.constant 0 : i32
    %c0_i32_1 = arith.constant 0 : i32
    return %c0_i32, %c0_i32_0 : i32, i32
  }
  func.func @transform_8(%arg0: i32, %arg1: i32) -> (i32, i32) {
    %c0_i32 = arith.constant 0 : i32
    %c0_i32_0 = arith.constant 0 : i32
    %c0_i32_1 = arith.constant 0 : i32
    return %c0_i32, %c0_i32_0 : i32, i32
  }
  func.func @transform_9(%arg0: i32, %arg1: i32) -> (i32, i32) {
    %c0_i32 = arith.constant 0 : i32
    %c0_i32_0 = arith.constant 0 : i32
    %c0_i32_1 = arith.constant 0 : i32
    return %c0_i32, %c0_i32_0 : i32, i32
  }
  func.func @transform_10(%arg0: i32, %arg1: i32) -> (i32, i32) {
    %c0_i32 = arith.constant 0 : i32
    %c0_i32_0 = arith.constant 0 : i32
    %c0_i32_1 = arith.constant 0 : i32
    return %c0_i32, %c0_i32_0 : i32, i32
  }
  func.func @transform_11(%arg0: i32, %arg1: i32) -> (i32, i32) {
    %c0_i32 = arith.constant 0 : i32
    %c0_i32_0 = arith.constant 0 : i32
    %c0_i32_1 = arith.constant 0 : i32
    return %c0_i32, %c0_i32_0 : i32, i32
  }
  func.func @transform_12(%arg0: i32, %arg1: i32) -> (i32, i32) {
    %c0_i32 = arith.constant 0 : i32
    %c0_i32_0 = arith.constant 0 : i32
    %c0_i32_1 = arith.constant 0 : i32
    return %c0_i32, %c0_i32_0 : i32, i32
  }
  func.func @transform_13(%arg0: i32, %arg1: i32) -> (i32, i32) {
    %c0_i32 = arith.constant 0 : i32
    %c0_i32_0 = arith.constant 0 : i32
    %c0_i32_1 = arith.constant 0 : i32
    return %c0_i32, %c0_i32_0 : i32, i32
  }
  func.func @transform_14(%arg0: i32, %arg1: i32) -> (i32, i32) {
    %c0_i32 = arith.constant 0 : i32
    %c0_i32_0 = arith.constant 0 : i32
    %c0_i32_1 = arith.constant 0 : i32
    return %c0_i32, %c0_i32_0 : i32, i32
  }
  func.func @transform_15(%arg0: i32, %arg1: i32) -> (i32, i32) {
    %c0_i32 = arith.constant 0 : i32
    %c0_i32_0 = arith.constant 0 : i32
    %c0_i32_1 = arith.constant 0 : i32
    return %c0_i32, %c0_i32_0 : i32, i32
  }
  func.func @transform_16(%arg0: i32, %arg1: i32) -> (i32, i32, i32) {
    %c0_i32 = arith.constant 0 : i32
    %c0_i32_0 = arith.constant 0 : i32
    return %arg0, %arg1, %c0_i32 : i32, i32, i32
  }
  func.func @transform_17(%arg0: i32, %arg1: i32) -> (i32, i32, i32, i32) {
    %c0_i32 = arith.constant 0 : i32
    %c0_i32_0 = arith.constant 0 : i32
    %c0_i32_1 = arith.constant 0 : i32
    return %arg0, %c0_i32, %arg1, %c0_i32_0 : i32, i32, i32, i32
  }
}

</mosaic_0001>

<bundles_post_ra>
// kernel: tpu_custom_call.1
= control target key start
LH: loop header
LB: loop body
LE: loop exit
PB: predicated region body
PF: predicated region fallthrough
CT: control target
= control target key end

     0   :  { %s4023_s0 = inlined_call_operand.vmem [shape: f32[2,8,32], index: 0, kind: input, shape index: {}]   ;;  %s4024_s1 = inlined_call_operand.vmem [shape: f32[2,8,1], index: 1, kind: input, shape index: {}]   ;;  %s4025_s2 = inlined_call_operand.hbm [shape: f32[2,8,8], index: 2, kind: input, shape index: {}]   ;;  %s4026_s3 = inlined_call_operand.vmem [shape: f32[32,32], index: 3, kind: input, shape index: {}]   ;;  %s4027_s4 = inlined_call_operand.vmem [shape: f32[32,32], index: 4, kind: input, shape index: {}]   ;;  %s4028_s5 = inlined_call_operand.vmem [shape: f32[32,32], index: 5, kind: input, shape index: {}]   ;;  %s4029_s6 = inlined_call_operand.hbm [shape: f32[32,32], index: 6, kind: input, shape index: {}]   ;;  %s4030_s7 = inlined_call_operand.vmem [shape: f32[1,32], index: 7, kind: input, shape index: {}]   ;;  %s4031_s8 = inlined_call_operand.vmem [shape: f32[1,32], index: 8, kind: input, shape index: {}]   ;;  %s4032_s9 = inlined_call_operand.vmem [shape: f32[1,32], index: 9, kind: input, shape index: {}]   ;;  %s4033_s10 = inlined_call_operand.hbm [shape: f32[32,64], index: 10, kind: input, shape index: {}]   ;;  %s4034_s11 = inlined_call_operand.vmem [shape: f32[1,64], index: 11, kind: input, shape index: {}]   ;;  %s4035_s12 = inlined_call_operand.vmem [shape: f32[64,32], index: 12, kind: input, shape index: {}]   ;;  %s4036_s13 = inlined_call_operand.vmem [shape: f32[1,32], index: 13, kind: input, shape index: {}]   ;;  %s4037_s14 = inlined_call_operand.vmem [shape: f32[1,32], index: 14, kind: input, shape index: {}]   ;;  %s4038_s15 = inlined_call_operand.vmem [shape: f32[1,32], index: 15, kind: input, shape index: {}]   ;;  %s4039_s16 = inlined_call_operand.hbm [shape: f32[2,8,32], index: 16, kind: output, shape index: {0}]   ;;  %s4040_s17 = inlined_call_operand.hbm [shape: f32[2,4,8,8], index: 17, kind: output, shape index: {1}]  }
   0x1   :  { %4052 = sst [smem:[#allocation19_spill]] %s4023_s0 }
   0x2   :  { %4053 = sst [smem:[#allocation20_spill]] %s4024_s1 }
   0x3   :  { %4054 = sst [smem:[#allocation21_spill]] %s4025_s2 }
   0x4   :  { %4055 = sst [smem:[#allocation22_spill]] %s4026_s3 }
   0x5   :  { %4056 = sst [smem:[#allocation23_spill]] %s4030_s7 }
   0x6   :  { %4057 = sst [smem:[#allocation24_spill]] %s4034_s11 }
   0x7   :  { %4058 = sst [smem:[#allocation25_spill]] %s4035_s12 }
   0x8   :  { %4059 = sst [smem:[#allocation26_spill]] %s4036_s13 }
   0x9   :  { %4060 = sst [smem:[#allocation27_spill]] %s4037_s14 }
   0xa   :  { %4061 = sst [smem:[#allocation28_spill]] %s4038_s15 }
   0xb   :  { %4062 = sst [smem:[#allocation29_spill]] %s4039_s16 }
   0xc   :  { %4063 = sst [smem:[#allocation30_spill]] %s4040_s17 }
   0xd   :  { %23 = vsyncpa [#allocation5], 0 }
   0xe   :  { %25 = vsyncpa [#allocation5 + $0x1], 0 }
   0xf   :  { %26 = vsyncpa [#allocation8], 0 }
  0x10   :  { %27 = vsyncpa [#allocation6], 0 }
  0x11   :  { %29 = vsyncpa [#allocation6 + $0x1], 0 }
  0x12   :  { %30 = vsyncpa [#allocation12], 0 }
  0x13   :  { %32 = vsyncpa [#allocation12 + $0x1], 0  ;;  %s3434_s24 = smov 0   ;;  %s3436_s25 = smov 0  }
  0x14   :  { %s3438_s26 = smov 0   ;;  %s3440_s27 = smov 0  }
  0x15   :  { %s3442_s28 = smov 0   ;;  %s3444_s29 = smov 0  }
  0x16 LB: > { %4064 = sst [smem:[#allocation17_spill]] %s3302_s24  ;;  %s2724_s0 = sadd.s32 4294967295, %s3322_s29   ;;  %s3322_s29 = sphi %s3444_s29, %s38_s29   ;;  %s3318_s28 = sphi %s3442_s28, %s4098_s28   ;;  %s3314_s27 = sphi %s3440_s27, %s4097_s27   ;;  %s3310_s26 = sphi %s3438_s26, %s4096_s26   ;;  %s3306_s25 = sphi %s3436_s25, %s4095_s25   ;;  %s3302_s24 = sphi %s3434_s24, %s4094_s24  }
  0x17   : > { %s2725_s30 = sadd.s32 4294967294, %s3322_s29   ;;  %p126_p0 = scmp.ne.s32.totalorder %s3306_s25, %s3302_s24 }
  0x18   : > { %p3468_p1 = scmp.eq.s32.totalorder %s2724_s0, 0  ;;  %p3472_p2 = scmp.eq.s32.totalorder %s2724_s0, 1 }
  0x19   : > { %p431_p3 = scmp.eq.s32.totalorder %s2725_s30, 1  ;;  %p2726_p5 = scmp.ge.s32.totalorder %s3322_s29, 1 }
  0x1a   : > { %s4065_s18 = scalar_select %p3468_p1, 1, 0 }
  0x1b   : > { %p3478_p4 = por %p3468_p1, %p126_p0  ;;  %p3483_p6 = por %p431_p3, %p126_p0 }
  0x1c   : > { %p466_p7 = scmp.lt.s32.totalorder %s3322_s29, 3  ;;  %s3324_s22 = smov [#allocation7]  }
  0x1d   : > { %s4067_s1 = scalar_select %p3478_p4, 1, 0 }
  0x1e   : > { %s4068_s20 = scalar_select %p3483_p6, 1, 0 }
  0x1f   : > { %p3488_p8 = pnand %p2726_p5, %p466_p7  ;;  %s487_s23 = sshll.u32 %s3324_s22, 4  ;;  %s3492_s23 = int_to_ptr.vmem [resolvable:$true] %s487_s23 }
  0x20   : > { %4069 = sst [smem:[#allocation18_spill]] %s4068_s20  ;;  %s3325_s30 = smov [#allocation9]  }
  0x21   : > { %p3003_p9 = pneg %p3488_p8  ;;  %s509_s20 = sshll.u32 %s3325_s30, 4  ;;  %s3503_s20 = int_to_ptr.vmem [resolvable:$true] %s509_s20 }
  0x22   : > { %s3118_s22 = scalar_lea.hbm %s4029_s6, 512 }
  0x23   : > { %p3499_p11 = pnand %p3003_p9, %p3468_p1  ;;  %p3119_p12 = scmp.ne.s32.totalorder %s4029_s6, %s3118_s22 }
  0x24   : > { %p3125_p5 = scmp.lt.u32.totalorder %s3118_s22, %s4029_s6 }
  0x25   : > { %p3120_p13 = pneg %p3499_p11 }
  0x27   : > { %p3121_p0 = pnand %p3120_p13, %p3119_p12 }
  0x29   : > { %p3122_p3 = pneg %p3121_p0 }
  0x2b   : > { %p3127_p7 = pnand %p3125_p5, %p3122_p3 }
  0x2d   : > { %3130 = shalt.err (!%p3127_p7)
}
  0x2e   : > { %s3131_s16 = scalar_lea.vmem %s3492_s23, 512  ;;  %p3139_p1 = scmp.lt.s32.totalorder %s3492_s23, %s3492_s23 }
  0x2f   : > { %p3132_p9 = scmp.ne.s32.totalorder %s3492_s23, %s3131_s16  ;;  %p3140_p12 = scmp.lt.s32.totalorder %s3131_s16, %s3131_s16 }
  0x31   : > { %p3134_p10 = pnand %p3132_p9, %p3120_p13  ;;  %p3141_p0 = por %p3140_p12, %p3139_p1 }
  0x33   : > { %p3135_p6 = pneg %p3134_p10 }
  0x35   : > { %p3142_p4 = pnand %p3141_p0, %p3135_p6 }
  0x37   : > { %3145 = shalt.err (!%p3142_p4)
}
  0x38   : > { %s3326_s11 = smov 128   ;;  %s3327_s12 = smov 8  }
  0x39   : > { %3006 = dma.hbm_to_vmem [thread:$0]  (!%p3499_p11), %s4029_s6, 512, %s3492_s23, [#allocation8], %s3326_s11, %s3326_s11, %s3327_s12  }
  0x3a   : > { %s3146_s22 = scalar_lea.hbm %s4033_s10, 512 }
  0x3b   : > { %p3147_p1 = scmp.ne.s32.totalorder %s4033_s10, %s3146_s22  ;;  %p3153_p10 = scmp.lt.u32.totalorder %s3146_s22, %s4033_s10 }
  0x3d   : > { %p3149_p4 = pnand %p3147_p1, %p3120_p13 }
  0x3f   : > { %p3150_p6 = pneg %p3149_p4 }
  0x41   : > { %p3155_p3 = pnand %p3153_p10, %p3150_p6 }
  0x43   : > { %3158 = shalt.err (!%p3155_p3)
}
  0x44   : > { %s3159_s23 = scalar_lea.vmem %s3503_s20, 512  ;;  %p3167_p12 = scmp.lt.s32.totalorder %s3503_s20, %s3503_s20 }
  0x45   : > { %p3160_p5 = scmp.ne.s32.totalorder %s3503_s20, %s3159_s23  ;;  %p3168_p0 = scmp.lt.s32.totalorder %s3159_s23, %s3159_s23 }
  0x47   : > { %p3162_p7 = pnand %p3160_p5, %p3120_p13  ;;  %p3169_p1 = por %p3168_p0, %p3167_p12 }
  0x49   : > { %p3163_p9 = pneg %p3162_p7 }
  0x4b   : > { %p3170_p4 = pnand %p3169_p1, %p3163_p9 }
  0x4d   : > { %3173 = shalt.err (!%p3170_p4)
}
  0x4e   : > { %3009 = dma.hbm_to_vmem [thread:$0]  (!%p3499_p11), %s4033_s10, 512, %s3503_s20, [#allocation8], %s3326_s11, %s3326_s11, %s3327_s12  }
  0x4f   : > { %s50_s15 = sadd.s32 1, %s3318_s28  ;;  %s113_s13 = sadd.s32 1, %s3310_s26 }
  0x50   : > { %p52_p13 = scmp.ge.s32.totalorder %s50_s15, 2  ;;  %p120_p6 = scmp.ne.s32.totalorder %s3310_s26, %s3306_s25 }
  0x51   : > { %p121_p10 = scmp.eq.s32.totalorder %s3322_s29, 0  ;;  %p3023_p3 = scmp.lt.s32.totalorder %s3322_s29, 2 }
  0x52   : > { %s4100_s15 = smov (%p52_p13, %s50_s15), 0  ;;  %p3567_p7 = por %p3472_p2, %p120_p6 }
  0x53   : > { %p122_p5 = por %p121_p10, %p120_p6  ;;  %s108_s17 = ssub.s32 %s3318_s28, %s4100_s15 }
  0x54   : > { %s4072_s0 = scalar_select %p3567_p7, 1, 0 }
  0x55   : > { %s555_s24 = sand.u32 1, %s3310_s26   ;;  %p111_p9 = scmp.eq.s32.totalorder %s108_s17, 0 }
  0x56   : > { %s2730_s20 = sshll.u32 %s555_s24, 3  ;;  %s2731_s11 = sshll.u32 %s3318_s28, 7 }
  0x57   : > { %s3576_s12 = scalar_select %p111_p9, %s3310_s26, %s113_s13  }
  0x58   : > { %s4073_s2 = sld [smem:[#allocation21_spill]]  ;;  %s559_s19 = scalar_lea.vmem [#allocation4], %s2730_s20 }
  0x59   : > { %s567_s23 = sshll.u32 %s559_s19, 4  ;;  %p3585_p2 = pnand %p3023_p3, %p122_p5  ;;  %s3589_s23 = int_to_ptr.vmem [resolvable:$true] %s567_s23 }
  0x5a   : > { %s556_s14 = scalar_lea.sflag [#allocation5], %s555_s24 }
  0x5b   : > { %p3176_p12 = pneg %p3585_p2 }
  0x5e   : > { %s3581_s16 = scalar_lea.hbm %s4073_s2, %s2731_s11  ;;  %s3179_s11 = scalar_lea.hbm %s4073_s2, 256 }
  0x5f   : > { %s3174_s13 = scalar_lea.hbm %s3581_s16, 128  ;;  %p3180_p4 = scmp.lt.u32.totalorder %s3581_s16, %s4073_s2 }
  0x60   : > { %p3175_p11 = scmp.ne.s32.totalorder %s3581_s16, %s3174_s13  ;;  %p3181_p13 = scmp.lt.u32.totalorder %s3179_s11, %s3174_s13 }
  0x61   : > { %p3183_p10 = scmp.lt.u32.totalorder %s3174_s13, %s3581_s16 }
  0x62   : > { %p3177_p0 = pnand %p3176_p12, %p3175_p11  ;;  %p3182_p6 = por %p3181_p13, %p3180_p4 }
  0x64   : > { %p3178_p1 = pneg %p3177_p0  ;;  %p3184_p3 = por %p3183_p10, %p3182_p6 }
  0x66   : > { %p3185_p5 = pnand %p3184_p3, %p3178_p1 }
  0x68   : > { %3188 = shalt.err (!%p3185_p5)
}
  0x69   : > { %s3189_s24 = scalar_lea.vmem %s3589_s23, 128  ;;  %s3328_s19 = smov [#allocation4]  }
  0x6a   : > { %p3190_p9 = scmp.ne.s32.totalorder %s3589_s23, %s3189_s24  ;;  %s3194_s17 = sshll.u32 %s3328_s19, 4  ;;  %s3195_s17 = int_to_ptr.vmem [resolvable:$false] %s3194_s17 }
  0x6b   : > { %s3196_s20 = scalar_lea.vmem %s3195_s17, 256  ;;  %p3197_p7 = scmp.lt.s32.totalorder %s3589_s23, %s3195_s17 }
  0x6c   : > { %p3192_p11 = pnand %p3190_p9, %p3176_p12  ;;  %p3198_p4 = scmp.lt.s32.totalorder %s3196_s20, %s3189_s24 }
  0x6e   : > { %p3193_p0 = pneg %p3192_p11  ;;  %p3199_p13 = por %p3198_p4, %p3197_p7 }
  0x70   : > { %p3200_p6 = pnand %p3199_p13, %p3193_p0 }
  0x72   : > { %3203 = shalt.err (!%p3200_p6)
}
  0x73   : > { %3013 = dma.hbm_to_vmem [thread:$0]  (!%p3585_p2), %s3581_s16, 128, %s3589_s23, %s556_s14  }
  0x74   : > { %576 = sbr.rel (%p3488_p8) target bundleno = 2692 (0xa84), region = 84  ;;  %s3619_s13 = sand.u32 (!%p3488_p8), 1, %s3306_s25  }
  0x75   : > { %s4050_s11 = sshll.u32 (!%p3488_p8), %s3619_s13, 3  ;;  %s579_s30 = scalar_lea.sflag (!%p3488_p8), [#allocation5], %s3619_s13 }
  0x76   : > { %s3625_s22 = scalar_lea.vmem (!%p3488_p8), [#allocation4], %s4050_s11  ;;  %p4075_p7 = scmp.ne.s32.totalorder (!%p3488_p8), %s4067_s1, 0 }
  0x7b   : > { %3285 = dma.done.wait (%p4075_p7), %s579_s30, 128  }
  0x7c   : > { %3287 = vsyncadd (%p4075_p7), %s579_s30, 4294967168  ;;  %p4076_p2 = scmp.ne.s32.totalorder %s4065_s18, 0 }
  0x7e   : > { %3289 = dma.done.wait (%p4076_p2), [#allocation8], 1024  }
  0x7f   : > { %3291 = vsyncadd (%p4076_p2), [#allocation8], 4294966272  ;;  %p657_p8 = scmp.lt.s32.totalorder %s3314_s27, 1  ;;  %s4077_s14 = sld [smem:[#allocation19_spill]]  ;;  %vm675_vm0 = vcmask 261120   ;;  %v704_v12 = vld [vmem:[%s4027_s4] sm:$0xff]  ;;  %v870_v57 = vlaneseq }
  0x80   : > { %v705_v13 = vld [vmem:[%s4027_s4 + $0x8] sm:$0xff]  ;;  %v706_v14 = vld [vmem:[%s4027_s4 + $0x10] sm:$0xff]  ;;  %v3329_v15 = vmov 0.0|0.0   ;;  %v707_v17 = vld [vmem:[%s4027_s4 + $0x18] sm:$0xff]  ;;  %s4078_s3 = sld [smem:[#allocation22_spill]]  ;;  %vm3330_vm1 = vmmov 0  }
  0x81   : > { %s3637_s21 = scalar_select %p657_p8, %s3314_s27, 1  ;;  %2947 = vmatprep.subr.bf16.mxu1 %v3329_v15  ;;  %v2948_v16 = vpack.c.bf16 %v705_v13, %v704_v12  ;;  %2959 = vmatprep.subr.bf16.mxu0 %v3329_v15  ;;  %v3331_v21 = vmov 0.0   ;;  %v2951_v22 = vpack.c.bf16 %v707_v17, %v706_v14  ;;  %v2740_v33 = vld [vmem:[%s4031_s8] ss:$0 sm:$0xff]  ;;  %v782_v36 = vld [vmem:[%s4028_s5 + $0x8] sm:$0xff]  ;;  %v783_v42 = vld [vmem:[%s4028_s5 + $0x10] sm:$0xff] }
  0x82   : > { %2841 = vmatprep.mubr.msk.f32.mxu1 %vm3330_vm1, %v3331_v21  ;;  %2863 = vmatprep.mubr.msk.f32.mxu0 %vm3330_vm1, %v3331_v21  ;;  %v781_v35 = vld [vmem:[%s4028_s5] sm:$0xff]  ;;  %v784_v43 = vld [vmem:[%s4028_s5 + $0x18] sm:$0xff]  ;;  %s3334_s18 = smov 104   ;;  %v3335_v55 = vmov 1983009808   ;;  %v871_v61 = vshrl.u32 %v870_v57, 7 }
  0x83   : > { %s2738_s16 = sshll.u32 %s3637_s21, 3  ;;  %2949 = vmatpush3.bf16.msra.mxu1 %v2948_v16  ;;  %v2741_v37 = vld [vmem:[%s4032_s9] ss:$0 sm:$0xff]  ;;  %v2954_v40 = vpack.c.bf16 %v782_v36, %v781_v35  ;;  %v2957_v46 = vpack.c.bf16 %v784_v43, %v783_v42  ;;  %v868_v56 = vunpack.c.l.s4 %v3335_v55  ;;  %v3336_v58 = vmov 1934713408   ;;  %s3338_s19 = smov 16  }
  0x84   : > { %2950 = vmatprep.subr.bf16.mxu1 %v3329_v15  ;;  %v900_v59 = vunpack.c.l.s4 %v3336_v58  ;;  %vm1001_vm2 = vcmask 64512   ;;  %s3339_s17 = smov 8   ;;  %s4079_s23 = sld [smem:[#allocation20_spill]]  ;;  %vm2220_vm4 = vcmask 130048   ;;  %vm2222_vm5 = vcmask 195584  }
  0x85   : > { %s660_s1 = scalar_lea.vmem %s4077_s14, %s2738_s16  ;;  %s3332_s14 = smov 120   ;;  %v869_v60 = vunpack.c.0.s8 %v868_v56  ;;  %vm2448_vm6 = vcmask 523264  }
  0x86   : > { %v3645_v0 = vld [vmem:[%s660_s1] sm:$0xff]  ;;  %v1195_v19 = vld [vmem:[%s4078_s3 + $0x8] sm:$0xff]  ;;  %v1196_v23 = vld [vmem:[%s4078_s3 + $0x10] sm:$0xff]  ;;  %s3333_s1 = smov 112   ;;  %v901_v63 = vunpack.c.0.s8 %v900_v59  ;;  %s4083_s21 = sld [smem:[#allocation25_spill]] }
  0x87   : > { %v676_v1 = vsel %vm675_vm0, %v3645_v0, 0.0  ;;  %v1194_v18 = vld [vmem:[%s4078_s3] sm:$0xff]  ;;  %2952 = vmatpush3.bf16.msra.mxu1 %v2951_v22  ;;  %v1197_v24 = vld [vmem:[%s4078_s3 + $0x18] sm:$0xff]  ;;  %s4084_s30 = sld [smem:[#allocation24_spill]]  ;;  %p4086_p1 = scmp.ne.s32.totalorder %s4072_s0, 0 }
  0x88   : > { %677 = vadd.xlane.f32.xlu0 %v676_v1  ;;  %v2960_v20 = vpack.c.bf16 %v1195_v19, %v1194_v18  ;;  %2953 = vmatprep.subr.bf16.mxu1 %v3329_v15  ;;  %v2963_v25 = vpack.c.bf16 %v1197_v24, %v1196_v23  ;;  %s3341_s20 = smov [#allocation11]  }
  0x8a   : > { %2961 = vmatpush3.bf16.msra.mxu0 %v2960_v20  ;;  %s667_s7 = scalar_lea.vmem %s4079_s23, %s2738_s16  ;;  %s4082_s23 = sld [smem:[#allocation28_spill]] }
  0x8b   : > { %2962 = vmatprep.subr.bf16.mxu0 %v3329_v15 }
  0x8c   : > { %1167 = vadd.xlane.f32.xlu0 %v676_v1  ;;  %v3724_v1 = vsub.s32 %v869_v60, %v871_v61 }
  0x8e   : > { %2964 = vmatpush3.bf16.msra.mxu0 %v2963_v25 }
  0x8f   : > { %2876 = vmatprep.subr.mxu0 %v3331_v21 }
 0x115   : > { %v678_v2 = vpop.xlane.xlu0 %677 }
 0x116   : > { %v680_v3 = vmul.f32 0.03125, %v678_v2 }
 0x118   : > { %v681_v4 = vsub.f32 %v3645_v0, %v680_v3 }
 0x119   : > { %v1168_v5 = vpop.xlane.xlu0 %1167 }
 0x11a   : > { %v1170_v6 = vmul.f32 0.03125, %v1168_v5  ;;  %v682_v7 = vmul.f32 %v681_v4, %v681_v4 }
 0x11c   : > { %v1171_v8 = vsub.f32 %v3645_v0, %v1170_v6  ;;  %v683_v9 = vsel %vm675_vm0, %v682_v7, 0.0 }
 0x11d   : > { %684 = vadd.xlane.f32.xlu1 %v683_v9 }
 0x11e   : > { %v1172_v10 = vmul.f32 %v1171_v8, %v1171_v8 }
 0x120   : > { %v1173_v11 = vsel %vm675_vm0, %v1172_v10, 0.0 }
 0x121   : > { %1174 = vadd.xlane.f32.xlu1 %v1173_v11 }
 0x1aa   : > { %v685_v26 = vpop.xlane.xlu1 %684 }
 0x1ab   : > { %v686_v27 = vmul.f32 0.03125, %v685_v26 }
 0x1ad   : > { %v687_v28 = vadd.f32 1e-06, %v686_v27 }
 0x1ae   : > { %v1175_v29 = vpop.xlane.xlu1 %1174 }
 0x1af   : > { %3094 = vrsqrt.f32 %v687_v28  ;;  %v1176_v30 = vmul.f32 0.03125, %v1175_v29 }
 0x1b1   : > { %v1177_v31 = vadd.f32 1e-06, %v1176_v30 }
 0x1b3   : > { %3096 = vrsqrt.f32 %v1177_v31 }
 0x1b9   : > { %v3095_v32 = vpop.eup %3094 }
 0x1ba   : > { %v689_v34 = vmul.f32 %v3095_v32, %v681_v4 }
 0x1bc   : > { %v696_v38 = vmul.f32 %v2740_v33, %v689_v34 }
 0x1bd   : > { %v3097_v39 = vpop.eup %3096 }
 0x1be   : > { %v703_v41 = vadd.f32 %v2741_v37, %v696_v38  ;;  %v1179_v44 = vmul.f32 %v3097_v39, %v1171_v8  ;;  %v3726_v8 = vsub.s32 %v901_v63, %v871_v61 }
 0x1c0   : > { %2842 = vmatmul.mubr.msk.f32.vlgmr.msra.gmra.mrb[0].mxu1 %vm675_vm0, %v703_v41  ;;  %v1186_v45 = vmul.f32 %v2740_v33, %v1179_v44 }
 0x1c1   : > { %2955 = vmatpush3.bf16.msra.mxu1 %v2954_v40  ;;  %2852 = vmatprep.mubr.msk.f32.mxu1 %vm3330_vm1, %v3331_v21 }
 0x1c2   : > { %2956 = vmatprep.subr.bf16.mxu1 %v3329_v15  ;;  %v1193_v47 = vadd.f32 %v2741_v37, %v1186_v45 }
 0x1c4   : > { %2864 = vmatmul.mubr.msk.f32.vlgmr.msra.gmra.mrb[0].mxu0 %vm675_vm0, %v1193_v47 }
 0x1c5   : > { %2958 = vmatpush3.bf16.msra.mxu1 %v2957_v46  ;;  %2878 = vmatprep.mubr.msk.f32.mxu0 %vm3330_vm1, %v3331_v21 }
 0x1c6   : > { %2866 = vmatprep.subr.mxu1 %v3331_v21 }
 0x1c8   : > { %2853 = vmatmul.mubr.msk.f32.vlgmr.msra.gmra.mrb[2].mxu1 %vm675_vm0, %v703_v41 }
 0x1c9   : > { %2868 = vmatprep.mubr.msk.f32.mxu1 %vm3330_vm1, %v3331_v21 }
 0x293   : > { %v777_v48 = vpop.f32.mrb[0].mxu1 }
 0x294   : > { %856 = vrot.lane.b32.xlu0 %v777_v48, %s3332_s14  ;;  %v2843_v49 = vpop.f32.mrb[1].mxu1  ;;  %859 = vrot.lane.b32.xlu1 %v777_v48, %s3333_s1 }
 0x297   : > { %v1267_v50 = vpop.f32.mrb[0].mxu0 }
 0x298   : > { %v1271_v51 = vmul.f32 0.35355338, %v1267_v50  ;;  %862 = vrot.lane.b32.xlu1 %v777_v48, %s3334_s18  ;;  %v2865_v52 = vpop.f32.mrb[1].mxu0 }
 0x29a   : > { %1276 = vrot.lane.b32.xlu0 %v1271_v51, %s3333_s1 }
 0x29b   : > { %v3720_v53 = vpop.f32.mrb[2].mxu1 }
 0x29c   : > { %v2854_v54 = vpop.f32.mrb[3].mxu1  ;;  %1273 = vrot.lane.b32.xlu1 %v1271_v51, %s3332_s14 }
 0x2a0   : > { %1279 = vrot.lane.b32.xlu1 %v1271_v51, %s3334_s18 }
 0x306   : > { %v860_v62 = vpop.permute.xlu1 %859  ;;  %v857_v4 = vpop.permute.xlu0 %856 }
 0x307   : > { %v865_v2 = vcombine.low %v777_v48, %v860_v62  ;;  %v866_v3 = vcombine.high %v777_v48, %v860_v62 }
 0x309   : > { %v873_v9 = vrot.slane %v865_v2, %v3724_v1  ;;  %v880_v10 = vrot.slane %v866_v3, %v3724_v1 }
 0x30a   : > { %v863_v5 = vpop.permute.xlu1 %862 }
 0x30b   : > { %v881_v6 = vcombine.low %v857_v4, %v863_v5  ;;  %v882_v7 = vcombine.high %v857_v4, %v863_v5 }
 0x30c   : > { %v1277_v19 = vpop.permute.xlu0 %1276 }
 0x30d   : > { %v889_v11 = vrot.slane %v881_v6, %v3724_v1  ;;  %v896_v12 = vrot.slane %v882_v7, %v3724_v1  ;;  %v1282_v25 = vcombine.low %v1271_v51, %v1277_v19  ;;  %v1283_v26 = vcombine.high %v1271_v51, %v1277_v19 }
 0x30e   : > { %v1274_v13 = vpop.permute.xlu1 %1273 }
 0x30f   : > { %v897_v14 = vcombine.low %v873_v9, %v889_v11  ;;  %v898_v16 = vcombine.high %v873_v9, %v889_v11  ;;  %v913_v17 = vcombine.low %v880_v10, %v896_v12  ;;  %v914_v18 = vcombine.high %v880_v10, %v896_v12 }
 0x310   : > { %v1290_v38 = vrot.slane %v1282_v25, %v3724_v1  ;;  %v1297_v39 = vrot.slane %v1283_v26, %v3724_v1 }
 0x311   : > { %v905_v20 = vrot.slane %v897_v14, %v3726_v8  ;;  %v912_v22 = vrot.slane %v898_v16, %v3726_v8  ;;  %v921_v23 = vrot.slane %v913_v17, %v3726_v8  ;;  %v928_v24 = vrot.slane %v914_v18, %v3726_v8 }
 0x312   : > { %v1280_v27 = vpop.permute.xlu1 %1279 }
 0x313   : > { %v933_v28 = vcombine.low %v905_v20, %v912_v22  ;;  %v2744_v29 = vcombine.high %v905_v20, %v912_v22  ;;  %v949_v30 = vcombine.low %v921_v23, %v928_v24  ;;  %v2745_v31 = vcombine.high %v921_v23, %v928_v24 }
 0x314   : > { %v1298_v32 = vcombine.low %v1274_v13, %v1280_v27  ;;  %v1299_v33 = vcombine.high %v1274_v13, %v1280_v27 }
 0x315   : > { %v940_v34 = vrot.slane %v933_v28, %v3724_v1  ;;  %v948_v35 = vrot.slane %v2744_v29, %v3724_v1  ;;  %v956_v36 = vrot.slane %v949_v30, %v3724_v1  ;;  %v964_v37 = vrot.slane %v2745_v31, %v3724_v1  ;;  %v1160_v28 = vld [vmem:[%s3625_s22] sm:$0xff]  ;;  %s2737_s22 = sshll.u32 %s3619_s13, 5 }
 0x316   : > { %v1306_v40 = vrot.slane %v1298_v32, %v3724_v1  ;;  %v1313_v41 = vrot.slane %v1299_v33, %v3724_v1  ;;  %vm1161_vm3 = vcmp.gt.f32.partialorder %v1160_v28, 0.5  ;;  %s3825_s24 = scalar_lea.vmem [#allocation11], %s2737_s22  ;;  %s2531_s22 = scalar_lea.sflag [#allocation12], %s3619_s13 }
 0x317   : > { %v965_v42 = vcombine.low %v940_v34, %v948_v35  ;;  %v966_v43 = vcombine.high %v940_v34, %v948_v35  ;;  %v981_v44 = vcombine.low %v956_v36, %v964_v37  ;;  %v982_v45 = vcombine.high %v956_v36, %v964_v37 }
 0x318   : > { %v1314_v46 = vcombine.low %v1290_v38, %v1306_v40  ;;  %v1315_v47 = vcombine.high %v1290_v38, %v1306_v40  ;;  %v1330_v48 = vcombine.low %v1297_v39, %v1313_v41  ;;  %v1331_v49 = vcombine.high %v1297_v39, %v1313_v41 }
 0x319   : > { %v973_v50 = vrot.slane %v965_v42, %v3726_v8  ;;  %v980_v51 = vrot.slane %v966_v43, %v3726_v8  ;;  %v989_v52 = vrot.slane %v981_v44, %v3726_v8  ;;  %v996_v54 = vrot.slane %v982_v45, %v3726_v8 }
 0x31a   : > { %v1322_v55 = vrot.slane %v1314_v46, %v3726_v8  ;;  %v1329_v56 = vrot.slane %v1315_v47, %v3726_v8  ;;  %v1338_v57 = vrot.slane %v1330_v48, %v3726_v8  ;;  %v1345_v58 = vrot.slane %v1331_v49, %v3726_v8 }
 0x31b   : > { %v997_v59 = vcombine.low %v973_v50, %v989_v52  ;;  %v998_v60 = vcombine.high %v973_v50, %v989_v52  ;;  %v999_v61 = vcombine.low %v980_v51, %v996_v54  ;;  %v1000_v62 = vcombine.high %v980_v51, %v996_v54 }
 0x31c   : > { %v1350_v63 = vcombine.low %v1322_v55, %v1329_v56  ;;  %v2751_v2 = vcombine.high %v1322_v55, %v1329_v56  ;;  %v1366_v3 = vcombine.low %v1338_v57, %v1345_v58  ;;  %v2752_v4 = vcombine.high %v1338_v57, %v1345_v58 }
 0x31d   : > { %1002 = vst.msk [vmem:[#allocation2] sm:$0xff] %vm1001_vm2, %v997_v59  ;;  %1003 = vst.msk [vmem:[#allocation2 + $0x8] sm:$0xff] %vm1001_vm2, %v998_v60  ;;  %v1162_v29 = vsel %vm1161_vm3, -1e+09, %v3331_v21 }
 0x31e   : > { %1004 = vst.msk [vmem:[#allocation2 + $0x10] sm:$0xff] %vm1001_vm2, %v999_v61  ;;  %1005 = vst.msk [vmem:[#allocation2 + $0x18] sm:$0xff] %vm1001_vm2, %v1000_v62  ;;  %v1357_v5 = vrot.slane %v1350_v63, %v3724_v1  ;;  %v1365_v6 = vrot.slane %v2751_v2, %v3724_v1  ;;  %v1373_v7 = vrot.slane %v1366_v3, %v3724_v1 }
 0x31f   : > { %v1381_v9 = vrot.slane %v2752_v4, %v3724_v1 }
 0x320   : > { %v1382_v10 = vcombine.low %v1357_v5, %v1365_v6  ;;  %v1383_v11 = vcombine.high %v1357_v5, %v1365_v6 }
 0x321   : > { %v1398_v12 = vcombine.low %v1373_v7, %v1381_v9  ;;  %v1399_v13 = vcombine.high %v1373_v7, %v1381_v9 }
 0x322   : > { %v1390_v14 = vrot.slane %v1382_v10, %v3726_v8  ;;  %v1397_v17 = vrot.slane %v1383_v11, %v3726_v8 }
 0x323   : > { %v1406_v16 = vrot.slane %v1398_v12, %v3726_v8  ;;  %v1413_v18 = vrot.slane %v1399_v13, %v3726_v8 }
 0x324   : > { %v1418_v19 = vld [vmem:[#allocation2] sm:$0xff]  ;;  %v1419_v24 = vld [vmem:[#allocation2 + $0x8] sm:$0xff] }
 0x325   : > { %v1420_v20 = vld [vmem:[#allocation2 + $0x10] sm:$0xff]  ;;  %2867 = vmatpush3.xpose.msk.msra.mxu1 %vm1001_vm2, %v1418_v19  ;;  %v1414_v22 = vcombine.low %v1390_v14, %v1406_v16  ;;  %v1416_v23 = vcombine.low %v1397_v17, %v1413_v18  ;;  %v1415_v25 = vcombine.high %v1390_v14, %v1406_v16  ;;  %v1421_v26 = vld [vmem:[#allocation2 + $0x18] sm:$0xff]  ;;  %v1417_v27 = vcombine.high %v1397_v17, %v1413_v18 }
 0x326   : > { %2877 = vmatpush3.xpose.msk.msra.mxu0 %vm1001_vm2, %v1420_v20  ;;  %2871 = vmatprep.subr.mxu1 %v3331_v21 }
 0x327   : > { %2886 = vmatprep.subr.mxu0 %v3331_v21 }
 0x328   : > { %2869 = vmatmul.mubr.msk.f32.vlgmr.msra.gmra.mrb[4].mxu1 %vm1001_vm2, %v1414_v22 }
 0x329   : > { %2879 = vmatmul.mubr.msk.f32.vlgmr.msra.gmra.mrb[2].mxu0 %vm1001_vm2, %v1416_v23  ;;  %2872 = vmatpush3.xpose.msk.msra.mxu1 %vm1001_vm2, %v1419_v24 }
 0x32a   : > { %2873 = vmatprep.mubr.msk.f32.mxu1 %vm3330_vm1, %v3331_v21  ;;  %2881 = vmatprep.subr.mxu1 %v3331_v21 }
 0x32b   : > { %2888 = vmatprep.mubr.msk.f32.mxu0 %vm3330_vm1, %v3331_v21 }
 0x32c   : > { %2874 = vmatmul.mubr.msk.f32.vlgmr.msra.gmra.mrb[6].mxu1 %vm1001_vm2, %v1415_v25 }
 0x32d   : > { %2882 = vmatpush3.xpose.msk.msra.mxu1 %vm1001_vm2, %v1421_v26  ;;  %2883 = vmatprep.mubr.msk.f32.mxu1 %vm3330_vm1, %v3331_v21 }
 0x32e   : > { %2891 = vmatprep.subr.mxu1 %v3331_v21 }
 0x330   : > { %2884 = vmatmul.mubr.msk.f32.vlgmr.msra.gmra.mrb[8].mxu1 %vm1001_vm2, %v1417_v27 }
 0x331   : > { %2893 = vmatprep.mubr.msk.f32.mxu1 %vm3330_vm1, %v3331_v21 }
 0x3fb   : > { %v1495_v30 = vpop.f32.mrb[4].mxu1 }
 0x3fc   : > { %v1647_v31 = vpop.f32.mrb[2].mxu0  ;;  %v1496_v32 = vadd.f32 %v1495_v30, %v1162_v29  ;;  %v2870_v33 = vpop.f32.mrb[5].mxu1 }
 0x3fd   : > { %v2880_v34 = vpop.f32.mrb[3].mxu0  ;;  %v1648_v35 = vadd.f32 %v1647_v31, %v1162_v29 }
 0x3fe   : > { %v1727_v36 = vsel %vm1001_vm2, %v1496_v32, -inf }
 0x3ff   : > { %1728 = vmax.xlane.f32.xlu0 %v1727_v36  ;;  %v1571_v37 = vpop.f32.mrb[6].mxu1  ;;  %v1733_v40 = vsel %vm1001_vm2, %v1648_v35, -inf }
 0x400   : > { %v1572_v38 = vadd.f32 %v1571_v37, %v1162_v29  ;;  %v2875_v39 = vpop.f32.mrb[7].mxu1 }
 0x402   : > { %v1730_v41 = vsel %vm1001_vm2, %v1572_v38, -inf }
 0x403   : > { %1734 = vmax.xlane.f32.xlu0 %v1733_v40  ;;  %1731 = vmax.xlane.f32.xlu1 %v1730_v41  ;;  %v1723_v42 = vpop.f32.mrb[8].mxu1 }
 0x404   : > { %v1724_v43 = vadd.f32 %v1723_v42, %v1162_v29  ;;  %v2885_v44 = vpop.f32.mrb[9].mxu1 }
 0x406   : > { %v1736_v45 = vsel %vm1001_vm2, %v1724_v43, -inf }
 0x407   : > { %1737 = vmax.xlane.f32.xlu0 %v1736_v45 }
 0x414   : > { %1010 = vrot.lane.b32.xlu1 %v3720_v53, %s3333_s1  ;;  %s4080_s1 = sld [smem:[#allocation23_spill]] }
 0x418   : > { %1013 = vrot.lane.b32.xlu1 %v3720_v53, %s3334_s18 }
 0x41d   : > { %1007 = vrot.lane.b32.xlu0 %v3720_v53, %s3332_s14  ;;  %s3340_s14 = smov 24  }
 0x48c   : > { %v1729_v46 = vpop.xlane.xlu0 %1728 }
 0x48d   : > { %v1739_v47 = vsub.f32 %v1496_v32, %v1729_v46 }
 0x48f   : > { %v1743_v48 = vmul.f32 1.442695, %v1739_v47 }
 0x490   : > { %v1735_v49 = vpop.xlane.xlu0 %1734  ;;  %v1732_v50 = vpop.xlane.xlu1 %1731 }
 0x491   : > { %3098 = vpow2.f32 %v1743_v48  ;;  %v1741_v51 = vsub.f32 %v1648_v35, %v1735_v49  ;;  %v1740_v52 = vsub.f32 %v1572_v38, %v1732_v50 }
 0x493   : > { %v1747_v54 = vmul.f32 1.442695, %v1741_v51  ;;  %v1745_v55 = vmul.f32 1.442695, %v1740_v52 }
 0x494   : > { %v1011_v56 = vpop.permute.xlu1 %1010  ;;  %v1738_v57 = vpop.xlane.xlu0 %1737 }
 0x495   : > { %3100 = vpow2.f32 %v1747_v54  ;;  %v1742_v58 = vsub.f32 %v1724_v43, %v1738_v57  ;;  %v1016_v59 = vcombine.low %v3720_v53, %v1011_v56  ;;  %v1017_v60 = vcombine.high %v3720_v53, %v1011_v56 }
 0x496   : > { %3102 = vpow2.f32 %v1745_v55 }
 0x497   : > { %v1749_v61 = vmul.f32 1.442695, %v1742_v58  ;;  %v1024_v4 = vrot.slane %v1016_v59, %v3724_v1  ;;  %v1031_v6 = vrot.slane %v1017_v60, %v3724_v1 }
 0x498   : > { %v1014_v62 = vpop.permute.xlu1 %1013  ;;  %v1008_v63 = vpop.permute.xlu0 %1007 }
 0x499   : > { %v1032_v2 = vcombine.low %v1008_v63, %v1014_v62  ;;  %v1033_v3 = vcombine.high %v1008_v63, %v1014_v62  ;;  %3104 = vpow2.f32 %v1749_v61  ;;  %v2224_v63 = vld [vmem:[#allocation7] sm:$0xff] }
 0x49b   : > { %v3099_v5 = vpop.eup %3098  ;;  %v1040_v7 = vrot.slane %v1032_v2, %v3724_v1  ;;  %v1047_v9 = vrot.slane %v1033_v3, %v3724_v1  ;;  %v2225_v2 = vld [vmem:[#allocation7 + $0x8] sm:$0xff] }
 0x49c   : > { %v1751_v10 = vsel %vm1001_vm2, %v3099_v5, 0.0  ;;  %v2966_v3 = vpack.c.bf16 %v2225_v2, %v2224_v63 }
 0x49d   : > { %v1048_v11 = vcombine.low %v1024_v4, %v1040_v7  ;;  %v1049_v12 = vcombine.high %v1024_v4, %v1040_v7  ;;  %v1064_v53 = vcombine.low %v1031_v6, %v1047_v9  ;;  %v1065_v13 = vcombine.high %v1031_v6, %v1047_v9  ;;  %1752 = vadd.xlane.f32.xlu1 %v1751_v10 }
 0x49f   : > { %v3101_v14 = vpop.eup %3100  ;;  %v1056_v16 = vrot.slane %v1048_v11, %v3726_v8  ;;  %v1063_v17 = vrot.slane %v1049_v12, %v3726_v8  ;;  %v1072_v18 = vrot.slane %v1064_v53, %v3726_v8  ;;  %v1079_v19 = vrot.slane %v1065_v13, %v3726_v8 }
 0x4a0   : > { %v1757_v20 = vsel %vm1001_vm2, %v3101_v14, 0.0  ;;  %v3103_v22 = vpop.eup %3102 }
 0x4a1   : > { %v1084_v23 = vcombine.low %v1056_v16, %v1063_v17  ;;  %v2746_v24 = vcombine.high %v1056_v16, %v1063_v17  ;;  %v1100_v25 = vcombine.low %v1072_v18, %v1079_v19  ;;  %v2747_v26 = vcombine.high %v1072_v18, %v1079_v19  ;;  %1758 = vadd.xlane.f32.xlu0 %v1757_v20 }
 0x4a2   : > { %v1754_v31 = vsel %vm1001_vm2, %v3103_v22, 0.0 }
 0x4a3   : > { %v1091_v27 = vrot.slane %v1084_v23, %v3724_v1  ;;  %v1099_v28 = vrot.slane %v2746_v24, %v3724_v1  ;;  %v1107_v29 = vrot.slane %v1100_v25, %v3724_v1  ;;  %v1115_v30 = vrot.slane %v2747_v26, %v3724_v1  ;;  %v3105_v32 = vpop.eup %3104  ;;  %v2226_v26 = vld [vmem:[#allocation7 + $0x10] sm:$0xff] }
 0x4a4   : > { %v1760_v41 = vsel %vm1001_vm2, %v3105_v32, 0.0 }
 0x4a5   : > { %v1116_v33 = vcombine.low %v1091_v27, %v1099_v28  ;;  %v1117_v34 = vcombine.high %v1091_v27, %v1099_v28  ;;  %v1132_v35 = vcombine.low %v1107_v29, %v1115_v30  ;;  %v1133_v36 = vcombine.high %v1107_v29, %v1115_v30  ;;  %1755 = vadd.xlane.f32.xlu0 %v1754_v31  ;;  %v2227_v27 = vld [vmem:[#allocation7 + $0x18] sm:$0xff] }
 0x4a7   : > { %v1124_v37 = vrot.slane %v1116_v33, %v3726_v8  ;;  %v1131_v38 = vrot.slane %v1117_v34, %v3726_v8  ;;  %v1140_v39 = vrot.slane %v1132_v35, %v3726_v8  ;;  %v1147_v40 = vrot.slane %v1133_v36, %v3726_v8 }
 0x4a9   : > { %v1148_v42 = vcombine.low %v1124_v37, %v1140_v39  ;;  %v1149_v43 = vcombine.high %v1124_v37, %v1140_v39  ;;  %v1150_v44 = vcombine.low %v1131_v38, %v1147_v40  ;;  %v1151_v45 = vcombine.high %v1131_v38, %v1147_v40  ;;  %1761 = vadd.xlane.f32.xlu0 %v1760_v41 }
 0x4ab   : > { %1152 = vst.msk [vmem:[#allocation3] sm:$0xff] %vm1001_vm2, %v1148_v42  ;;  %1153 = vst.msk [vmem:[#allocation3 + $0x8] sm:$0xff] %vm1001_vm2, %v1149_v43 }
 0x4ac   : > { %1154 = vst.msk [vmem:[#allocation3 + $0x10] sm:$0xff] %vm1001_vm2, %v1150_v44  ;;  %1155 = vst.msk [vmem:[#allocation3 + $0x18] sm:$0xff] %vm1001_vm2, %v1151_v45  ;;  %v3337_v45 = vmov 0  }
 0x4ad   : > { %3092 = vset.pattern.permute.xlu1 %v3337_v45  ;;  %3093 = vset.pattern.permute.xlu0 %v3337_v45 }
 0x4b2   : > { %v1775_v46 = vld [vmem:[#allocation3] sm:$0xff]  ;;  %v1776_v47 = vld [vmem:[#allocation3 + $0x8] sm:$0xff] }
 0x4b3   : > { %2887 = vmatpush3.msra.mxu0 %v1775_v46  ;;  %2892 = vmatpush3.msra.mxu1 %v1776_v47  ;;  %v1777_v55 = vld [vmem:[#allocation3 + $0x10] sm:$0xff]  ;;  %v1778_v60 = vld [vmem:[#allocation3 + $0x18] sm:$0xff] }
 0x4b4   : > { %2896 = vmatprep.subr.mxu0 %v3331_v21  ;;  %2901 = vmatprep.subr.mxu1 %v3331_v21 }
 0x52a   : > { %v1753_v48 = vpop.xlane.xlu1 %1752 }
 0x52b   : > { %3106 = vrcp.f32 %v1753_v48 }
 0x52e   : > { %v1759_v49 = vpop.xlane.xlu0 %1758 }
 0x52f   : > { %3108 = vrcp.f32 %v1759_v49 }
 0x532   : > { %v1756_v50 = vpop.xlane.xlu0 %1755 }
 0x533   : > { %3110 = vrcp.f32 %v1756_v50 }
 0x535   : > { %v3107_v51 = vpop.eup %3106 }
 0x536   : > { %v1767_v52 = vmul.f32 %v3107_v51, %v3099_v5  ;;  %v1762_v54 = vpop.xlane.xlu0 %1761 }
 0x537   : > { %3112 = vrcp.f32 %v1762_v54  ;;  %v1159_v54 = vld [vmem:[%s667_s7] sm:$0xff]  ;;  %s2559_s7 = sshll.u32 %s3825_s24, 4  ;;  %s3935_s7 = int_to_ptr.vmem [resolvable:$true] %s2559_s7 }
 0x538   : > { %1771 = vst.msk [vmem:[%s3825_s24] sm:$0xff] %vm1001_vm2, %v1767_v52  ;;  %2889 = vmatmul.mubr.msk.f32.vlgmr.msra.gmra.mrb[4].mxu0 %vm1001_vm2, %v1767_v52 }
 0x539   : > { %v3109_v56 = vpop.eup %3108  ;;  %2897 = vmatpush3.msra.mxu0 %v1777_v55  ;;  %2898 = vmatprep.mubr.msk.f32.mxu0 %vm3330_vm1, %v3331_v21 }
 0x53a   : > { %v1769_v57 = vmul.f32 %v3109_v56, %v3101_v14  ;;  %2965 = vmatprep.subr.bf16.mxu0 %v3329_v15 }
 0x53c   : > { %1773 = vst.msk [vmem:[%s3825_s24 + $0x10] sm:$0xff] %vm1001_vm2, %v1769_v57  ;;  %2899 = vmatmul.mubr.msk.f32.vlgmr.msra.gmra.mrb[6].mxu0 %vm1001_vm2, %v1769_v57 }
 0x53d   : > { %v3111_v58 = vpop.eup %3110  ;;  %2914 = vmatprep.mubr.msk.f32.mxu0 %vm3330_vm1, %v3331_v21  ;;  %2967 = vmatpush3.bf16.msra.mxu0 %v2966_v3 }
 0x53e   : > { %v1768_v59 = vmul.f32 %v3111_v58, %v3103_v22  ;;  %2968 = vmatprep.subr.bf16.mxu0 %v3329_v15 }
 0x540   : > { %1772 = vst.msk [vmem:[%s3825_s24 + $0x8] sm:$0xff] %vm1001_vm2, %v1768_v59  ;;  %2894 = vmatmul.mubr.msk.f32.vlgmr.msra.gmra.mrb[10].mxu1 %vm1001_vm2, %v1768_v59 }
 0x541   : > { %v3113_v61 = vpop.eup %3112  ;;  %2902 = vmatpush3.msra.mxu1 %v1778_v60  ;;  %2903 = vmatprep.mubr.msk.f32.mxu1 %vm3330_vm1, %v3331_v21  ;;  %v2767_v60 = vld [vmem:[%s4080_s1] ss:$0 sm:$0xff]  ;;  %s4085_s1 = sld [smem:[#allocation30_spill]] }
 0x542   : > { %v1770_v62 = vmul.f32 %v3113_v61, %v3105_v32  ;;  %2971 = vmatprep.subr.bf16.mxu1 %v3329_v15  ;;  %v2969_v32 = vpack.c.bf16 %v2227_v27, %v2226_v26  ;;  %v2433_v26 = vld [vmem:[%s4083_s21] sm:$0xff]  ;;  %v2434_v27 = vld [vmem:[%s4083_s21 + $0x8] sm:$0xff] }
 0x544   : > { %1774 = vst.msk [vmem:[%s3825_s24 + $0x18] sm:$0xff] %vm1001_vm2, %v1770_v62  ;;  %2904 = vmatmul.mubr.msk.f32.vlgmr.msra.gmra.mrb[12].mxu1 %vm1001_vm2, %v1770_v62  ;;  %2970 = vmatpush3.bf16.msra.mxu0 %v2969_v32  ;;  %v2437_v32 = vld [vmem:[%s4083_s21 + $0x20] sm:$0xff] }
 0x545   : > { %2925 = vmatprep.mubr.msk.f32.mxu1 %vm3330_vm1, %v3331_v21  ;;  %2977 = vmatprep.subr.bf16.mxu0 %v3329_v15 }
 0x60b   : > { %v1848_v4 = vpop.f32.mrb[4].mxu0 }
 0x60c   : > { %v2890_v5 = vpop.f32.mrb[5].mxu0 }
 0x60f   : > { %v1994_v6 = vpop.f32.mrb[6].mxu0 }
 0x610   : > { %v2071_v7 = vcombine.low %v1848_v4, %v1994_v6  ;;  %v2072_v9 = vcombine.high %v1848_v4, %v1994_v6  ;;  %v2900_v10 = vpop.f32.mrb[7].mxu0 }
 0x612   : > { %v2079_v17 = vrot.slane %v2071_v7, %v3724_v1  ;;  %v2086_v18 = vrot.slane %v2072_v9, %v3724_v1 }
 0x613   : > { %v1921_v11 = vpop.f32.mrb[10].mxu1 }
 0x614   : > { %v2895_v12 = vpop.f32.mrb[11].mxu1 }
 0x615   : > { %v2345_v12 = vld [vmem:[#allocation9 + $0x8] sm:$0xff] }
 0x617   : > { %v2067_v53 = vpop.f32.mrb[12].mxu1 }
 0x618   : > { %v2087_v13 = vcombine.low %v1921_v11, %v2067_v53  ;;  %v2088_v14 = vcombine.high %v1921_v11, %v2067_v53  ;;  %v2905_v16 = vpop.f32.mrb[13].mxu1  ;;  %v2344_v11 = vld [vmem:[#allocation9] sm:$0xff] }
 0x619   : > { %v2972_v53 = vpack.c.bf16 %v2345_v12, %v2344_v11 }
 0x61a   : > { %v2095_v19 = vrot.slane %v2087_v13, %v3724_v1  ;;  %v2102_v20 = vrot.slane %v2088_v14, %v3724_v1  ;;  %v2347_v13 = vld [vmem:[#allocation9 + $0x18] sm:$0xff] }
 0x61b   : > { %2973 = vmatpush3.bf16.msra.mxu1 %v2972_v53 }
 0x61c   : > { %v2103_v22 = vcombine.low %v2079_v17, %v2095_v19  ;;  %v2104_v23 = vcombine.high %v2079_v17, %v2095_v19  ;;  %v2119_v24 = vcombine.low %v2086_v18, %v2102_v20  ;;  %v2120_v25 = vcombine.high %v2086_v18, %v2102_v20  ;;  %2974 = vmatprep.subr.bf16.mxu1 %v3329_v15 }
 0x61e   : > { %v2111_v28 = vrot.slane %v2103_v22, %v3726_v8  ;;  %v2118_v29 = vrot.slane %v2104_v23, %v3726_v8  ;;  %v2127_v30 = vrot.slane %v2119_v24, %v3726_v8  ;;  %v2134_v31 = vrot.slane %v2120_v25, %v3726_v8  ;;  %v2770_v23 = vld [vmem:[%s4082_s23] ss:$0 sm:$0xff]  ;;  %s2782_s23 = sshll.u32 %s3314_s27, 9 }
 0x61f   : > { %s3933_s18 = scalar_lea.hbm %s4085_s1, %s2782_s23 }
 0x620   : > { %v2139_v33 = vcombine.low %v2111_v28, %v2118_v29  ;;  %v2765_v34 = vcombine.high %v2111_v28, %v2118_v29  ;;  %v2155_v35 = vcombine.low %v2127_v30, %v2134_v31  ;;  %v2766_v36 = vcombine.high %v2127_v30, %v2134_v31  ;;  %v2435_v29 = vld [vmem:[%s4083_s21 + $0x10] sm:$0xff]  ;;  %v2436_v30 = vld [vmem:[%s4083_s21 + $0x18] sm:$0xff] }
 0x621   : > { %v2978_v28 = vpack.c.bf16 %v2434_v27, %v2433_v26  ;;  %v2981_v31 = vpack.c.bf16 %v2436_v30, %v2435_v29 }
 0x622   : > { %v2146_v37 = vrot.slane %v2139_v33, %v3724_v1  ;;  %v2154_v38 = vrot.slane %v2765_v34, %v3724_v1  ;;  %v2162_v39 = vrot.slane %v2155_v35, %v3724_v1  ;;  %v2170_v40 = vrot.slane %v2766_v36, %v3724_v1  ;;  %v2438_v33 = vld [vmem:[%s4083_s21 + $0x28] sm:$0xff]  ;;  %v2439_v35 = vld [vmem:[%s4083_s21 + $0x30] sm:$0xff]  ;;  %v2440_v36 = vld [vmem:[%s4083_s21 + $0x38] sm:$0xff] }
 0x623   : > { %v2984_v34 = vpack.c.bf16 %v2438_v33, %v2437_v32 }
 0x624   : > { %v2172_v41 = vcombine.high %v2146_v37, %v2154_v38  ;;  %v2188_v42 = vcombine.high %v2162_v39, %v2170_v40  ;;  %v2171_v43 = vcombine.low %v2146_v37, %v2154_v38  ;;  %v2187_v44 = vcombine.low %v2162_v39, %v2170_v40  ;;  %v2771_v38 = vld [vmem:[%s4084_s30] ss:$0 sm:$0xff]  ;;  %s3208_s30 = sshll.u32 %s3341_s20, 4  ;;  %s3209_s30 = int_to_ptr.vmem [resolvable:$false] %s3208_s30 }
 0x625   : > { %v2987_v37 = vpack.c.bf16 %v2440_v36, %v2439_v35  ;;  %s3210_s24 = scalar_lea.vmem %s3209_s30, 1024  ;;  %p3211_p5 = scmp.lt.s32.totalorder %s3935_s7, %s3209_s30 }
 0x626   : > { %v2186_v46 = vrot.slane %v2172_v41, %v3726_v8  ;;  %v2202_v47 = vrot.slane %v2188_v42, %v3726_v8  ;;  %v2179_v48 = vrot.slane %v2171_v43, %v3726_v8  ;;  %v2195_v49 = vrot.slane %v2187_v44, %v3726_v8 }
 0x628   : > { %v2205_v50 = vcombine.low %v2186_v46, %v2202_v47  ;;  %v2204_v1 = vcombine.high %v2179_v48, %v2195_v49  ;;  %v2206_v51 = vcombine.high %v2186_v46, %v2202_v47  ;;  %v2203_v52 = vcombine.low %v2179_v48, %v2195_v49 }
 0x62a   : > { %2212 = vrot.lane.b32.xlu0 %v2205_v50, %s3338_s19  ;;  %2208 = vrot.lane.b32.xlu1 %v2204_v1, %s3339_s17  ;;  %s4081_s19 = sld [smem:[#allocation27_spill]] }
 0x62e   : > { %2216 = vrot.lane.b32.xlu1 %v2206_v51, %s3340_s14 }
 0x630   : > { %v2769_v20 = vld [vmem:[%s4081_s19] ss:$0 sm:$0xff]  ;;  %s3204_s19 = scalar_lea.vmem %s3935_s7, 512 }
 0x631   : > { %p3205_p12 = scmp.ne.s32.totalorder %s3935_s7, %s3204_s19  ;;  %p3212_p9 = scmp.lt.s32.totalorder %s3210_s24, %s3204_s19 }
 0x632   : > { %2311 = vperm.xlu1 %3092, %v1159_v54  }
 0x633   : > { %p3206_p10 = pnand %p3205_p12, %p4086_p1  ;;  %p3213_p11 = por %p3212_p9, %p3211_p5 }
 0x635   : > { %p3207_p3 = pneg %p3206_p10 }
 0x637   : > { %p3214_p0 = pnand %p3213_p11, %p3207_p3 }
 0x69c   : > { %v2209_v55 = vpop.permute.xlu1 %2208  ;;  %v2213_v8 = vpop.permute.xlu0 %2212 }
 0x69d   : > { %v2219_v56 = vsel %vm1001_vm2, %v2203_v52, %v2209_v55 }
 0x69e   : > { %v2221_v58 = vsel %vm2220_vm4, %v2219_v56, %v2213_v8 }
 0x6a0   : > { %v2217_v57 = vpop.permute.xlu1 %2216 }
 0x6a1   : > { %v2223_v59 = vsel %vm2222_vm5, %v2221_v58, %v2217_v57 }
 0x6a2   : > { %2915 = vmatmul.mubr.msk.f32.vlgmr.msra.gmra.mrb[8].mxu0 %vm675_vm0, %v2223_v59 }
 0x6a3   : > { %2944 = vmatprep.mubr.msk.f32.mxu0 %vm3330_vm1, %v3331_v21  ;;  %2979 = vmatpush3.bf16.msra.mxu0 %v2978_v28 }
 0x6a4   : > { %2980 = vmatprep.subr.bf16.mxu0 %v3329_v15 }
 0x6a7   : > { %2982 = vmatpush3.bf16.msra.mxu0 %v2981_v31 }
 0x6a8   : > { %2983 = vmatprep.subr.bf16.mxu0 %v3329_v15 }
 0x6ab   : > { %2985 = vmatpush3.bf16.msra.mxu0 %v2984_v34 }
 0x6ac   : > { %2986 = vmatprep.subr.bf16.mxu0 %v3329_v15 }
 0x6af   : > { %2988 = vmatpush3.bf16.msra.mxu0 %v2987_v37 }
 0x6b1   : > { %v3880_v2 = vpop.permute.xlu1 %2311 }
 0x775   : > { %v2304_v61 = vpop.f32.mrb[8].mxu0 }
 0x776   : > { %v2305_v62 = vadd.f32 %v2767_v60, %v2304_v61  ;;  %v2916_v63 = vpop.f32.mrb[9].mxu0 }
 0x778   : > { %v2308_v3 = vadd.f32 %v2305_v62, %v3645_v0  ;;  %v2346_v0 = vld [vmem:[#allocation9 + $0x10] sm:$0xff] }
 0x779   : > { %v2975_v14 = vpack.c.bf16 %v2347_v13, %v2346_v0 }
 0x77a   : > { %v3884_v4 = vmul.f32 %v3880_v2, %v2308_v3 }
 0x77b   : > { %2976 = vmatpush3.bf16.msra.mxu1 %v2975_v14 }
 0x77c   : > { %v2317_v5 = vsel %vm675_vm0, %v3884_v4, 0.0 }
 0x77d   : > { %2318 = vadd.xlane.f32.xlu1 %v2317_v5 }
 0x80a   : > { %v2319_v6 = vpop.xlane.xlu1 %2318 }
 0x80b   : > { %v2320_v21 = vmul.f32 0.03125, %v2319_v6 }
 0x80d   : > { %v2321_v7 = vsub.f32 %v3884_v4, %v2320_v21 }
 0x80f   : > { %v2322_v9 = vmul.f32 %v2321_v7, %v2321_v7 }
 0x811   : > { %v2323_v10 = vsel %vm675_vm0, %v2322_v9, 0.0 }
 0x812   : > { %2324 = vadd.xlane.f32.xlu0 %v2323_v10 }
 0x89f   : > { %v2325_v16 = vpop.xlane.xlu0 %2324 }
 0x8a0   : > { %v2326_v17 = vmul.f32 0.03125, %v2325_v16 }
 0x8a2   : > { %v2327_v18 = vadd.f32 1e-06, %v2326_v17 }
 0x8a4   : > { %3114 = vrsqrt.f32 %v2327_v18 }
 0x8ae   : > { %v3115_v19 = vpop.eup %3114 }
 0x8af   : > { %v2329_v22 = vmul.f32 %v3115_v19, %v2321_v7 }
 0x8b1   : > { %v2336_v24 = vmul.f32 %v2769_v20, %v2329_v22 }
 0x8b3   : > { %v2343_v25 = vadd.f32 %v2770_v23, %v2336_v24 }
 0x8b5   : > { %2926 = vmatmul.mubr.msk.f32.vlgmr.msra.gmra.mrb[14].mxu1 %vm675_vm0, %v2343_v25 }
 0x988   : > { %v2424_v39 = vpop.f32.mrb[14].mxu1 }
 0x989   : > { %v2425_v40 = vadd.f32 %v2771_v38, %v2424_v39  ;;  %v2927_v15 = vpop.f32.mrb[15].mxu1 }
 0x98b   : > { %v2429_v41 = vmul.f32 0.70710677, %v2425_v40  ;;  %v2428_v43 = vmul.f32 0.5, %v2425_v40 }
 0x98d   : > { %3116 = verf.f32 %v2429_v41 }
 0x997   : > { %v3117_v42 = vpop.eup %3116 }
 0x998   : > { %v2431_v44 = vadd.f32 1.0, %v3117_v42 }
 0x99a   : > { %v2432_v45 = vmul.f32 %v2431_v44, %v2428_v43 }
 0x99c   : > { %2945 = vmatmul.mubr.msk.f32.vlgmr.msra.gmra.mrb[10].mxu0 %vm2448_vm6, %v2432_v45 }
 0x99d   : > { %3217 = shalt.err (!%p3214_p0)
}
 0x99e   : > { %s3218_s23 = scalar_lea.hbm %s3933_s18, 512  ;;  %s3222_s20 = scalar_lea.hbm %s4085_s1, 1024 }
 0x99f   : > { %p3219_p4 = scmp.ne.s32.totalorder %s3933_s18, %s3218_s23  ;;  %p3223_p7 = scmp.lt.u32.totalorder %s3933_s18, %s4085_s1 }
 0x9a0   : > { %p3224_p2 = scmp.lt.u32.totalorder %s3222_s20, %s3218_s23  ;;  %p3226_p12 = scmp.lt.u32.totalorder %s3218_s23, %s3933_s18 }
 0x9a1   : > { %p3220_p13 = pnand %p3219_p4, %p4086_p1 }
 0x9a2   : > { %p3225_p8 = por %p3224_p2, %p3223_p7 }
 0x9a3   : > { %p3221_p6 = pneg %p3220_p13 }
 0x9a4   : > { %p3227_p10 = por %p3226_p12, %p3225_p8 }
 0x9a6   : > { %p3228_p3 = pnand %p3227_p10, %p3221_p6 }
 0x9a8   : > { %3231 = shalt.err (!%p3228_p3)
}
 0x9a9   : > { %s3342_s19 = smov 128   ;;  %s4087_s14 = sld [smem:[#allocation26_spill]] }
 0x9aa   : > { %3000 = dma.vmem_to_hbm [thread:$0]  (%p4086_p1), %s3935_s7, 512, %s3933_s18, %s2531_s22, %s3342_s19, %s3342_s19, %s3339_s17  }
 0x9ab   : > { %s2777_s23 = sshll.u32 %s3314_s27, 7  ;;  %s4088_s16 = sshll.u32 %s3619_s13, 3 }
 0x9ac   : > { %s649_s20 = scalar_lea.vmem [#allocation10], %s4088_s16  ;;  %s4089_s3 = sld [smem:[#allocation29_spill]] }
 0x9ad   : > { %s2545_s30 = sshll.u32 %s649_s20, 4  ;;  %s2526_s27 = scalar_lea.sflag [#allocation6], %s3619_s13  ;;  %s3975_s30 = int_to_ptr.vmem [resolvable:$true] %s2545_s30 }
 0x9ae   : > { %s3232_s7 = scalar_lea.vmem %s3975_s30, 128  ;;  %s3343_s18 = smov [#allocation10]  }
 0x9af   : > { %v2773_v46 = vld [vmem:[%s4087_s14] ss:$0 sm:$0xff]  ;;  %p3233_p5 = scmp.ne.s32.totalorder %s3975_s30, %s3232_s7  ;;  %s3236_s22 = sshll.u32 %s3343_s18, 4  ;;  %s3237_s22 = int_to_ptr.vmem [resolvable:$false] %s3236_s22 }
 0x9b0   : > { %s3238_s19 = scalar_lea.vmem %s3237_s22, 256  ;;  %p3239_p0 = scmp.lt.s32.totalorder %s3975_s30, %s3237_s22 }
 0x9b1   : > { %p3234_p9 = pnand %p3233_p5, %p4086_p1  ;;  %p3240_p4 = scmp.lt.s32.totalorder %s3238_s19, %s3232_s7 }
 0x9b2   : > { %s3973_s17 = scalar_lea.hbm %s4089_s3, %s2777_s23 }
 0x9b3   : > { %p3235_p11 = pneg %p3234_p9  ;;  %p3241_p13 = por %p3240_p4, %p3239_p0 }
 0x9b5   : > { %p3242_p6 = pnand %p3241_p13, %p3235_p11 }
 0xa6f   : > { %v2518_v47 = vpop.f32.mrb[10].mxu0 }
 0xa70   : > { %v2519_v48 = vadd.f32 %v2773_v46, %v2518_v47  ;;  %v2946_v49 = vpop.f32.mrb[11].mxu0 }
 0xa72   : > { %v2522_v50 = vadd.f32 %v2519_v48, %v3884_v4 }
 0xa74   : > { %v2523_v1 = vmul.f32 %v2522_v50, %v3880_v2 }
 0xa76   : > { %2524 = vst.msk [vmem:[%s649_s20] sm:$0xff] %vm675_vm0, %v2523_v1 }
 0xa77   : > { %3245 = shalt.err (!%p3242_p6)
}
 0xa78   : > { %s3246_s2 = scalar_lea.hbm %s3973_s17, 128  ;;  %s3250_s11 = scalar_lea.hbm %s4089_s3, 256 }
 0xa79   : > { %p3247_p7 = scmp.ne.s32.totalorder %s3973_s17, %s3246_s2  ;;  %p3251_p12 = scmp.lt.u32.totalorder %s3973_s17, %s4089_s3 }
 0xa7a   : > { %p3252_p10 = scmp.lt.u32.totalorder %s3250_s11, %s3246_s2  ;;  %p3254_p5 = scmp.lt.u32.totalorder %s3246_s2, %s3973_s17 }
 0xa7b   : > { %p3248_p2 = pnand %p3247_p7, %p4086_p1 }
 0xa7c   : > { %p3253_p3 = por %p3252_p10, %p3251_p12 }
 0xa7d   : > { %p3249_p8 = pneg %p3248_p2 }
 0xa7e   : > { %p3255_p9 = por %p3254_p5, %p3253_p3 }
 0xa80   : > { %p3256_p11 = pnand %p3255_p9, %p3249_p8 }
 0xa82   : > { %3259 = shalt.err (!%p3256_p11)
}
 0xa83   : > { %2999 = dma.vmem_to_hbm [thread:$0]  (%p4086_p1), %s3975_s30, 128, %s3973_s17, %s2526_s27  }
 0xa84 PF: > { %s4090_s23 = sld [smem:[#allocation17_spill]]  ;;  %s4091_s16 = sld [smem:[#allocation18_spill]] }
 0xa85   : > { %p4093_p4 = scmp.ge.s32.totalorder %s3322_s29, 2 }
 0xa8a   : > { %s2574_s20 = sand.u32 1, %s4090_s23   ;;  %p4092_p0 = scmp.ne.s32.totalorder %s4091_s16, 0 }
 0xa8b   : > { %s2575_s7 = scalar_lea.sflag [#allocation6], %s2574_s20 }
 0xa8c   : > { %p3015_p13 = pnand %p4093_p4, %p4092_p0 }
 0xa8e   : > { %3293 = dma.done.wait (!%p3015_p13), %s2575_s7, 128  }
 0xa8f   : > { %3295 = vsyncadd (!%p3015_p13), %s2575_s7, 4294967168  ;;  %s2584_s18 = scalar_lea.sflag [#allocation12], %s2574_s20 }
 0xa90   : > { %3297 = dma.done.wait (!%p3015_p13), %s2584_s18, 512  }
 0xa91   : > { %3299 = vsyncadd (!%p3015_p13), %s2584_s18, 4294966784  ;;  %s38_s29 = sadd.s32 1, %s3322_s29   ;;  %s4094_s24 = smov %s3306_s25 }
 0xa92   : > { %p35_p6 = scmp.ge.s32.totalorder %s38_s29, 4   ;;  %s4095_s25 = smov %s3310_s26 }
 0xa93   : > { %s4096_s26 = smov %s3576_s12  ;;  %s4097_s27 = smov %s3318_s28 }
 0xa94   : > { %s4098_s28 = smov %s4100_s15  ;;  %37 = sbr.rel (!%p35_p6) target bundleno = 22 (0x16), region = 165 }
 0xa9b   :  { %2589 = vsyncpa [#allocation5], 1 }
 0xa9c   :  { %2591 = vsyncpa [#allocation5 + $0x1], 1 }
 0xa9d   :  { %2592 = vsyncpa [#allocation8], 1 }
 0xa9e   :  { %2593 = vsyncpa [#allocation6], 1 }
 0xa9f   :  { %2595 = vsyncpa [#allocation6 + $0x1], 1 }
 0xaa0   :  { %2596 = vsyncpa [#allocation12], 1 }
 0xaa1   :  { %2598 = vsyncpa [#allocation12 + $0x1], 1 }

// kernel: tpu_custom_call.1
= control target key start
LH: loop header
LB: loop body
LE: loop exit
PB: predicated region body
PF: predicated region fallthrough
CT: control target
= control target key end

     0   :  { %s4023_s0 = inlined_call_operand.vmem [shape: f32[2,8,32], index: 0, kind: input, shape index: {}]   ;;  %s4024_s1 = inlined_call_operand.vmem [shape: f32[2,8,1], index: 1, kind: input, shape index: {}]   ;;  %s4025_s2 = inlined_call_operand.hbm [shape: f32[2,8,8], index: 2, kind: input, shape index: {}]   ;;  %s4026_s3 = inlined_call_operand.vmem [shape: f32[32,32], index: 3, kind: input, shape index: {}]   ;;  %s4027_s4 = inlined_call_operand.vmem [shape: f32[32,32], index: 4, kind: input, shape index: {}]   ;;  %s4028_s5 = inlined_call_operand.vmem [shape: f32[32,32], index: 5, kind: input, shape index: {}]   ;;  %s4029_s6 = inlined_call_operand.hbm [shape: f32[32,32], index: 6, kind: input, shape index: {}]   ;;  %s4030_s7 = inlined_call_operand.vmem [shape: f32[1,32], index: 7, kind: input, shape index: {}]   ;;  %s4031_s8 = inlined_call_operand.vmem [shape: f32[1,32], index: 8, kind: input, shape index: {}]   ;;  %s4032_s9 = inlined_call_operand.vmem [shape: f32[1,32], index: 9, kind: input, shape index: {}]   ;;  %s4033_s10 = inlined_call_operand.hbm [shape: f32[32,64], index: 10, kind: input, shape index: {}]   ;;  %s4034_s11 = inlined_call_operand.vmem [shape: f32[1,64], index: 11, kind: input, shape index: {}]   ;;  %s4035_s12 = inlined_call_operand.vmem [shape: f32[64,32], index: 12, kind: input, shape index: {}]   ;;  %s4036_s13 = inlined_call_operand.vmem [shape: f32[1,32], index: 13, kind: input, shape index: {}]   ;;  %s4037_s14 = inlined_call_operand.vmem [shape: f32[1,32], index: 14, kind: input, shape index: {}]   ;;  %s4038_s15 = inlined_call_operand.vmem [shape: f32[1,32], index: 15, kind: input, shape index: {}]   ;;  %s4039_s16 = inlined_call_operand.hbm [shape: f32[2,8,32], index: 16, kind: output, shape index: {0}]   ;;  %s4040_s17 = inlined_call_operand.hbm [shape: f32[2,4,8,8], index: 17, kind: output, shape index: {1}]  }
   0x1   :  { %4052 = sst [smem:[#allocation19_spill]] %s4023_s0 }
   0x2   :  { %4053 = sst [smem:[#allocation20_spill]] %s4024_s1 }
   0x3   :  { %4054 = sst [smem:[#allocation21_spill]] %s4025_s2 }
   0x4   :  { %4055 = sst [smem:[#allocation22_spill]] %s4026_s3 }
   0x5   :  { %4056 = sst [smem:[#allocation23_spill]] %s4030_s7 }
   0x6   :  { %4057 = sst [smem:[#allocation24_spill]] %s4034_s11 }
   0x7   :  { %4058 = sst [smem:[#allocation25_spill]] %s4035_s12 }
   0x8   :  { %4059 = sst [smem:[#allocation26_spill]] %s4036_s13 }
   0x9   :  { %4060 = sst [smem:[#allocation27_spill]] %s4037_s14 }
   0xa   :  { %4061 = sst [smem:[#allocation28_spill]] %s4038_s15 }
   0xb   :  { %4062 = sst [smem:[#allocation29_spill]] %s4039_s16 }
   0xc   :  { %4063 = sst [smem:[#allocation30_spill]] %s4040_s17 }
   0xd   :  { %23 = vsyncpa [#allocation5], 0 }
   0xe   :  { %25 = vsyncpa [#allocation5 + $0x1], 0 }
   0xf   :  { %26 = vsyncpa [#allocation8], 0 }
  0x10   :  { %27 = vsyncpa [#allocation6], 0 }
  0x11   :  { %29 = vsyncpa [#allocation6 + $0x1], 0 }
  0x12   :  { %30 = vsyncpa [#allocation12], 0 }
  0x13   :  { %32 = vsyncpa [#allocation12 + $0x1], 0  ;;  %s3434_s24 = smov 0   ;;  %s3436_s25 = smov 0  }
  0x14   :  { %s3438_s26 = smov 0   ;;  %s3440_s27 = smov 0  }
  0x15   :  { %s3442_s28 = smov 0   ;;  %s3444_s29 = smov 0  }
  0x16 LB: > { %4064 = sst [smem:[#allocation17_spill]] %s3302_s24  ;;  %s2724_s0 = sadd.s32 4294967295, %s3322_s29   ;;  %s3322_s29 = sphi %s3444_s29, %s38_s29   ;;  %s3318_s28 = sphi %s3442_s28, %s4098_s28   ;;  %s3314_s27 = sphi %s3440_s27, %s4097_s27   ;;  %s3310_s26 = sphi %s3438_s26, %s4096_s26   ;;  %s3306_s25 = sphi %s3436_s25, %s4095_s25   ;;  %s3302_s24 = sphi %s3434_s24, %s4094_s24  }
  0x17   : > { %s2725_s30 = sadd.s32 4294967294, %s3322_s29   ;;  %p126_p0 = scmp.ne.s32.totalorder %s3306_s25, %s3302_s24 }
  0x18   : > { %p3468_p1 = scmp.eq.s32.totalorder %s2724_s0, 0  ;;  %p3472_p2 = scmp.eq.s32.totalorder %s2724_s0, 1 }
  0x19   : > { %p431_p3 = scmp.eq.s32.totalorder %s2725_s30, 1  ;;  %p2726_p5 = scmp.ge.s32.totalorder %s3322_s29, 1 }
  0x1a   : > { %s4065_s18 = scalar_select %p3468_p1, 1, 0 }
  0x1b   : > { %p3478_p4 = por %p3468_p1, %p126_p0  ;;  %p3483_p6 = por %p431_p3, %p126_p0 }
  0x1c   : > { %p466_p7 = scmp.lt.s32.totalorder %s3322_s29, 3  ;;  %s3324_s22 = smov [#allocation7]  }
  0x1d   : > { %s4067_s1 = scalar_select %p3478_p4, 1, 0 }
  0x1e   : > { %s4068_s20 = scalar_select %p3483_p6, 1, 0 }
  0x1f   : > { %p3488_p8 = pnand %p2726_p5, %p466_p7  ;;  %s487_s23 = sshll.u32 %s3324_s22, 4  ;;  %s3492_s23 = int_to_ptr.vmem [resolvable:$true] %s487_s23 }
  0x20   : > { %4069 = sst [smem:[#allocation18_spill]] %s4068_s20  ;;  %s3325_s30 = smov [#allocation9]  }
  0x21   : > { %p3003_p9 = pneg %p3488_p8  ;;  %s509_s20 = sshll.u32 %s3325_s30, 4  ;;  %s3503_s20 = int_to_ptr.vmem [resolvable:$true] %s509_s20 }
  0x22   : > { %s3118_s22 = scalar_lea.hbm %s4029_s6, 512 }
  0x23   : > { %p3499_p11 = pnand %p3003_p9, %p3468_p1  ;;  %p3119_p12 = scmp.ne.s32.totalorder %s4029_s6, %s3118_s22 }
  0x24   : > { %p3125_p5 = scmp.lt.u32.totalorder %s3118_s22, %s4029_s6 }
  0x25   : > { %p3120_p13 = pneg %p3499_p11 }
  0x27   : > { %p3121_p0 = pnand %p3120_p13, %p3119_p12 }
  0x29   : > { %p3122_p3 = pneg %p3121_p0 }
  0x2b   : > { %p3127_p7 = pnand %p3125_p5, %p3122_p3 }
  0x2d   : > { %3130 = shalt.err (!%p3127_p7)
}
  0x2e   : > { %s3131_s16 = scalar_lea.vmem %s3492_s23, 512  ;;  %p3139_p1 = scmp.lt.s32.totalorder %s3492_s23, %s3492_s23 }
  0x2f   : > { %p3132_p9 = scmp.ne.s32.totalorder %s3492_s23, %s3131_s16  ;;  %p3140_p12 = scmp.lt.s32.totalorder %s3131_s16, %s3131_s16 }
  0x31   : > { %p3134_p10 = pnand %p3132_p9, %p3120_p13  ;;  %p3141_p0 = por %p3140_p12, %p3139_p1 }
  0x33   : > { %p3135_p6 = pneg %p3134_p10 }
  0x35   : > { %p3142_p4 = pnand %p3141_p0, %p3135_p6 }
  0x37   : > { %3145 = shalt.err (!%p3142_p4)
}
  0x38   : > { %s3326_s11 = smov 128   ;;  %s3327_s12 = smov 8  }
  0x39   : > { %3006 = dma.hbm_to_vmem [thread:$0]  (!%p3499_p11), %s4029_s6, 512, %s3492_s23, [#allocation8], %s3326_s11, %s3326_s11, %s3327_s12  }
  0x3a   : > { %s3146_s22 = scalar_lea.hbm %s4033_s10, 512 }
  0x3b   : > { %p3147_p1 = scmp.ne.s32.totalorder %s4033_s10, %s3146_s22  ;;  %p3153_p10 = scmp.lt.u32.totalorder %s3146_s22, %s4033_s10 }
  0x3d   : > { %p3149_p4 = pnand %p3147_p1, %p3120_p13 }
  0x3f   : > { %p3150_p6 = pneg %p3149_p4 }
  0x41   : > { %p3155_p3 = pnand %p3153_p10, %p3150_p6 }
  0x43   : > { %3158 = shalt.err (!%p3155_p3)
}
  0x44   : > { %s3159_s23 = scalar_lea.vmem %s3503_s20, 512  ;;  %p3167_p12 = scmp.lt.s32.totalorder %s3503_s20, %s3503_s20 }
  0x45   : > { %p3160_p5 = scmp.ne.s32.totalorder %s3503_s20, %s3159_s23  ;;  %p3168_p0 = scmp.lt.s32.totalorder %s3159_s23, %s3159_s23 }
  0x47   : > { %p3162_p7 = pnand %p3160_p5, %p3120_p13  ;;  %p3169_p1 = por %p3168_p0, %p3167_p12 }
  0x49   : > { %p3163_p9 = pneg %p3162_p7 }
  0x4b   : > { %p3170_p4 = pnand %p3169_p1, %p3163_p9 }
  0x4d   : > { %3173 = shalt.err (!%p3170_p4)
}
  0x4e   : > { %3009 = dma.hbm_to_vmem [thread:$0]  (!%p3499_p11), %s4033_s10, 512, %s3503_s20, [#allocation8], %s3326_s11, %s3326_s11, %s3327_s12  }
  0x4f   : > { %s50_s15 = sadd.s32 1, %s3318_s28  ;;  %s113_s13 = sadd.s32 1, %s3310_s26 }
  0x50   : > { %p52_p13 = scmp.ge.s32.totalorder %s50_s15, 2  ;;  %p120_p6 = scmp.ne.s32.totalorder %s3310_s26, %s3306_s25 }
  0x51   : > { %p121_p10 = scmp.eq.s32.totalorder %s3322_s29, 0  ;;  %p3023_p3 = scmp.lt.s32.totalorder %s3322_s29, 2 }
  0x52   : > { %s4100_s15 = smov (%p52_p13, %s50_s15), 0  ;;  %p3567_p7 = por %p3472_p2, %p120_p6 }
  0x53   : > { %p122_p5 = por %p121_p10, %p120_p6  ;;  %s108_s17 = ssub.s32 %s3318_s28, %s4100_s15 }
  0x54   : > { %s4072_s0 = scalar_select %p3567_p7, 1, 0 }
  0x55   : > { %s555_s24 = sand.u32 1, %s3310_s26   ;;  %p111_p9 = scmp.eq.s32.totalorder %s108_s17, 0 }
  0x56   : > { %s2730_s20 = sshll.u32 %s555_s24, 3  ;;  %s2731_s11 = sshll.u32 %s3318_s28, 7 }
  0x57   : > { %s3576_s12 = scalar_select %p111_p9, %s3310_s26, %s113_s13  }
  0x58   : > { %s4073_s2 = sld [smem:[#allocation21_spill]]  ;;  %s559_s19 = scalar_lea.vmem [#allocation4], %s2730_s20 }
  0x59   : > { %s567_s23 = sshll.u32 %s559_s19, 4  ;;  %p3585_p2 = pnand %p3023_p3, %p122_p5  ;;  %s3589_s23 = int_to_ptr.vmem [resolvable:$true] %s567_s23 }
  0x5a   : > { %s556_s14 = scalar_lea.sflag [#allocation5], %s555_s24 }
  0x5b   : > { %p3176_p12 = pneg %p3585_p2 }
  0x5e   : > { %s3581_s16 = scalar_lea.hbm %s4073_s2, %s2731_s11  ;;  %s3179_s11 = scalar_lea.hbm %s4073_s2, 256 }
  0x5f   : > { %s3174_s13 = scalar_lea.hbm %s3581_s16, 128  ;;  %p3180_p4 = scmp.lt.u32.totalorder %s3581_s16, %s4073_s2 }
  0x60   : > { %p3175_p11 = scmp.ne.s32.totalorder %s3581_s16, %s3174_s13  ;;  %p3181_p13 = scmp.lt.u32.totalorder %s3179_s11, %s3174_s13 }
  0x61   : > { %p3183_p10 = scmp.lt.u32.totalorder %s3174_s13, %s3581_s16 }
  0x62   : > { %p3177_p0 = pnand %p3176_p12, %p3175_p11  ;;  %p3182_p6 = por %p3181_p13, %p3180_p4 }
  0x64   : > { %p3178_p1 = pneg %p3177_p0  ;;  %p3184_p3 = por %p3183_p10, %p3182_p6 }
  0x66   : > { %p3185_p5 = pnand %p3184_p3, %p3178_p1 }
  0x68   : > { %3188 = shalt.err (!%p3185_p5)
}
  0x69   : > { %s3189_s24 = scalar_lea.vmem %s3589_s23, 128  ;;  %s3328_s19 = smov [#allocation4]  }
  0x6a   : > { %p3190_p9 = scmp.ne.s32.totalorder %s3589_s23, %s3189_s24  ;;  %s3194_s17 = sshll.u32 %s3328_s19, 4  ;;  %s3195_s17 = int_to_ptr.vmem [resolvable:$false] %s3194_s17 }
  0x6b   : > { %s3196_s20 = scalar_lea.vmem %s3195_s17, 256  ;;  %p3197_p7 = scmp.lt.s32.totalorder %s3589_s23, %s3195_s17 }
  0x6c   : > { %p3192_p11 = pnand %p3190_p9, %p3176_p12  ;;  %p3198_p4 = scmp.lt.s32.totalorder %s3196_s20, %s3189_s24 }
  0x6e   : > { %p3193_p0 = pneg %p3192_p11  ;;  %p3199_p13 = por %p3198_p4, %p3197_p7 }
  0x70   : > { %p3200_p6 = pnand %p3199_p13, %p3193_p0 }
  0x72   : > { %3203 = shalt.err (!%p3200_p6)
}
  0x73   : > { %3013 = dma.hbm_to_vmem [thread:$0]  (!%p3585_p2), %s3581_s16, 128, %s3589_s23, %s556_s14  }
  0x74   : > { %576 = sbr.rel (%p3488_p8) target bundleno = 2692 (0xa84), region = 84  ;;  %s3619_s13 = sand.u32 (!%p3488_p8), 1, %s3306_s25  }
  0x75   : > { %s4050_s11 = sshll.u32 (!%p3488_p8), %s3619_s13, 3  ;;  %s579_s30 = scalar_lea.sflag (!%p3488_p8), [#allocation5], %s3619_s13 }
  0x76   : > { %s3625_s22 = scalar_lea.vmem (!%p3488_p8), [#allocation4], %s4050_s11  ;;  %p4075_p7 = scmp.ne.s32.totalorder (!%p3488_p8), %s4067_s1, 0 }
  0x7b   : > { %3285 = dma.done.wait (%p4075_p7), %s579_s30, 128  }
  0x7c   : > { %3287 = vsyncadd (%p4075_p7), %s579_s30, 4294967168  ;;  %p4076_p2 = scmp.ne.s32.totalorder %s4065_s18, 0 }
  0x7e   : > { %3289 = dma.done.wait (%p4076_p2), [#allocation8], 1024  }
  0x7f   : > { %3291 = vsyncadd (%p4076_p2), [#allocation8], 4294966272  ;;  %p657_p8 = scmp.lt.s32.totalorder %s3314_s27, 1  ;;  %s4077_s14 = sld [smem:[#allocation19_spill]]  ;;  %vm675_vm0 = vcmask 261120   ;;  %v704_v12 = vld [vmem:[%s4027_s4] sm:$0xff]  ;;  %v870_v57 = vlaneseq }
  0x80   : > { %v705_v13 = vld [vmem:[%s4027_s4 + $0x8] sm:$0xff]  ;;  %v706_v14 = vld [vmem:[%s4027_s4 + $0x10] sm:$0xff]  ;;  %v3329_v15 = vmov 0.0|0.0   ;;  %v707_v17 = vld [vmem:[%s4027_s4 + $0x18] sm:$0xff]  ;;  %s4078_s3 = sld [smem:[#allocation22_spill]]  ;;  %vm3330_vm1 = vmmov 0  }
  0x81   : > { %s3637_s21 = scalar_select %p657_p8, %s3314_s27, 1  ;;  %2947 = vmatprep.subr.bf16.mxu1 %v3329_v15  ;;  %v2948_v16 = vpack.c.bf16 %v705_v13, %v704_v12  ;;  %2959 = vmatprep.subr.bf16.mxu0 %v3329_v15  ;;  %v3331_v21 = vmov 0.0   ;;  %v2951_v22 = vpack.c.bf16 %v707_v17, %v706_v14  ;;  %v2740_v33 = vld [vmem:[%s4031_s8] ss:$0 sm:$0xff]  ;;  %v782_v36 = vld [vmem:[%s4028_s5 + $0x8] sm:$0xff]  ;;  %v783_v42 = vld [vmem:[%s4028_s5 + $0x10] sm:$0xff] }
  0x82   : > { %2841 = vmatprep.mubr.msk.f32.mxu1 %vm3330_vm1, %v3331_v21  ;;  %2863 = vmatprep.mubr.msk.f32.mxu0 %vm3330_vm1, %v3331_v21  ;;  %v781_v35 = vld [vmem:[%s4028_s5] sm:$0xff]  ;;  %v784_v43 = vld [vmem:[%s4028_s5 + $0x18] sm:$0xff]  ;;  %s3334_s18 = smov 104   ;;  %v3335_v55 = vmov 1983009808   ;;  %v871_v61 = vshrl.u32 %v870_v57, 7 }
  0x83   : > { %s2738_s16 = sshll.u32 %s3637_s21, 3  ;;  %2949 = vmatpush3.bf16.msra.mxu1 %v2948_v16  ;;  %v2741_v37 = vld [vmem:[%s4032_s9] ss:$0 sm:$0xff]  ;;  %v2954_v40 = vpack.c.bf16 %v782_v36, %v781_v35  ;;  %v2957_v46 = vpack.c.bf16 %v784_v43, %v783_v42  ;;  %v868_v56 = vunpack.c.l.s4 %v3335_v55  ;;  %v3336_v58 = vmov 1934713408   ;;  %s3338_s19 = smov 16  }
  0x84   : > { %2950 = vmatprep.subr.bf16.mxu1 %v3329_v15  ;;  %v900_v59 = vunpack.c.l.s4 %v3336_v58  ;;  %vm1001_vm2 = vcmask 64512   ;;  %s3339_s17 = smov 8   ;;  %s4079_s23 = sld [smem:[#allocation20_spill]]  ;;  %vm2220_vm4 = vcmask 130048   ;;  %vm2222_vm5 = vcmask 195584  }
  0x85   : > { %s660_s1 = scalar_lea.vmem %s4077_s14, %s2738_s16  ;;  %s3332_s14 = smov 120   ;;  %v869_v60 = vunpack.c.0.s8 %v868_v56  ;;  %vm2448_vm6 = vcmask 523264  }
  0x86   : > { %v3645_v0 = vld [vmem:[%s660_s1] sm:$0xff]  ;;  %v1195_v19 = vld [vmem:[%s4078_s3 + $0x8] sm:$0xff]  ;;  %v1196_v23 = vld [vmem:[%s4078_s3 + $0x10] sm:$0xff]  ;;  %s3333_s1 = smov 112   ;;  %v901_v63 = vunpack.c.0.s8 %v900_v59  ;;  %s4083_s21 = sld [smem:[#allocation25_spill]] }
  0x87   : > { %v676_v1 = vsel %vm675_vm0, %v3645_v0, 0.0  ;;  %v1194_v18 = vld [vmem:[%s4078_s3] sm:$0xff]  ;;  %2952 = vmatpush3.bf16.msra.mxu1 %v2951_v22  ;;  %v1197_v24 = vld [vmem:[%s4078_s3 + $0x18] sm:$0xff]  ;;  %s4084_s30 = sld [smem:[#allocation24_spill]]  ;;  %p4086_p1 = scmp.ne.s32.totalorder %s4072_s0, 0 }
  0x88   : > { %677 = vadd.xlane.f32.xlu0 %v676_v1  ;;  %v2960_v20 = vpack.c.bf16 %v1195_v19, %v1194_v18  ;;  %2953 = vmatprep.subr.bf16.mxu1 %v3329_v15  ;;  %v2963_v25 = vpack.c.bf16 %v1197_v24, %v1196_v23  ;;  %s3341_s20 = smov [#allocation11]  }
  0x8a   : > { %2961 = vmatpush3.bf16.msra.mxu0 %v2960_v20  ;;  %s667_s7 = scalar_lea.vmem %s4079_s23, %s2738_s16  ;;  %s4082_s23 = sld [smem:[#allocation28_spill]] }
  0x8b   : > { %2962 = vmatprep.subr.bf16.mxu0 %v3329_v15 }
  0x8c   : > { %1167 = vadd.xlane.f32.xlu0 %v676_v1  ;;  %v3724_v1 = vsub.s32 %v869_v60, %v871_v61 }
  0x8e   : > { %2964 = vmatpush3.bf16.msra.mxu0 %v2963_v25 }
  0x8f   : > { %2876 = vmatprep.subr.mxu0 %v3331_v21 }
 0x115   : > { %v678_v2 = vpop.xlane.xlu0 %677 }
 0x116   : > { %v680_v3 = vmul.f32 0.03125, %v678_v2 }
 0x118   : > { %v681_v4 = vsub.f32 %v3645_v0, %v680_v3 }
 0x119   : > { %v1168_v5 = vpop.xlane.xlu0 %1167 }
 0x11a   : > { %v1170_v6 = vmul.f32 0.03125, %v1168_v5  ;;  %v682_v7 = vmul.f32 %v681_v4, %v681_v4 }
 0x11c   : > { %v1171_v8 = vsub.f32 %v3645_v0, %v1170_v6  ;;  %v683_v9 = vsel %vm675_vm0, %v682_v7, 0.0 }
 0x11d   : > { %684 = vadd.xlane.f32.xlu1 %v683_v9 }
 0x11e   : > { %v1172_v10 = vmul.f32 %v1171_v8, %v1171_v8 }
 0x120   : > { %v1173_v11 = vsel %vm675_vm0, %v1172_v10, 0.0 }
 0x121   : > { %1174 = vadd.xlane.f32.xlu1 %v1173_v11 }
 0x1aa   : > { %v685_v26 = vpop.xlane.xlu1 %684 }
 0x1ab   : > { %v686_v27 = vmul.f32 0.03125, %v685_v26 }
 0x1ad   : > { %v687_v28 = vadd.f32 1e-06, %v686_v27 }
 0x1ae   : > { %v1175_v29 = vpop.xlane.xlu1 %1174 }
 0x1af   : > { %3094 = vrsqrt.f32 %v687_v28  ;;  %v1176_v30 = vmul.f32 0.03125, %v1175_v29 }
 0x1b1   : > { %v1177_v31 = vadd.f32 1e-06, %v1176_v30 }
 0x1b3   : > { %3096 = vrsqrt.f32 %v1177_v31 }
 0x1b9   : > { %v3095_v32 = vpop.eup %3094 }
 0x1ba   : > { %v689_v34 = vmul.f32 %v3095_v32, %v681_v4 }
 0x1bc   : > { %v696_v38 = vmul.f32 %v2740_v33, %v689_v34 }
 0x1bd   : > { %v3097_v39 = vpop.eup %3096 }
 0x1be   : > { %v703_v41 = vadd.f32 %v2741_v37, %v696_v38  ;;  %v1179_v44 = vmul.f32 %v3097_v39, %v1171_v8  ;;  %v3726_v8 = vsub.s32 %v901_v63, %v871_v61 }
 0x1c0   : > { %2842 = vmatmul.mubr.msk.f32.vlgmr.msra.gmra.mrb[0].mxu1 %vm675_vm0, %v703_v41  ;;  %v1186_v45 = vmul.f32 %v2740_v33, %v1179_v44 }
 0x1c1   : > { %2955 = vmatpush3.bf16.msra.mxu1 %v2954_v40  ;;  %2852 = vmatprep.mubr.msk.f32.mxu1 %vm3330_vm1, %v3331_v21 }
 0x1c2   : > { %2956 = vmatprep.subr.bf16.mxu1 %v3329_v15  ;;  %v1193_v47 = vadd.f32 %v2741_v37, %v1186_v45 }
 0x1c4   : > { %2864 = vmatmul.mubr.msk.f32.vlgmr.msra.gmra.mrb[0].mxu0 %vm675_vm0, %v1193_v47 }
 0x1c5   : > { %2958 = vmatpush3.bf16.msra.mxu1 %v2957_v46  ;;  %2878 = vmatprep.mubr.msk.f32.mxu0 %vm3330_vm1, %v3331_v21 }
 0x1c6   : > { %2866 = vmatprep.subr.mxu1 %v3331_v21 }
 0x1c8   : > { %2853 = vmatmul.mubr.msk.f32.vlgmr.msra.gmra.mrb[2].mxu1 %vm675_vm0, %v703_v41 }
 0x1c9   : > { %2868 = vmatprep.mubr.msk.f32.mxu1 %vm3330_vm1, %v3331_v21 }
 0x293   : > { %v777_v48 = vpop.f32.mrb[0].mxu1 }
 0x294   : > { %856 = vrot.lane.b32.xlu0 %v777_v48, %s3332_s14  ;;  %v2843_v49 = vpop.f32.mrb[1].mxu1  ;;  %859 = vrot.lane.b32.xlu1 %v777_v48, %s3333_s1 }
 0x297   : > { %v1267_v50 = vpop.f32.mrb[0].mxu0 }
 0x298   : > { %v1271_v51 = vmul.f32 0.35355338, %v1267_v50  ;;  %862 = vrot.lane.b32.xlu1 %v777_v48, %s3334_s18  ;;  %v2865_v52 = vpop.f32.mrb[1].mxu0 }
 0x29a   : > { %1276 = vrot.lane.b32.xlu0 %v1271_v51, %s3333_s1 }
 0x29b   : > { %v3720_v53 = vpop.f32.mrb[2].mxu1 }
 0x29c   : > { %v2854_v54 = vpop.f32.mrb[3].mxu1  ;;  %1273 = vrot.lane.b32.xlu1 %v1271_v51, %s3332_s14 }
 0x2a0   : > { %1279 = vrot.lane.b32.xlu1 %v1271_v51, %s3334_s18 }
 0x306   : > { %v860_v62 = vpop.permute.xlu1 %859  ;;  %v857_v4 = vpop.permute.xlu0 %856 }
 0x307   : > { %v865_v2 = vcombine.low %v777_v48, %v860_v62  ;;  %v866_v3 = vcombine.high %v777_v48, %v860_v62 }
 0x309   : > { %v873_v9 = vrot.slane %v865_v2, %v3724_v1  ;;  %v880_v10 = vrot.slane %v866_v3, %v3724_v1 }
 0x30a   : > { %v863_v5 = vpop.permute.xlu1 %862 }
 0x30b   : > { %v881_v6 = vcombine.low %v857_v4, %v863_v5  ;;  %v882_v7 = vcombine.high %v857_v4, %v863_v5 }
 0x30c   : > { %v1277_v19 = vpop.permute.xlu0 %1276 }
 0x30d   : > { %v889_v11 = vrot.slane %v881_v6, %v3724_v1  ;;  %v896_v12 = vrot.slane %v882_v7, %v3724_v1  ;;  %v1282_v25 = vcombine.low %v1271_v51, %v1277_v19  ;;  %v1283_v26 = vcombine.high %v1271_v51, %v1277_v19 }
 0x30e   : > { %v1274_v13 = vpop.permute.xlu1 %1273 }
 0x30f   : > { %v897_v14 = vcombine.low %v873_v9, %v889_v11  ;;  %v898_v16 = vcombine.high %v873_v9, %v889_v11  ;;  %v913_v17 = vcombine.low %v880_v10, %v896_v12  ;;  %v914_v18 = vcombine.high %v880_v10, %v896_v12 }
 0x310   : > { %v1290_v38 = vrot.slane %v1282_v25, %v3724_v1  ;;  %v1297_v39 = vrot.slane %v1283_v26, %v3724_v1 }
 0x311   : > { %v905_v20 = vrot.slane %v897_v14, %v3726_v8  ;;  %v912_v22 = vrot.slane %v898_v16, %v3726_v8  ;;  %v921_v23 = vrot.slane %v913_v17, %v3726_v8  ;;  %v928_v24 = vrot.slane %v914_v18, %v3726_v8 }
 0x312   : > { %v1280_v27 = vpop.permute.xlu1 %1279 }
 0x313   : > { %v933_v28 = vcombine.low %v905_v20, %v912_v22  ;;  %v2744_v29 = vcombine.high %v905_v20, %v912_v22  ;;  %v949_v30 = vcombine.low %v921_v23, %v928_v24  ;;  %v2745_v31 = vcombine.high %v921_v23, %v928_v24 }
 0x314   : > { %v1298_v32 = vcombine.low %v1274_v13, %v1280_v27  ;;  %v1299_v33 = vcombine.high %v1274_v13, %v1280_v27 }
 0x315   : > { %v940_v34 = vrot.slane %v933_v28, %v3724_v1  ;;  %v948_v35 = vrot.slane %v2744_v29, %v3724_v1  ;;  %v956_v36 = vrot.slane %v949_v30, %v3724_v1  ;;  %v964_v37 = vrot.slane %v2745_v31, %v3724_v1  ;;  %v1160_v28 = vld [vmem:[%s3625_s22] sm:$0xff]  ;;  %s2737_s22 = sshll.u32 %s3619_s13, 5 }
 0x316   : > { %v1306_v40 = vrot.slane %v1298_v32, %v3724_v1  ;;  %v1313_v41 = vrot.slane %v1299_v33, %v3724_v1  ;;  %vm1161_vm3 = vcmp.gt.f32.partialorder %v1160_v28, 0.5  ;;  %s3825_s24 = scalar_lea.vmem [#allocation11], %s2737_s22  ;;  %s2531_s22 = scalar_lea.sflag [#allocation12], %s3619_s13 }
 0x317   : > { %v965_v42 = vcombine.low %v940_v34, %v948_v35  ;;  %v966_v43 = vcombine.high %v940_v34, %v948_v35  ;;  %v981_v44 = vcombine.low %v956_v36, %v964_v37  ;;  %v982_v45 = vcombine.high %v956_v36, %v964_v37 }
 0x318   : > { %v1314_v46 = vcombine.low %v1290_v38, %v1306_v40  ;;  %v1315_v47 = vcombine.high %v1290_v38, %v1306_v40  ;;  %v1330_v48 = vcombine.low %v1297_v39, %v1313_v41  ;;  %v1331_v49 = vcombine.high %v1297_v39, %v1313_v41 }
 0x319   : > { %v973_v50 = vrot.slane %v965_v42, %v3726_v8  ;;  %v980_v51 = vrot.slane %v966_v43, %v3726_v8  ;;  %v989_v52 = vrot.slane %v981_v44, %v3726_v8  ;;  %v996_v54 = vrot.slane %v982_v45, %v3726_v8 }
 0x31a   : > { %v1322_v55 = vrot.slane %v1314_v46, %v3726_v8  ;;  %v1329_v56 = vrot.slane %v1315_v47, %v3726_v8  ;;  %v1338_v57 = vrot.slane %v1330_v48, %v3726_v8  ;;  %v1345_v58 = vrot.slane %v1331_v49, %v3726_v8 }
 0x31b   : > { %v997_v59 = vcombine.low %v973_v50, %v989_v52  ;;  %v998_v60 = vcombine.high %v973_v50, %v989_v52  ;;  %v999_v61 = vcombine.low %v980_v51, %v996_v54  ;;  %v1000_v62 = vcombine.high %v980_v51, %v996_v54 }
 0x31c   : > { %v1350_v63 = vcombine.low %v1322_v55, %v1329_v56  ;;  %v2751_v2 = vcombine.high %v1322_v55, %v1329_v56  ;;  %v1366_v3 = vcombine.low %v1338_v57, %v1345_v58  ;;  %v2752_v4 = vcombine.high %v1338_v57, %v1345_v58 }
 0x31d   : > { %1002 = vst.msk [vmem:[#allocation2] sm:$0xff] %vm1001_vm2, %v997_v59  ;;  %1003 = vst.msk [vmem:[#allocation2 + $0x8] sm:$0xff] %vm1001_vm2, %v998_v60  ;;  %v1162_v29 = vsel %vm1161_vm3, -1e+09, %v3331_v21 }
 0x31e   : > { %1004 = vst.msk [vmem:[#allocation2 + $0x10] sm:$0xff] %vm1001_vm2, %v999_v61  ;;  %1005 = vst.msk [vmem:[#allocation2 + $0x18] sm:$0xff] %vm1001_vm2, %v1000_v62  ;;  %v1357_v5 = vrot.slane %v1350_v63, %v3724_v1  ;;  %v1365_v6 = vrot.slane %v2751_v2, %v3724_v1  ;;  %v1373_v7 = vrot.slane %v1366_v3, %v3724_v1 }
 0x31f   : > { %v1381_v9 = vrot.slane %v2752_v4, %v3724_v1 }
 0x320   : > { %v1382_v10 = vcombine.low %v1357_v5, %v1365_v6  ;;  %v1383_v11 = vcombine.high %v1357_v5, %v1365_v6 }
 0x321   : > { %v1398_v12 = vcombine.low %v1373_v7, %v1381_v9  ;;  %v1399_v13 = vcombine.high %v1373_v7, %v1381_v9 }
 0x322   : > { %v1390_v14 = vrot.slane %v1382_v10, %v3726_v8  ;;  %v1397_v17 = vrot.slane %v1383_v11, %v3726_v8 }
 0x323   : > { %v1406_v16 = vrot.slane %v1398_v12, %v3726_v8  ;;  %v1413_v18 = vrot.slane %v1399_v13, %v3726_v8 }
 0x324   : > { %v1418_v19 = vld [vmem:[#allocation2] sm:$0xff]  ;;  %v1419_v24 = vld [vmem:[#allocation2 + $0x8] sm:$0xff] }
 0x325   : > { %v1420_v20 = vld [vmem:[#allocation2 + $0x10] sm:$0xff]  ;;  %2867 = vmatpush3.xpose.msk.msra.mxu1 %vm1001_vm2, %v1418_v19  ;;  %v1414_v22 = vcombine.low %v1390_v14, %v1406_v16  ;;  %v1416_v23 = vcombine.low %v1397_v17, %v1413_v18  ;;  %v1415_v25 = vcombine.high %v1390_v14, %v1406_v16  ;;  %v1421_v26 = vld [vmem:[#allocation2 + $0x18] sm:$0xff]  ;;  %v1417_v27 = vcombine.high %v1397_v17, %v1413_v18 }
 0x326   : > { %2877 = vmatpush3.xpose.msk.msra.mxu0 %vm1001_vm2, %v1420_v20  ;;  %2871 = vmatprep.subr.mxu1 %v3331_v21 }
 0x327   : > { %2886 = vmatprep.subr.mxu0 %v3331_v21 }
 0x328   : > { %2869 = vmatmul.mubr.msk.f32.vlgmr.msra.gmra.mrb[4].mxu1 %vm1001_vm2, %v1414_v22 }
 0x329   : > { %2879 = vmatmul.mubr.msk.f32.vlgmr.msra.gmra.mrb[2].mxu0 %vm1001_vm2, %v1416_v23  ;;  %2872 = vmatpush3.xpose.msk.msra.mxu1 %vm1001_vm2, %v1419_v24 }
 0x32a   : > { %2873 = vmatprep.mubr.msk.f32.mxu1 %vm3330_vm1, %v3331_v21  ;;  %2881 = vmatprep.subr.mxu1 %v3331_v21 }
 0x32b   : > { %2888 = vmatprep.mubr.msk.f32.mxu0 %vm3330_vm1, %v3331_v21 }
 0x32c   : > { %2874 = vmatmul.mubr.msk.f32.vlgmr.msra.gmra.mrb[6].mxu1 %vm1001_vm2, %v1415_v25 }
 0x32d   : > { %2882 = vmatpush3.xpose.msk.msra.mxu1 %vm1001_vm2, %v1421_v26  ;;  %2883 = vmatprep.mubr.msk.f32.mxu1 %vm3330_vm1, %v3331_v21 }
 0x32e   : > { %2891 = vmatprep.subr.mxu1 %v3331_v21 }
 0x330   : > { %2884 = vmatmul.mubr.msk.f32.vlgmr.msra.gmra.mrb[8].mxu1 %vm1001_vm2, %v1417_v27 }
 0x331   : > { %2893 = vmatprep.mubr.msk.f32.mxu1 %vm3330_vm1, %v3331_v21 }
 0x3fb   : > { %v1495_v30 = vpop.f32.mrb[4].mxu1 }
 0x3fc   : > { %v1647_v31 = vpop.f32.mrb[2].mxu0  ;;  %v1496_v32 = vadd.f32 %v1495_v30, %v1162_v29  ;;  %v2870_v33 = vpop.f32.mrb[5].mxu1 }
 0x3fd   : > { %v2880_v34 = vpop.f32.mrb[3].mxu0  ;;  %v1648_v35 = vadd.f32 %v1647_v31, %v1162_v29 }
 0x3fe   : > { %v1727_v36 = vsel %vm1001_vm2, %v1496_v32, -inf }
 0x3ff   : > { %1728 = vmax.xlane.f32.xlu0 %v1727_v36  ;;  %v1571_v37 = vpop.f32.mrb[6].mxu1  ;;  %v1733_v40 = vsel %vm1001_vm2, %v1648_v35, -inf }
 0x400   : > { %v1572_v38 = vadd.f32 %v1571_v37, %v1162_v29  ;;  %v2875_v39 = vpop.f32.mrb[7].mxu1 }
 0x402   : > { %v1730_v41 = vsel %vm1001_vm2, %v1572_v38, -inf }
 0x403   : > { %1734 = vmax.xlane.f32.xlu0 %v1733_v40  ;;  %1731 = vmax.xlane.f32.xlu1 %v1730_v41  ;;  %v1723_v42 = vpop.f32.mrb[8].mxu1 }
 0x404   : > { %v1724_v43 = vadd.f32 %v1723_v42, %v1162_v29  ;;  %v2885_v44 = vpop.f32.mrb[9].mxu1 }
 0x406   : > { %v1736_v45 = vsel %vm1001_vm2, %v1724_v43, -inf }
 0x407   : > { %1737 = vmax.xlane.f32.xlu0 %v1736_v45 }
 0x414   : > { %1010 = vrot.lane.b32.xlu1 %v3720_v53, %s3333_s1  ;;  %s4080_s1 = sld [smem:[#allocation23_spill]] }
 0x418   : > { %1013 = vrot.lane.b32.xlu1 %v3720_v53, %s3334_s18 }
 0x41d   : > { %1007 = vrot.lane.b32.xlu0 %v3720_v53, %s3332_s14  ;;  %s3340_s14 = smov 24  }
 0x48c   : > { %v1729_v46 = vpop.xlane.xlu0 %1728 }
 0x48d   : > { %v1739_v47 = vsub.f32 %v1496_v32, %v1729_v46 }
 0x48f   : > { %v1743_v48 = vmul.f32 1.442695, %v1739_v47 }
 0x490   : > { %v1735_v49 = vpop.xlane.xlu0 %1734  ;;  %v1732_v50 = vpop.xlane.xlu1 %1731 }
 0x491   : > { %3098 = vpow2.f32 %v1743_v48  ;;  %v1741_v51 = vsub.f32 %v1648_v35, %v1735_v49  ;;  %v1740_v52 = vsub.f32 %v1572_v38, %v1732_v50 }
 0x493   : > { %v1747_v54 = vmul.f32 1.442695, %v1741_v51  ;;  %v1745_v55 = vmul.f32 1.442695, %v1740_v52 }
 0x494   : > { %v1011_v56 = vpop.permute.xlu1 %1010  ;;  %v1738_v57 = vpop.xlane.xlu0 %1737 }
 0x495   : > { %3100 = vpow2.f32 %v1747_v54  ;;  %v1742_v58 = vsub.f32 %v1724_v43, %v1738_v57  ;;  %v1016_v59 = vcombine.low %v3720_v53, %v1011_v56  ;;  %v1017_v60 = vcombine.high %v3720_v53, %v1011_v56 }
 0x496   : > { %3102 = vpow2.f32 %v1745_v55 }
 0x497   : > { %v1749_v61 = vmul.f32 1.442695, %v1742_v58  ;;  %v1024_v4 = vrot.slane %v1016_v59, %v3724_v1  ;;  %v1031_v6 = vrot.slane %v1017_v60, %v3724_v1 }
 0x498   : > { %v1014_v62 = vpop.permute.xlu1 %1013  ;;  %v1008_v63 = vpop.permute.xlu0 %1007 }
 0x499   : > { %v1032_v2 = vcombine.low %v1008_v63, %v1014_v62  ;;  %v1033_v3 = vcombine.high %v1008_v63, %v1014_v62  ;;  %3104 = vpow2.f32 %v1749_v61  ;;  %v2224_v63 = vld [vmem:[#allocation7] sm:$0xff] }
 0x49b   : > { %v3099_v5 = vpop.eup %3098  ;;  %v1040_v7 = vrot.slane %v1032_v2, %v3724_v1  ;;  %v1047_v9 = vrot.slane %v1033_v3, %v3724_v1  ;;  %v2225_v2 = vld [vmem:[#allocation7 + $0x8] sm:$0xff] }
 0x49c   : > { %v1751_v10 = vsel %vm1001_vm2, %v3099_v5, 0.0  ;;  %v2966_v3 = vpack.c.bf16 %v2225_v2, %v2224_v63 }
 0x49d   : > { %v1048_v11 = vcombine.low %v1024_v4, %v1040_v7  ;;  %v1049_v12 = vcombine.high %v1024_v4, %v1040_v7  ;;  %v1064_v53 = vcombine.low %v1031_v6, %v1047_v9  ;;  %v1065_v13 = vcombine.high %v1031_v6, %v1047_v9  ;;  %1752 = vadd.xlane.f32.xlu1 %v1751_v10 }
 0x49f   : > { %v3101_v14 = vpop.eup %3100  ;;  %v1056_v16 = vrot.slane %v1048_v11, %v3726_v8  ;;  %v1063_v17 = vrot.slane %v1049_v12, %v3726_v8  ;;  %v1072_v18 = vrot.slane %v1064_v53, %v3726_v8  ;;  %v1079_v19 = vrot.slane %v1065_v13, %v3726_v8 }
 0x4a0   : > { %v1757_v20 = vsel %vm1001_vm2, %v3101_v14, 0.0  ;;  %v3103_v22 = vpop.eup %3102 }
 0x4a1   : > { %v1084_v23 = vcombine.low %v1056_v16, %v1063_v17  ;;  %v2746_v24 = vcombine.high %v1056_v16, %v1063_v17  ;;  %v1100_v25 = vcombine.low %v1072_v18, %v1079_v19  ;;  %v2747_v26 = vcombine.high %v1072_v18, %v1079_v19  ;;  %1758 = vadd.xlane.f32.xlu0 %v1757_v20 }
 0x4a2   : > { %v1754_v31 = vsel %vm1001_vm2, %v3103_v22, 0.0 }
 0x4a3   : > { %v1091_v27 = vrot.slane %v1084_v23, %v3724_v1  ;;  %v1099_v28 = vrot.slane %v2746_v24, %v3724_v1  ;;  %v1107_v29 = vrot.slane %v1100_v25, %v3724_v1  ;;  %v1115_v30 = vrot.slane %v2747_v26, %v3724_v1  ;;  %v3105_v32 = vpop.eup %3104  ;;  %v2226_v26 = vld [vmem:[#allocation7 + $0x10] sm:$0xff] }
 0x4a4   : > { %v1760_v41 = vsel %vm1001_vm2, %v3105_v32, 0.0 }
 0x4a5   : > { %v1116_v33 = vcombine.low %v1091_v27, %v1099_v28  ;;  %v1117_v34 = vcombine.high %v1091_v27, %v1099_v28  ;;  %v1132_v35 = vcombine.low %v1107_v29, %v1115_v30  ;;  %v1133_v36 = vcombine.high %v1107_v29, %v1115_v30  ;;  %1755 = vadd.xlane.f32.xlu0 %v1754_v31  ;;  %v2227_v27 = vld [vmem:[#allocation7 + $0x18] sm:$0xff] }
 0x4a7   : > { %v1124_v37 = vrot.slane %v1116_v33, %v3726_v8  ;;  %v1131_v38 = vrot.slane %v1117_v34, %v3726_v8  ;;  %v1140_v39 = vrot.slane %v1132_v35, %v3726_v8  ;;  %v1147_v40 = vrot.slane %v1133_v36, %v3726_v8 }
 0x4a9   : > { %v1148_v42 = vcombine.low %v1124_v37, %v1140_v39  ;;  %v1149_v43 = vcombine.high %v1124_v37, %v1140_v39  ;;  %v1150_v44 = vcombine.low %v1131_v38, %v1147_v40  ;;  %v1151_v45 = vcombine.high %v1131_v38, %v1147_v40  ;;  %1761 = vadd.xlane.f32.xlu0 %v1760_v41 }
 0x4ab   : > { %1152 = vst.msk [vmem:[#allocation3] sm:$0xff] %vm1001_vm2, %v1148_v42  ;;  %1153 = vst.msk [vmem:[#allocation3 + $0x8] sm:$0xff] %vm1001_vm2, %v1149_v43 }
 0x4ac   : > { %1154 = vst.msk [vmem:[#allocation3 + $0x10] sm:$0xff] %vm1001_vm2, %v1150_v44  ;;  %1155 = vst.msk [vmem:[#allocation3 + $0x18] sm:$0xff] %vm1001_vm2, %v1151_v45  ;;  %v3337_v45 = vmov 0  }
 0x4ad   : > { %3092 = vset.pattern.permute.xlu1 %v3337_v45  ;;  %3093 = vset.pattern.permute.xlu0 %v3337_v45 }
 0x4b2   : > { %v1775_v46 = vld [vmem:[#allocation3] sm:$0xff]  ;;  %v1776_v47 = vld [vmem:[#allocation3 + $0x8] sm:$0xff] }
 0x4b3   : > { %2887 = vmatpush3.msra.mxu0 %v1775_v46  ;;  %2892 = vmatpush3.msra.mxu1 %v1776_v47  ;;  %v1777_v55 = vld [vmem:[#allocation3 + $0x10] sm:$0xff]  ;;  %v1778_v60 = vld [vmem:[#allocation3 + $0x18] sm:$0xff] }
 0x4b4   : > { %2896 = vmatprep.subr.mxu0 %v3331_v21  ;;  %2901 = vmatprep.subr.mxu1 %v3331_v21 }
 0x52a   : > { %v1753_v48 = vpop.xlane.xlu1 %1752 }
 0x52b   : > { %3106 = vrcp.f32 %v1753_v48 }
 0x52e   : > { %v1759_v49 = vpop.xlane.xlu0 %1758 }
 0x52f   : > { %3108 = vrcp.f32 %v1759_v49 }
 0x532   : > { %v1756_v50 = vpop.xlane.xlu0 %1755 }
 0x533   : > { %3110 = vrcp.f32 %v1756_v50 }
 0x535   : > { %v3107_v51 = vpop.eup %3106 }
 0x536   : > { %v1767_v52 = vmul.f32 %v3107_v51, %v3099_v5  ;;  %v1762_v54 = vpop.xlane.xlu0 %1761 }
 0x537   : > { %3112 = vrcp.f32 %v1762_v54  ;;  %v1159_v54 = vld [vmem:[%s667_s7] sm:$0xff]  ;;  %s2559_s7 = sshll.u32 %s3825_s24, 4  ;;  %s3935_s7 = int_to_ptr.vmem [resolvable:$true] %s2559_s7 }
 0x538   : > { %1771 = vst.msk [vmem:[%s3825_s24] sm:$0xff] %vm1001_vm2, %v1767_v52  ;;  %2889 = vmatmul.mubr.msk.f32.vlgmr.msra.gmra.mrb[4].mxu0 %vm1001_vm2, %v1767_v52 }
 0x539   : > { %v3109_v56 = vpop.eup %3108  ;;  %2897 = vmatpush3.msra.mxu0 %v1777_v55  ;;  %2898 = vmatprep.mubr.msk.f32.mxu0 %vm3330_vm1, %v3331_v21 }
 0x53a   : > { %v1769_v57 = vmul.f32 %v3109_v56, %v3101_v14  ;;  %2965 = vmatprep.subr.bf16.mxu0 %v3329_v15 }
 0x53c   : > { %1773 = vst.msk [vmem:[%s3825_s24 + $0x10] sm:$0xff] %vm1001_vm2, %v1769_v57  ;;  %2899 = vmatmul.mubr.msk.f32.vlgmr.msra.gmra.mrb[6].mxu0 %vm1001_vm2, %v1769_v57 }
 0x53d   : > { %v3111_v58 = vpop.eup %3110  ;;  %2914 = vmatprep.mubr.msk.f32.mxu0 %vm3330_vm1, %v3331_v21  ;;  %2967 = vmatpush3.bf16.msra.mxu0 %v2966_v3 }
 0x53e   : > { %v1768_v59 = vmul.f32 %v3111_v58, %v3103_v22  ;;  %2968 = vmatprep.subr.bf16.mxu0 %v3329_v15 }
 0x540   : > { %1772 = vst.msk [vmem:[%s3825_s24 + $0x8] sm:$0xff] %vm1001_vm2, %v1768_v59  ;;  %2894 = vmatmul.mubr.msk.f32.vlgmr.msra.gmra.mrb[10].mxu1 %vm1001_vm2, %v1768_v59 }
 0x541   : > { %v3113_v61 = vpop.eup %3112  ;;  %2902 = vmatpush3.msra.mxu1 %v1778_v60  ;;  %2903 = vmatprep.mubr.msk.f32.mxu1 %vm3330_vm1, %v3331_v21  ;;  %v2767_v60 = vld [vmem:[%s4080_s1] ss:$0 sm:$0xff]  ;;  %s4085_s1 = sld [smem:[#allocation30_spill]] }
 0x542   : > { %v1770_v62 = vmul.f32 %v3113_v61, %v3105_v32  ;;  %2971 = vmatprep.subr.bf16.mxu1 %v3329_v15  ;;  %v2969_v32 = vpack.c.bf16 %v2227_v27, %v2226_v26  ;;  %v2433_v26 = vld [vmem:[%s4083_s21] sm:$0xff]  ;;  %v2434_v27 = vld [vmem:[%s4083_s21 + $0x8] sm:$0xff] }
 0x544   : > { %1774 = vst.msk [vmem:[%s3825_s24 + $0x18] sm:$0xff] %vm1001_vm2, %v1770_v62  ;;  %2904 = vmatmul.mubr.msk.f32.vlgmr.msra.gmra.mrb[12].mxu1 %vm1001_vm2, %v1770_v62  ;;  %2970 = vmatpush3.bf16.msra.mxu0 %v2969_v32  ;;  %v2437_v32 = vld [vmem:[%s4083_s21 + $0x20] sm:$0xff] }
 0x545   : > { %2925 = vmatprep.mubr.msk.f32.mxu1 %vm3330_vm1, %v3331_v21  ;;  %2977 = vmatprep.subr.bf16.mxu0 %v3329_v15 }
 0x60b   : > { %v1848_v4 = vpop.f32.mrb[4].mxu0 }
 0x60c   : > { %v2890_v5 = vpop.f32.mrb[5].mxu0 }
 0x60f   : > { %v1994_v6 = vpop.f32.mrb[6].mxu0 }
 0x610   : > { %v2071_v7 = vcombine.low %v1848_v4, %v1994_v6  ;;  %v2072_v9 = vcombine.high %v1848_v4, %v1994_v6  ;;  %v2900_v10 = vpop.f32.mrb[7].mxu0 }
 0x612   : > { %v2079_v17 = vrot.slane %v2071_v7, %v3724_v1  ;;  %v2086_v18 = vrot.slane %v2072_v9, %v3724_v1 }
 0x613   : > { %v1921_v11 = vpop.f32.mrb[10].mxu1 }
 0x614   : > { %v2895_v12 = vpop.f32.mrb[11].mxu1 }
 0x615   : > { %v2345_v12 = vld [vmem:[#allocation9 + $0x8] sm:$0xff] }
 0x617   : > { %v2067_v53 = vpop.f32.mrb[12].mxu1 }
 0x618   : > { %v2087_v13 = vcombine.low %v1921_v11, %v2067_v53  ;;  %v2088_v14 = vcombine.high %v1921_v11, %v2067_v53  ;;  %v2905_v16 = vpop.f32.mrb[13].mxu1  ;;  %v2344_v11 = vld [vmem:[#allocation9] sm:$0xff] }
 0x619   : > { %v2972_v53 = vpack.c.bf16 %v2345_v12, %v2344_v11 }
 0x61a   : > { %v2095_v19 = vrot.slane %v2087_v13, %v3724_v1  ;;  %v2102_v20 = vrot.slane %v2088_v14, %v3724_v1  ;;  %v2347_v13 = vld [vmem:[#allocation9 + $0x18] sm:$0xff] }
 0x61b   : > { %2973 = vmatpush3.bf16.msra.mxu1 %v2972_v53 }
 0x61c   : > { %v2103_v22 = vcombine.low %v2079_v17, %v2095_v19  ;;  %v2104_v23 = vcombine.high %v2079_v17, %v2095_v19  ;;  %v2119_v24 = vcombine.low %v2086_v18, %v2102_v20  ;;  %v2120_v25 = vcombine.high %v2086_v18, %v2102_v20  ;;  %2974 = vmatprep.subr.bf16.mxu1 %v3329_v15 }
 0x61e   : > { %v2111_v28 = vrot.slane %v2103_v22, %v3726_v8  ;;  %v2118_v29 = vrot.slane %v2104_v23, %v3726_v8  ;;  %v2127_v30 = vrot.slane %v2119_v24, %v3726_v8  ;;  %v2134_v31 = vrot.slane %v2120_v25, %v3726_v8  ;;  %v2770_v23 = vld [vmem:[%s4082_s23] ss:$0 sm:$0xff]  ;;  %s2782_s23 = sshll.u32 %s3314_s27, 9 }
 0x61f   : > { %s3933_s18 = scalar_lea.hbm %s4085_s1, %s2782_s23 }
 0x620   : > { %v2139_v33 = vcombine.low %v2111_v28, %v2118_v29  ;;  %v2765_v34 = vcombine.high %v2111_v28, %v2118_v29  ;;  %v2155_v35 = vcombine.low %v2127_v30, %v2134_v31  ;;  %v2766_v36 = vcombine.high %v2127_v30, %v2134_v31  ;;  %v2435_v29 = vld [vmem:[%s4083_s21 + $0x10] sm:$0xff]  ;;  %v2436_v30 = vld [vmem:[%s4083_s21 + $0x18] sm:$0xff] }
 0x621   : > { %v2978_v28 = vpack.c.bf16 %v2434_v27, %v2433_v26  ;;  %v2981_v31 = vpack.c.bf16 %v2436_v30, %v2435_v29 }
 0x622   : > { %v2146_v37 = vrot.slane %v2139_v33, %v3724_v1  ;;  %v2154_v38 = vrot.slane %v2765_v34, %v3724_v1  ;;  %v2162_v39 = vrot.slane %v2155_v35, %v3724_v1  ;;  %v2170_v40 = vrot.slane %v2766_v36, %v3724_v1  ;;  %v2438_v33 = vld [vmem:[%s4083_s21 + $0x28] sm:$0xff]  ;;  %v2439_v35 = vld [vmem:[%s4083_s21 + $0x30] sm:$0xff]  ;;  %v2440_v36 = vld [vmem:[%s4083_s21 + $0x38] sm:$0xff] }
 0x623   : > { %v2984_v34 = vpack.c.bf16 %v2438_v33, %v2437_v32 }
 0x624   : > { %v2172_v41 = vcombine.high %v2146_v37, %v2154_v38  ;;  %v2188_v42 = vcombine.high %v2162_v39, %v2170_v40  ;;  %v2171_v43 = vcombine.low %v2146_v37, %v2154_v38  ;;  %v2187_v44 = vcombine.low %v2162_v39, %v2170_v40  ;;  %v2771_v38 = vld [vmem:[%s4084_s30] ss:$0 sm:$0xff]  ;;  %s3208_s30 = sshll.u32 %s3341_s20, 4  ;;  %s3209_s30 = int_to_ptr.vmem [resolvable:$false] %s3208_s30 }
 0x625   : > { %v2987_v37 = vpack.c.bf16 %v2440_v36, %v2439_v35  ;;  %s3210_s24 = scalar_lea.vmem %s3209_s30, 1024  ;;  %p3211_p5 = scmp.lt.s32.totalorder %s3935_s7, %s3209_s30 }
 0x626   : > { %v2186_v46 = vrot.slane %v2172_v41, %v3726_v8  ;;  %v2202_v47 = vrot.slane %v2188_v42, %v3726_v8  ;;  %v2179_v48 = vrot.slane %v2171_v43, %v3726_v8  ;;  %v2195_v49 = vrot.slane %v2187_v44, %v3726_v8 }
 0x628   : > { %v2205_v50 = vcombine.low %v2186_v46, %v2202_v47  ;;  %v2204_v1 = vcombine.high %v2179_v48, %v2195_v49  ;;  %v2206_v51 = vcombine.high %v2186_v46, %v2202_v47  ;;  %v2203_v52 = vcombine.low %v2179_v48, %v2195_v49 }
 0x62a   : > { %2212 = vrot.lane.b32.xlu0 %v2205_v50, %s3338_s19  ;;  %2208 = vrot.lane.b32.xlu1 %v2204_v1, %s3339_s17  ;;  %s4081_s19 = sld [smem:[#allocation27_spill]] }
 0x62e   : > { %2216 = vrot.lane.b32.xlu1 %v2206_v51, %s3340_s14 }
 0x630   : > { %v2769_v20 = vld [vmem:[%s4081_s19] ss:$0 sm:$0xff]  ;;  %s3204_s19 = scalar_lea.vmem %s3935_s7, 512 }
 0x631   : > { %p3205_p12 = scmp.ne.s32.totalorder %s3935_s7, %s3204_s19  ;;  %p3212_p9 = scmp.lt.s32.totalorder %s3210_s24, %s3204_s19 }
 0x632   : > { %2311 = vperm.xlu1 %3092, %v1159_v54  }
 0x633   : > { %p3206_p10 = pnand %p3205_p12, %p4086_p1  ;;  %p3213_p11 = por %p3212_p9, %p3211_p5 }
 0x635   : > { %p3207_p3 = pneg %p3206_p10 }
 0x637   : > { %p3214_p0 = pnand %p3213_p11, %p3207_p3 }
 0x69c   : > { %v2209_v55 = vpop.permute.xlu1 %2208  ;;  %v2213_v8 = vpop.permute.xlu0 %2212 }
 0x69d   : > { %v2219_v56 = vsel %vm1001_vm2, %v2203_v52, %v2209_v55 }
 0x69e   : > { %v2221_v58 = vsel %vm2220_vm4, %v2219_v56, %v2213_v8 }
 0x6a0   : > { %v2217_v57 = vpop.permute.xlu1 %2216 }
 0x6a1   : > { %v2223_v59 = vsel %vm2222_vm5, %v2221_v58, %v2217_v57 }
 0x6a2   : > { %2915 = vmatmul.mubr.msk.f32.vlgmr.msra.gmra.mrb[8].mxu0 %vm675_vm0, %v2223_v59 }
 0x6a3   : > { %2944 = vmatprep.mubr.msk.f32.mxu0 %vm3330_vm1, %v3331_v21  ;;  %2979 = vmatpush3.bf16.msra.mxu0 %v2978_v28 }
 0x6a4   : > { %2980 = vmatprep.subr.bf16.mxu0 %v3329_v15 }
 0x6a7   : > { %2982 = vmatpush3.bf16.msra.mxu0 %v2981_v31 }
 0x6a8   : > { %2983 = vmatprep.subr.bf16.mxu0 %v3329_v15 }
 0x6ab   : > { %2985 = vmatpush3.bf16.msra.mxu0 %v2984_v34 }
 0x6ac   : > { %2986 = vmatprep.subr.bf16.mxu0 %v3329_v15 }
 0x6af   : > { %2988 = vmatpush3.bf16.msra.mxu0 %v2987_v37 }
 0x6b1   : > { %v3880_v2 = vpop.permute.xlu1 %2311 }
 0x775   : > { %v2304_v61 = vpop.f32.mrb[8].mxu0 }
 0x776   : > { %v2305_v62 = vadd.f32 %v2767_v60, %v2304_v61  ;;  %v2916_v63 = vpop.f32.mrb[9].mxu0 }
 0x778   : > { %v2308_v3 = vadd.f32 %v2305_v62, %v3645_v0  ;;  %v2346_v0 = vld [vmem:[#allocation9 + $0x10] sm:$0xff] }
 0x779   : > { %v2975_v14 = vpack.c.bf16 %v2347_v13, %v2346_v0 }
 0x77a   : > { %v3884_v4 = vmul.f32 %v3880_v2, %v2308_v3 }
 0x77b   : > { %2976 = vmatpush3.bf16.msra.mxu1 %v2975_v14 }
 0x77c   : > { %v2317_v5 = vsel %vm675_vm0, %v3884_v4, 0.0 }
 0x77d   : > { %2318 = vadd.xlane.f32.xlu1 %v2317_v5 }
 0x80a   : > { %v2319_v6 = vpop.xlane.xlu1 %2318 }
 0x80b   : > { %v2320_v21 = vmul.f32 0.03125, %v2319_v6 }
 0x80d   : > { %v2321_v7 = vsub.f32 %v3884_v4, %v2320_v21 }
 0x80f   : > { %v2322_v9 = vmul.f32 %v2321_v7, %v2321_v7 }
 0x811   : > { %v2323_v10 = vsel %vm675_vm0, %v2322_v9, 0.0 }
 0x812   : > { %2324 = vadd.xlane.f32.xlu0 %v2323_v10 }
 0x89f   : > { %v2325_v16 = vpop.xlane.xlu0 %2324 }
 0x8a0   : > { %v2326_v17 = vmul.f32 0.03125, %v2325_v16 }
 0x8a2   : > { %v2327_v18 = vadd.f32 1e-06, %v2326_v17 }
 0x8a4   : > { %3114 = vrsqrt.f32 %v2327_v18 }
 0x8ae   : > { %v3115_v19 = vpop.eup %3114 }
 0x8af   : > { %v2329_v22 = vmul.f32 %v3115_v19, %v2321_v7 }
 0x8b1   : > { %v2336_v24 = vmul.f32 %v2769_v20, %v2329_v22 }
 0x8b3   : > { %v2343_v25 = vadd.f32 %v2770_v23, %v2336_v24 }
 0x8b5   : > { %2926 = vmatmul.mubr.msk.f32.vlgmr.msra.gmra.mrb[14].mxu1 %vm675_vm0, %v2343_v25 }
 0x988   : > { %v2424_v39 = vpop.f32.mrb[14].mxu1 }
 0x989   : > { %v2425_v40 = vadd.f32 %v2771_v38, %v2424_v39  ;;  %v2927_v15 = vpop.f32.mrb[15].mxu1 }
 0x98b   : > { %v2429_v41 = vmul.f32 0.70710677, %v2425_v40  ;;  %v2428_v43 = vmul.f32 0.5, %v2425_v40 }
 0x98d   : > { %3116 = verf.f32 %v2429_v41 }
 0x997   : > { %v3117_v42 = vpop.eup %3116 }
 0x998   : > { %v2431_v44 = vadd.f32 1.0, %v3117_v42 }
 0x99a   : > { %v2432_v45 = vmul.f32 %v2431_v44, %v2428_v43 }
 0x99c   : > { %2945 = vmatmul.mubr.msk.f32.vlgmr.msra.gmra.mrb[10].mxu0 %vm2448_vm6, %v2432_v45 }
 0x99d   : > { %3217 = shalt.err (!%p3214_p0)
}
 0x99e   : > { %s3218_s23 = scalar_lea.hbm %s3933_s18, 512  ;;  %s3222_s20 = scalar_lea.hbm %s4085_s1, 1024 }
 0x99f   : > { %p3219_p4 = scmp.ne.s32.totalorder %s3933_s18, %s3218_s23  ;;  %p3223_p7 = scmp.lt.u32.totalorder %s3933_s18, %s4085_s1 }
 0x9a0   : > { %p3224_p2 = scmp.lt.u32.totalorder %s3222_s20, %s3218_s23  ;;  %p3226_p12 = scmp.lt.u32.totalorder %s3218_s23, %s3933_s18 }
 0x9a1   : > { %p3220_p13 = pnand %p3219_p4, %p4086_p1 }
 0x9a2   : > { %p3225_p8 = por %p3224_p2, %p3223_p7 }
 0x9a3   : > { %p3221_p6 = pneg %p3220_p13 }
 0x9a4   : > { %p3227_p10 = por %p3226_p12, %p3225_p8 }
 0x9a6   : > { %p3228_p3 = pnand %p3227_p10, %p3221_p6 }
 0x9a8   : > { %3231 = shalt.err (!%p3228_p3)
}
 0x9a9   : > { %s3342_s19 = smov 128   ;;  %s4087_s14 = sld [smem:[#allocation26_spill]] }
 0x9aa   : > { %3000 = dma.vmem_to_hbm [thread:$0]  (%p4086_p1), %s3935_s7, 512, %s3933_s18, %s2531_s22, %s3342_s19, %s3342_s19, %s3339_s17  }
 0x9ab   : > { %s2777_s23 = sshll.u32 %s3314_s27, 7  ;;  %s4088_s16 = sshll.u32 %s3619_s13, 3 }
 0x9ac   : > { %s649_s20 = scalar_lea.vmem [#allocation10], %s4088_s16  ;;  %s4089_s3 = sld [smem:[#allocation29_spill]] }
 0x9ad   : > { %s2545_s30 = sshll.u32 %s649_s20, 4  ;;  %s2526_s27 = scalar_lea.sflag [#allocation6], %s3619_s13  ;;  %s3975_s30 = int_to_ptr.vmem [resolvable:$true] %s2545_s30 }
 0x9ae   : > { %s3232_s7 = scalar_lea.vmem %s3975_s30, 128  ;;  %s3343_s18 = smov [#allocation10]  }
 0x9af   : > { %v2773_v46 = vld [vmem:[%s4087_s14] ss:$0 sm:$0xff]  ;;  %p3233_p5 = scmp.ne.s32.totalorder %s3975_s30, %s3232_s7  ;;  %s3236_s22 = sshll.u32 %s3343_s18, 4  ;;  %s3237_s22 = int_to_ptr.vmem [resolvable:$false] %s3236_s22 }
 0x9b0   : > { %s3238_s19 = scalar_lea.vmem %s3237_s22, 256  ;;  %p3239_p0 = scmp.lt.s32.totalorder %s3975_s30, %s3237_s22 }
 0x9b1   : > { %p3234_p9 = pnand %p3233_p5, %p4086_p1  ;;  %p3240_p4 = scmp.lt.s32.totalorder %s3238_s19, %s3232_s7 }
 0x9b2   : > { %s3973_s17 = scalar_lea.hbm %s4089_s3, %s2777_s23 }
 0x9b3   : > { %p3235_p11 = pneg %p3234_p9  ;;  %p3241_p13 = por %p3240_p4, %p3239_p0 }
 0x9b5   : > { %p3242_p6 = pnand %p3241_p13, %p3235_p11 }
 0xa6f   : > { %v2518_v47 = vpop.f32.mrb[10].mxu0 }
 0xa70   : > { %v2519_v48 = vadd.f32 %v2773_v46, %v2518_v47  ;;  %v2946_v49 = vpop.f32.mrb[11].mxu0 }
 0xa72   : > { %v2522_v50 = vadd.f32 %v2519_v48, %v3884_v4 }
 0xa74   : > { %v2523_v1 = vmul.f32 %v2522_v50, %v3880_v2 }
 0xa76   : > { %2524 = vst.msk [vmem:[%s649_s20] sm:$0xff] %vm675_vm0, %v2523_v1 }
 0xa77   : > { %3245 = shalt.err (!%p3242_p6)
}
 0xa78   : > { %s3246_s2 = scalar_lea.hbm %s3973_s17, 128  ;;  %s3250_s11 = scalar_lea.hbm %s4089_s3, 256 }
 0xa79   : > { %p3247_p7 = scmp.ne.s32.totalorder %s3973_s17, %s3246_s2  ;;  %p3251_p12 = scmp.lt.u32.totalorder %s3973_s17, %s4089_s3 }
 0xa7a   : > { %p3252_p10 = scmp.lt.u32.totalorder %s3250_s11, %s3246_s2  ;;  %p3254_p5 = scmp.lt.u32.totalorder %s3246_s2, %s3973_s17 }
 0xa7b   : > { %p3248_p2 = pnand %p3247_p7, %p4086_p1 }
 0xa7c   : > { %p3253_p3 = por %p3252_p10, %p3251_p12 }
 0xa7d   : > { %p3249_p8 = pneg %p3248_p2 }
 0xa7e   : > { %p3255_p9 = por %p3254_p5, %p3253_p3 }
 0xa80   : > { %p3256_p11 = pnand %p3255_p9, %p3249_p8 }
 0xa82   : > { %3259 = shalt.err (!%p3256_p11)
}
 0xa83   : > { %2999 = dma.vmem_to_hbm [thread:$0]  (%p4086_p1), %s3975_s30, 128, %s3973_s17, %s2526_s27  }
 0xa84 PF: > { %s4090_s23 = sld [smem:[#allocation17_spill]]  ;;  %s4091_s16 = sld [smem:[#allocation18_spill]] }
 0xa85   : > { %p4093_p4 = scmp.ge.s32.totalorder %s3322_s29, 2 }
 0xa8a   : > { %s2574_s20 = sand.u32 1, %s4090_s23   ;;  %p4092_p0 = scmp.ne.s32.totalorder %s4091_s16, 0 }
 0xa8b   : > { %s2575_s7 = scalar_lea.sflag [#allocation6], %s2574_s20 }
 0xa8c   : > { %p3015_p13 = pnand %p4093_p4, %p4092_p0 }
 0xa8e   : > { %3293 = dma.done.wait (!%p3015_p13), %s2575_s7, 128  }
 0xa8f   : > { %3295 = vsyncadd (!%p3015_p13), %s2575_s7, 4294967168  ;;  %s2584_s18 = scalar_lea.sflag [#allocation12], %s2574_s20 }
 0xa90   : > { %3297 = dma.done.wait (!%p3015_p13), %s2584_s18, 512  }
 0xa91   : > { %3299 = vsyncadd (!%p3015_p13), %s2584_s18, 4294966784  ;;  %s38_s29 = sadd.s32 1, %s3322_s29   ;;  %s4094_s24 = smov %s3306_s25 }
 0xa92   : > { %p35_p6 = scmp.ge.s32.totalorder %s38_s29, 4   ;;  %s4095_s25 = smov %s3310_s26 }
 0xa93   : > { %s4096_s26 = smov %s3576_s12  ;;  %s4097_s27 = smov %s3318_s28 }
 0xa94   : > { %s4098_s28 = smov %s4100_s15  ;;  %37 = sbr.rel (!%p35_p6) target bundleno = 22 (0x16), region = 165 }
 0xa9b   :  { %2589 = vsyncpa [#allocation5], 1 }
 0xa9c   :  { %2591 = vsyncpa [#allocation5 + $0x1], 1 }
 0xa9d   :  { %2592 = vsyncpa [#allocation8], 1 }
 0xa9e   :  { %2593 = vsyncpa [#allocation6], 1 }
 0xa9f   :  { %2595 = vsyncpa [#allocation6 + $0x1], 1 }
 0xaa0   :  { %2596 = vsyncpa [#allocation12], 1 }
 0xaa1   :  { %2598 = vsyncpa [#allocation12 + $0x1], 1 }

</bundles_post_ra>
